<compile_context>
chip_gen: v6e
topology: v6e:2x2x1
jax: 0.10.0
libtpu: 0.0.40
codegen_flags: <defaults>
</compile_context>

<pallas_src>
import jax
import jax.numpy as jnp
from jax import lax
from jax.experimental import pallas as pl
from jax.experimental.pallas import tpu as pltpu

BN_EPS = 1e-5


def _round_up(x, m):
    return (x + m - 1) // m * m


def _cdiv(a, b):
    return (a + b - 1) // b


def _vmem_capacity_bytes():
    try:
        info = pltpu.get_tpu_info()
        for attr in ("vmem_capacity_bytes", "vmem_size_bytes", "vmem_bytes"):
            v = getattr(info, attr, None)
            if v:
                return int(v)
    except Exception:
        pass
    return 64 * 1024 * 1024  # conservative fallback = v7x physical VMEM


_VMEM_CAP = _vmem_capacity_bytes()
# Scoped VMEM budget: ~75% of physical, capped (<= 48 MiB on v7x, 64 MiB on v5e/v6e).
VMEM_LIMIT = int(min(_VMEM_CAP * 3 // 4, 64 * 1024 * 1024))
_BIG_VMEM = _VMEM_CAP >= 96 * 1024 * 1024
TM_MAX = 1024 if _BIG_VMEM else 512     # matmul M tile
TK_MAX = 1024                           # matmul K (contraction) tile
TM_EW = 2048 if _BIG_VMEM else 1024     # elementwise BN-apply M tile


# ----------------------------- Pallas kernels -----------------------------

def _mm_stats_kernel(w_ref, x_ref, o_ref, s_ref, ss_ref, acc_ref):
    """(Cout, tk) @ (tk, tm), accumulated over the K grid axis in an f32 VMEM
    scratch.  At the last K step: cast to bf16 output and emit per-channel
    sum / sum-of-squares (BN batch statistics) for this M tile."""
    k = pl.program_id(1)

    @pl.when(k == 0)
    def _():
        acc_ref[...] = jnp.zeros_like(acc_ref)

    acc_ref[...] += jnp.dot(w_ref[...], x_ref[...],
                            preferred_element_type=jnp.float32)

    @pl.when(k == pl.num_programs(1) - 1)
    def _():
        acc = acc_ref[...]
        o_ref[...] = acc.astype(o_ref.dtype)
        # Tiny per-tile partial stats; accumulated in plain JAX afterwards.
        # (Not accumulated in scratch across M because the M axis is megacore-
        # parallel on v7x and a cross-M scratch accumulator would be incorrect.)
        s_ref[0] = jnp.sum(acc, axis=1, keepdims=True)
        ss_ref[0] = jnp.sum(acc * acc, axis=1, keepdims=True)


def _mm_bias_kernel(w_ref, x_ref, b_ref, o_ref, acc_ref):
    """Final conv: K-tiled matmul + bias add, f32 output, no statistics."""
    k = pl.program_id(1)

    @pl.when(k == 0)
    def _():
        acc_ref[...] = jnp.zeros_like(acc_ref)

    acc_ref[...] += jnp.dot(w_ref[...], x_ref[...],
                            preferred_element_type=jnp.float32)

    @pl.when(k == pl.num_programs(1) - 1)
    def _():
        o_ref[...] = (acc_ref[...] + b_ref[...]).astype(o_ref.dtype)


def _bn_relu_kernel(x_ref, a_ref, b_ref, o_ref):
    # y = relu(x * scale + shift), bf16 in/out, f32 math.
    y = x_ref[...].astype(jnp.float32) * a_ref[...] + b_ref[...]
    o_ref[...] = jnp.maximum(y, 0.0).astype(o_ref.dtype)


def _bn_res_kernel(x_ref, a_ref, b_ref, r_ref, o_ref):
    # y = x * scale + shift + residual (second conv of a ResnetBlock, no ReLU).
    y = (x_ref[...].astype(jnp.float32) * a_ref[...] + b_ref[...]
         + r_ref[...].astype(jnp.float32))
    o_ref[...] = y.astype(o_ref.dtype)


# ----------------------------- tiling helpers -----------------------------

def _m_tiling(M):
    """nt = cdiv(M, TM_MAX), tm = round_up(cdiv(M, nt), 128).  Caps zero padding
    and forces >=2 M tiles when M is large enough (v7x megacore)."""
    nt = max(1, _cdiv(M, TM_MAX))
    if nt == 1 and M > 256:
        nt = 2
    tm = _round_up(_cdiv(M, nt), 128)
    return nt, tm, nt * tm


def _ew_tile(Mp, tm):
    """Elementwise-apply tile: grow toward TM_EW, keep >=2 grid steps when possible."""
    nt = Mp // tm
    for g in range(nt, 0, -1):
        if nt % g or g * tm > TM_EW:
            continue
        if nt >= 2 and nt // g < 2 and g != 1:
            continue
        return g * tm
    return tm


def _pad_k(w2, patches):
    """Zero-pad the contraction axis so it splits into 128-aligned K tiles."""
    K = w2.shape[1]
    nt_k = max(1, _cdiv(K, TK_MAX))
    if nt_k == 1:
        return w2, patches, K, 1
    tk = _round_up(_cdiv(K, nt_k), 128)
    kp = nt_k * tk
    w2 = jnp.pad(w2, ((0, 0), (0, kp - K)))
    patches = jnp.pad(patches, ((0, kp - K), (0, 0)))
    return w2, patches, tk, nt_k


# ----------------------------- Pallas wrappers -----------------------------

def _conv_matmul(w2, patches, tm, bias=None):
    """Tiled MXU matmul over grid (M tiles, K tiles) with an f32 VMEM accumulator.

    bias is None  -> bf16 output + fused per-M-tile (sum, sumsq) BN statistics.
    bias is given -> f32 output with bias add (final conv), no statistics."""
    cout = w2.shape[0]
    w2, patches, tk, nt_k = _pad_k(w2, patches)
    mp = patches.shape[1]
    nt_m = mp // tm

    w_spec = pl.BlockSpec((cout, tk), lambda i, k: (0, k))
    x_spec = pl.BlockSpec((tk, tm), lambda i, k: (k, i))
    o_spec = pl.BlockSpec((cout, tm), lambda i, k: (0, i))
    st_spec = pl.BlockSpec((1, cout, 1), lambda i, k: (i, 0, 0))
    params = pltpu.CompilerParams(
        dimension_semantics=("parallel", "arbitrary"),
        vmem_limit_bytes=VMEM_LIMIT)
    scratch = [pltpu.VMEM((cout, tm), jnp.float32)]

    if bias is None:
        out, s, ss = pl.pallas_call(
            _mm_stats_kernel,
            out_shape=(jax.ShapeDtypeStruct((cout, mp), jnp.bfloat16),
                       jax.ShapeDtypeStruct((nt_m, cout, 1), jnp.float32),
                       jax.ShapeDtypeStruct((nt_m, cout, 1), jnp.float32)),
            grid=(nt_m, nt_k),
            in_specs=[w_spec, x_spec],
            out_specs=(o_spec, st_spec, st_spec),
            scratch_shapes=scratch,
            compiler_params=params,
        )(w2, patches)
        return out, (s, ss)

    out = pl.pallas_call(
        _mm_bias_kernel,
        out_shape=jax.ShapeDtypeStruct((cout, mp), jnp.float32),
        grid=(nt_m, nt_k),
        in_specs=[w_spec, x_spec, pl.BlockSpec((cout, 1), lambda i, k: (0, 0))],
        out_specs=o_spec,
        scratch_shapes=scratch,
        compiler_params=params,
    )(w2, patches, bias)
    return out, None


def _bn_apply(x, scale, shift, residual=None, tm=128):
    """x: (C, Mp) bf16; scale/shift: (C, 1) f32.  x*scale+shift then ReLU, or
    +residual (no ReLU).  Tiled & megacore-parallel over M, bf16 output."""
    C, mp = x.shape
    nt = mp // tm
    row = pl.BlockSpec((C, tm), lambda i: (0, i))
    vec = pl.BlockSpec((C, 1), lambda i: (0, 0))
    if residual is None:
        kernel, in_specs, args = _bn_relu_kernel, [row, vec, vec], (x, scale, shift)
    else:
        kernel, in_specs, args = (_bn_res_kernel, [row, vec, vec, row],
                                  (x, scale, shift, residual))
    return pl.pallas_call(
        kernel,
        out_shape=jax.ShapeDtypeStruct((C, mp), jnp.bfloat16),
        grid=(nt,),
        in_specs=in_specs,
        out_specs=row,
        compiler_params=pltpu.CompilerParams(
            dimension_semantics=("parallel",),
            vmem_limit_bytes=VMEM_LIMIT),
    )(*args)


def _bn_coeffs(stats_parts, gamma, beta, count):
    """Per-channel scale/shift from partial sums (training-mode batch stats).
    Padded M columns are exact zeros (bias-free convs), so they contribute 0."""
    tot = sum(jnp.sum(s, axis=0) for s, _ in stats_parts)    # (C, 1)
    tot2 = sum(jnp.sum(ss, axis=0) for _, ss in stats_parts)  # (C, 1)
    mean = tot / count
    var = jnp.maximum(tot2 / count - mean * mean, 0.0)        # biased variance
    scale = gamma * lax.rsqrt(var + BN_EPS)
    shift = beta - mean * scale
    return scale, shift


# ----------------------------- conv glue (plain-JAX) -----------------------------

def _im2col(xp, k, stride):
    """xp: (C, N, Dp, Hp, Wp) bf16, already padded -> ((C*k^3, M), out_dims)."""
    C, N, Dp, Hp, Wp = xp.shape
    Do = (Dp - k) // stride + 1
    Ho = (Hp - k) // stride + 1
    Wo = (Wp - k) // stride + 1
    # TODO(synk): fold the k^3 tap gather into the matmul's K grid axis (manual
    # DMA / element-offset index_map on the padded activation) so the k^3-
    # inflated patch slab never hits HBM; this materialization (now bf16, half
    # the previous traffic) is the remaining dominant HBM cost.
    taps = []
    for kd in range(k):
        for kh in range(k):
            for kw in range(k):
                taps.append(xp[:, :,
                               kd:kd + (Do - 1) * stride + 1:stride,
                               kh:kh + (Ho - 1) * stride + 1:stride,
                               kw:kw + (Wo - 1) * stride + 1:stride])
    p = jnp.stack(taps, axis=1)                      # (C, k^3, N, Do, Ho, Wo)
    return p.reshape(C * k ** 3, N * Do * Ho * Wo), (N, Do, Ho, Wo)


def _conv3d(x, w, bias=None, stride=1, pad=0, pad_mode="zero"):
    """x: (Cin, N, D, H, W); w: PyTorch Conv3d layout (Cout, Cin, k, k, k)."""
    cout, cin, k = w.shape[0], w.shape[1], w.shape[2]
    x = x.astype(jnp.bfloat16)
    if pad > 0:
        mode = "edge" if pad_mode == "replicate" else "constant"
        x = jnp.pad(x, ((0, 0), (0, 0), (pad, pad), (pad, pad), (pad, pad)), mode=mode)
    patches, out_dims = _im2col(x, k, stride)
    M = patches.shape[1]
    _, tm, mp = _m_tiling(M)
    patches = jnp.pad(patches, ((0, 0), (0, mp - M)))
    w2 = w.reshape(cout, cin * k ** 3).astype(jnp.bfloat16)
    out, stats = _conv_matmul(w2, patches, tm, bias=bias)
    return out, stats, out_dims, M, tm


def _conv_bn_relu(x, w, gamma, beta, stride, pad, pad_mode):
    cout = w.shape[0]
    out, stats, (N, Do, Ho, Wo), M, tm = _conv3d(x, w, None, stride, pad, pad_mode)
    scale, shift = _bn_coeffs([stats], gamma, beta, M)
    y = _bn_apply(out, scale, shift, tm=_ew_tile(out.shape[1], tm))
    return y[:, :M].reshape(cout, N, Do, Ho, Wo)


def _resnet_block(h, p):
    """ResnetBlock: conv+BN+ReLU, conv+BN, + skip (padding_type='replicate')."""
    C, N, D, H, W = h.shape
    M = N * D * H * W
    y = _conv_bn_relu(h, p["w1"], p["bn1"]["g"], p["bn1"]["b"], 1, 1, "replicate")
    out, stats, _, M2, tm = _conv3d(y, p["w2"], None, 1, 1, "replicate")
    scale, shift = _bn_coeffs([stats], p["bn2"]["g"], p["bn2"]["b"], M2)
    res = jnp.pad(h.reshape(C, M).astype(jnp.bfloat16),
                  ((0, 0), (0, out.shape[1] - M)))
    z = _bn_apply(out, scale, shift, residual=res, tm=_ew_tile(out.shape[1], tm))
    return z[:, :M].reshape(C, N, D, H, W)


# (kernel index, input offset) per output parity; derived from
# p = 2*i - 1 + k  =>  even p uses tap k=1 (i=j), odd p uses k=0 (i=j+1), k=2 (i=j)
_PHASE_TAPS = ([(1, 0)], [(0, 1), (2, 0)])


def _conv_transpose_bn_relu(x, w, gamma, beta):
    """ConvTranspose3d(k=3, stride=2, padding=1, output_padding=1, bias=False)
    + BN + ReLU, decomposed into 8 sub-pixel phases.  BN stats aggregated across
    phases, BN+ReLU applied per contiguous (lane-dense) phase slab, and the
    2x2x2 interleave done with one stack+transpose+reshape (no zero-fill, no
    strided scatters, no extra full-size BN pass).
    x: (Cin, N, D, H, W); w: PyTorch layout (Cin, Cout, 3, 3, 3)."""
    cin, N, D, H, W = x.shape
    cout = w.shape[1]
    x = x.astype(jnp.bfloat16)
    xe = jnp.pad(x, ((0, 0), (0, 0), (0, 1), (0, 1), (0, 1)))  # zero for the +1 offsets
    M_in = N * D * H * W
    _, tm, mp = _m_tiling(M_in)

    phase_out, stats = [], []
    for pd in (0, 1):
        for ph in (0, 1):
            for pw in (0, 1):
                td, th, tw = _PHASE_TAPS[pd], _PHASE_TAPS[ph], _PHASE_TAPS[pw]
                slabs = []
                for _, od in td:
                    for _, oh in th:
                        for _, ow in tw:
                            slabs.append(xe[:, :, od:od + D, oh:oh + H, ow:ow + W])
                pat = jnp.stack(slabs, axis=1).reshape(cin * len(slabs), M_in)
                pat = jnp.pad(pat, ((0, 0), (0, mp - M_in)))
                wsel = w[:, :, [t[0] for t in td]]
                wsel = wsel[:, :, :, [t[0] for t in th]]
                wsel = wsel[:, :, :, :, [t[0] for t in tw]]
                w2 = jnp.transpose(wsel, (1, 0, 2, 3, 4)).reshape(cout, -1)
                o_ph, st = _conv_matmul(w2.astype(jnp.bfloat16), pat, tm)
                phase_out.append(o_ph)
                stats.append(st)

    # BN statistics over the full upsampled output = sum of the 8 phase partials.
    scale, shift = _bn_coeffs(stats, gamma, beta, 8 * M_in)
    te = _ew_tile(mp, tm)
    ys = [_bn_apply(o, scale, shift, tm=te)[:, :M_in].reshape(cout, N, D, H, W)
          for o in phase_out]
    stk = jnp.stack(ys, axis=0).reshape(2, 2, 2, cout, N, D, H, W)
    out = jnp.transpose(stk, (3, 4, 5, 0, 6, 1, 7, 2))
    return out.reshape(cout, N, 2 * D, 2 * H, 2 * W)


# ----------------------------- parameters -----------------------------

def _init_params(key, input_nc, output_nc, ngf, n_blocks):
    state = {"key": key}

    def nxt():
        state["key"], sub = jax.random.split(state["key"])
        return sub

    def w(shape):
        return 0.05 * jax.random.normal(nxt(), shape, jnp.float32)

    def bn(c):
        return {"g": 1.0 + 0.05 * jax.random.normal(nxt(), (c, 1), jnp.float32),
                "b": 0.05 * jax.random.normal(nxt(), (c, 1), jnp.float32)}

    # norm_layer == BatchNorm3d -> use_bias False everywhere except the final conv.
    p = {
        "c0_w": w((ngf, input_nc, 7, 7, 7)), "bn0": bn(ngf),
        "d1_w": w((2 * ngf, ngf, 3, 3, 3)), "bn_d1": bn(2 * ngf),
        "d2_w": w((4 * ngf, 2 * ngf, 3, 3, 3)), "bn_d2": bn(4 * ngf),
        "blocks": [],
        "u1_w": w((4 * ngf, 2 * ngf, 3, 3, 3)), "bn_u1": bn(2 * ngf),  # ConvTranspose (Cin,Cout,k,k,k)
        "u2_w": w((2 * ngf, ngf, 3, 3, 3)), "bn_u2": bn(ngf),
        "cf_w": w((output_nc, ngf, 7, 7, 7)),
        "cf_b": 0.05 * jax.random.normal(nxt(), (output_nc, 1), jnp.float32),
    }
    d = 4 * ngf
    for _ in range(n_blocks):
        p["blocks"].append({"w1": w((d, d, 3, 3, 3)), "bn1": bn(d),
                            "w2": w((d, d, 3, 3, 3)), "bn2": bn(d)})
    return p


# ----------------------------- forward -----------------------------

def resnet_generator_forward(params, x_ncdhw):
    """x: (N, input_nc, D, H, W) -> (N, output_nc, D, H, W)."""
    x = jnp.transpose(x_ncdhw, (1, 0, 2, 3, 4)).astype(jnp.bfloat16)  # (C, N, D, H, W)

    # ReplicationPad3d(3) + Conv3d(input_nc, ngf, 7, bias=False) + BN + ReLU
    h = _conv_bn_relu(x, params["c0_w"], params["bn0"]["g"], params["bn0"]["b"],
                      stride=1, pad=3, pad_mode="replicate")
    # two stride-2 downsampling convs (zero pad 1)
    h = _conv_bn_relu(h, params["d1_w"], params["bn_d1"]["g"], params["bn_d1"]["b"],
                      stride=2, pad=1, pad_mode="zero")
    h = _conv_bn_relu(h, params["d2_w"], params["bn_d2"]["g"], params["bn_d2"]["b"],
                      stride=2, pad=1, pad_mode="zero")
    # ResnetBlocks (padding_type='replicate', use_dropout=False)
    for blk in params["blocks"]:
        h = _resnet_block(h, blk)
    # two ConvTranspose3d upsampling layers
    h = _conv_transpose_bn_relu(h, params["u1_w"], params["bn_u1"]["g"], params["bn_u1"]["b"])
    h = _conv_transpose_bn_relu(h, params["u2_w"], params["bn_u2"]["g"], params["bn_u2"]["b"])
    # ReplicationPad3d(3) + Conv3d(ngf, output_nc, 7) with bias (no BN / activation)
    out, _, (N, Do, Ho, Wo), M, _ = _conv3d(h, params["cf_w"], params["cf_b"],
                                            stride=1, pad=3, pad_mode="replicate")
    out = out[:, :M].reshape(params["cf_w"].shape[0], N, Do, Ho, Wo)
    return jnp.transpose(out, (1, 0, 2, 3, 4)).astype(jnp.float32)  # back to NCDHW


# ----------------------------- main -----------------------------

if __name__ == "__main__":
    INPUT_NC, OUTPUT_NC, NGF, N_BLOCKS = 2, 2, 8, 2
    N, D, H, W = 1, 8, 8, 8

    key = jax.random.PRNGKey(0)
    pkey, xkey = jax.random.split(key)
    params = _init_params(pkey, INPUT_NC, OUTPUT_NC, NGF, N_BLOCKS)
    x = jax.random.normal(xkey, (N, INPUT_NC, D, H, W), jnp.float32)

    fwd = jax.jit(resnet_generator_forward)
    out = fwd(params, x)
    jax.block_until_ready(out)
    assert out.shape == (N, OUTPUT_NC, D, H, W), out.shape
    assert bool(jnp.all(jnp.isfinite(out)))
    print("KERNEL_OK")
</pallas_src>

<mosaic_0001>
module attributes {stable_mosaic.version = 11 : i64} {
  func.func @_mm_stats_kernel(%arg0: i32, %arg1: i32, %arg2: memref<8x686xbf16, #tpu.memory_space<vmem>>, %arg3: memref<686x256xbf16, #tpu.memory_space<vmem>>, %arg4: memref<8x256xbf16, #tpu.memory_space<vmem>>, %arg5: memref<1x8x1xf32, #tpu.memory_space<vmem>>, %arg6: memref<1x8x1xf32, #tpu.memory_space<vmem>>, %arg7: memref<8x256xf32, #tpu.memory_space<vmem>>) attributes {dimension_semantics = [#tpu.dimension_semantics<parallel>, #tpu.dimension_semantics<arbitrary>], iteration_bounds = array<i64: 2, 1>, scalar_prefetch = 0 : i64, scratch_operands = 1 : i64, tpu.core_type = #tpu.core_type<tc>, window_params = [{transform_indices = @transform_0, window_bounds = array<i64: 8, 686>}, {transform_indices = @transform_1, window_bounds = array<i64: 686, 256>}, {transform_indices = @transform_2, window_bounds = array<i64: 8, 256>}, {transform_indices = @transform_3, window_bounds = array<i64: 1, 8, 1>}, {transform_indices = @transform_4, window_bounds = array<i64: 1, 8, 1>}]} {
    %c0_i32 = arith.constant 0 : i32
    %0 = arith.cmpi eq, %arg1, %c0_i32 : i32
    %1 = arith.extui %0 : i1 to i32
    %c0_i32_0 = arith.constant 0 : i32
    %2 = arith.cmpi ne, %1, %c0_i32_0 : i32
    scf.if %2 {
      %cst_10 = arith.constant 0.000000e+00 : f32
      %12 = vector.broadcast %cst_10 : f32 to vector<8x256xf32>
      %c0_11 = arith.constant 0 : index
      %c0_12 = arith.constant 0 : index
      %13 = vector.load %arg7[%c0_11, %c0_12] : memref<8x256xf32, #tpu.memory_space<vmem>>, vector<8x256xf32>
      tpu.vector_store %arg7[%c0_11, %c0_12], %12 {strides = array<i32>} : memref<8x256xf32, #tpu.memory_space<vmem>>, vector<8x256xf32>,
    } else {
    }
    %c0 = arith.constant 0 : index
    %c0_1 = arith.constant 0 : index
    %3 = vector.load %arg7[%c0, %c0_1] : memref<8x256xf32, #tpu.memory_space<vmem>>, vector<8x256xf32>
    %c0_2 = arith.constant 0 : index
    %c0_3 = arith.constant 0 : index
    %4 = vector.load %arg2[%c0_2, %c0_3] : memref<8x686xbf16, #tpu.memory_space<vmem>>, vector<8x686xbf16>
    %c0_4 = arith.constant 0 : index
    %c0_5 = arith.constant 0 : index
    %5 = vector.load %arg3[%c0_4, %c0_5] : memref<686x256xbf16, #tpu.memory_space<vmem>>, vector<686x256xbf16>
    %cst = arith.constant dense<0.000000e+00> : vector<8x256xf32>
    %6 = tpu.matmul %4, %5, %cst {dimension_numbers = #tpu.dot_dimension_numbers<[1], [0], [0], [1], [0, 0, 1, 1], [], []>} : vector<8x686xbf16>, vector<686x256xbf16>, vector<8x256xf32> -> vector<8x256xf32>
    %7 = arith.addf %3, %6 : vector<8x256xf32>
    %c0_6 = arith.constant 0 : index
    %c0_7 = arith.constant 0 : index
    %8 = vector.load %arg7[%c0_6, %c0_7] : memref<8x256xf32, #tpu.memory_space<vmem>>, vector<8x256xf32>
    tpu.vector_store %arg7[%c0_6, %c0_7], %7 {strides = array<i32>} : memref<8x256xf32, #tpu.memory_space<vmem>>, vector<8x256xf32>,
    %c0_i32_8 = arith.constant 0 : i32
    %9 = arith.cmpi eq, %arg1, %c0_i32_8 : i32
    %10 = arith.extui %9 : i1 to i32
    %c0_i32_9 = arith.constant 0 : i32
    %11 = arith.cmpi ne, %10, %c0_i32_9 : i32
    scf.if %11 {
      %c0_10 = arith.constant 0 : index
      %c0_11 = arith.constant 0 : index
      %12 = vector.load %arg7[%c0_10, %c0_11] : memref<8x256xf32, #tpu.memory_space<vmem>>, vector<8x256xf32>
      %13 = arith.truncf %12 : vector<8x256xf32> to vector<8x256xbf16>
      %c0_12 = arith.constant 0 : index
      %c0_13 = arith.constant 0 : index
      %14 = vector.load %arg4[%c0_12, %c0_13] : memref<8x256xbf16, #tpu.memory_space<vmem>>, vector<8x256xbf16>
      tpu.vector_store %arg4[%c0_12, %c0_13], %13 {strides = array<i32>} : memref<8x256xbf16, #tpu.memory_space<vmem>>, vector<8x256xbf16>,
      %cst_14 = arith.constant dense<0.000000e+00> : vector<8xf32>
      %15 = vector.multi_reduction <add>, %12, %cst_14 [1] : vector<8x256xf32> to vector<8xf32>
      %16 = vector.shape_cast %15 : vector<8xf32> to vector<8x1xf32>
      %c0_15 = arith.constant 0 : index
      %c0_16 = arith.constant 0 : index
      %c0_17 = arith.constant 0 : index
      %17 = vector.load %arg5[%c0_15, %c0_16, %c0_17] : memref<1x8x1xf32, #tpu.memory_space<vmem>>, vector<1x8x1xf32>
      %18 = vector.shape_cast %17 : vector<1x8x1xf32> to vector<8x1xf32>
      %19 = vector.shape_cast %16 : vector<8x1xf32> to vector<1x8x1xf32>
      tpu.vector_store %arg5[%c0_15, %c0_16, %c0_17], %19 {strides = array<i32>} : memref<1x8x1xf32, #tpu.memory_space<vmem>>, vector<1x8x1xf32>,
      %20 = arith.mulf %12, %12 : vector<8x256xf32>
      %cst_18 = arith.constant dense<0.000000e+00> : vector<8xf32>
      %21 = vector.multi_reduction <add>, %20, %cst_18 [1] : vector<8x256xf32> to vector<8xf32>
      %22 = vector.shape_cast %21 : vector<8xf32> to vector<8x1xf32>
      %c0_19 = arith.constant 0 : index
      %c0_20 = arith.constant 0 : index
      %c0_21 = arith.constant 0 : index
      %23 = vector.load %arg6[%c0_19, %c0_20, %c0_21] : memref<1x8x1xf32, #tpu.memory_space<vmem>>, vector<1x8x1xf32>
      %24 = vector.shape_cast %23 : vector<1x8x1xf32> to vector<8x1xf32>
      %25 = vector.shape_cast %22 : vector<8x1xf32> to vector<1x8x1xf32>
      tpu.vector_store %arg6[%c0_19, %c0_20, %c0_21], %25 {strides = array<i32>} : memref<1x8x1xf32, #tpu.memory_space<vmem>>, vector<1x8x1xf32>,
    } else {
    }
    return
  }
  func.func @transform_0(%arg0: i32, %arg1: i32) -> (i32, i32) {
    %c0_i32 = arith.constant 0 : i32
    %c0_i32_0 = arith.constant 0 : i32
    return %c0_i32, %arg1 : i32, i32
  }
  func.func @transform_1(%arg0: i32, %arg1: i32) -> (i32, i32) {
    %c0_i32 = arith.constant 0 : i32
    return %arg1, %arg0 : i32, i32
  }
  func.func @transform_2(%arg0: i32, %arg1: i32) -> (i32, i32) {
    %c0_i32 = arith.constant 0 : i32
    %c0_i32_0 = arith.constant 0 : i32
    return %c0_i32, %arg0 : i32, i32
  }
  func.func @transform_3(%arg0: i32, %arg1: i32) -> (i32, i32, i32) {
    %c0_i32 = arith.constant 0 : i32
    %c0_i32_0 = arith.constant 0 : i32
    %c0_i32_1 = arith.constant 0 : i32
    return %arg0, %c0_i32, %c0_i32_0 : i32, i32, i32
  }
  func.func @transform_4(%arg0: i32, %arg1: i32) -> (i32, i32, i32) {
    %c0_i32 = arith.constant 0 : i32
    %c0_i32_0 = arith.constant 0 : i32
    %c0_i32_1 = arith.constant 0 : i32
    return %arg0, %c0_i32, %c0_i32_0 : i32, i32, i32
  }
}

module attributes {stable_mosaic.version = 11 : i64} {
  func.func @_bn_relu_kernel(%arg0: i32, %arg1: memref<8x256xbf16, #tpu.memory_space<vmem>>, %arg2: memref<8x1xf32, #tpu.memory_space<vmem>>, %arg3: memref<8x1xf32, #tpu.memory_space<vmem>>, %arg4: memref<8x256xbf16, #tpu.memory_space<vmem>>) attributes {dimension_semantics = [#tpu.dimension_semantics<parallel>], iteration_bounds = array<i64: 2>, scalar_prefetch = 0 : i64, scratch_operands = 0 : i64, tpu.core_type = #tpu.core_type<tc>, window_params = [{transform_indices = @transform_0, window_bounds = array<i64: 8, 256>}, {pipeline_mode = #tpu.pipeline_mode<synchronous>, transform_indices = @transform_1, window_bounds = array<i64: 8, 1>}, {pipeline_mode = #tpu.pipeline_mode<synchronous>, transform_indices = @transform_2, window_bounds = array<i64: 8, 1>}, {transform_indices = @transform_3, window_bounds = array<i64: 8, 256>}]} {
    %c0 = arith.constant 0 : index
    %c0_0 = arith.constant 0 : index
    %0 = vector.load %arg1[%c0, %c0_0] : memref<8x256xbf16, #tpu.memory_space<vmem>>, vector<8x256xbf16>
    %1 = arith.extf %0 : vector<8x256xbf16> to vector<8x256xf32>
    %c0_1 = arith.constant 0 : index
    %c0_2 = arith.constant 0 : index
    %2 = vector.load %arg2[%c0_1, %c0_2] : memref<8x1xf32, #tpu.memory_space<vmem>>, vector<8x1xf32>
    %3 = vector.broadcast %2 : vector<8x1xf32> to vector<8x256xf32>
    %4 = arith.mulf %1, %3 : vector<8x256xf32>
    %c0_3 = arith.constant 0 : index
    %c0_4 = arith.constant 0 : index
    %5 = vector.load %arg3[%c0_3, %c0_4] : memref<8x1xf32, #tpu.memory_space<vmem>>, vector<8x1xf32>
    %6 = vector.broadcast %5 : vector<8x1xf32> to vector<8x256xf32>
    %7 = arith.addf %4, %6 : vector<8x256xf32>
    %cst = arith.constant 0.000000e+00 : f32
    %8 = vector.broadcast %cst : f32 to vector<8x256xf32>
    %9 = arith.maximumf %7, %8 : vector<8x256xf32>
    %10 = arith.truncf %9 : vector<8x256xf32> to vector<8x256xbf16>
    %c0_5 = arith.constant 0 : index
    %c0_6 = arith.constant 0 : index
    %11 = vector.load %arg4[%c0_5, %c0_6] : memref<8x256xbf16, #tpu.memory_space<vmem>>, vector<8x256xbf16>
    tpu.vector_store %arg4[%c0_5, %c0_6], %10 {strides = array<i32>} : memref<8x256xbf16, #tpu.memory_space<vmem>>, vector<8x256xbf16>,
    return
  }
  func.func @transform_0(%arg0: i32) -> (i32, i32) {
    %c0_i32 = arith.constant 0 : i32
    %c0_i32_0 = arith.constant 0 : i32
    return %c0_i32, %arg0 : i32, i32
  }
  func.func @transform_1(%arg0: i32) -> (i32, i32) {
    %c0_i32 = arith.constant 0 : i32
    %c0_i32_0 = arith.constant 0 : i32
    %c0_i32_1 = arith.constant 0 : i32
    return %c0_i32, %c0_i32_0 : i32, i32
  }
  func.func @transform_2(%arg0: i32) -> (i32, i32) {
    %c0_i32 = arith.constant 0 : i32
    %c0_i32_0 = arith.constant 0 : i32
    %c0_i32_1 = arith.constant 0 : i32
    return %c0_i32, %c0_i32_0 : i32, i32
  }
  func.func @transform_3(%arg0: i32) -> (i32, i32) {
    %c0_i32 = arith.constant 0 : i32
    %c0_i32_0 = arith.constant 0 : i32
    return %c0_i32, %arg0 : i32, i32
  }
}

module attributes {stable_mosaic.version = 11 : i64} {
  func.func @_bn_relu_kernel(%arg0: i32, %arg1: memref<16x128xbf16, #tpu.memory_space<vmem>>, %arg2: memref<16x1xf32, #tpu.memory_space<vmem>>, %arg3: memref<16x1xf32, #tpu.memory_space<vmem>>, %arg4: memref<16x128xbf16, #tpu.memory_space<vmem>>) attributes {dimension_semantics = [#tpu.dimension_semantics<parallel>], iteration_bounds = array<i64: 1>, scalar_prefetch = 0 : i64, scratch_operands = 0 : i64, tpu.core_type = #tpu.core_type<tc>, window_params = [{transform_indices = @transform_0, window_bounds = array<i64: 16, 128>}, {pipeline_mode = #tpu.pipeline_mode<synchronous>, transform_indices = @transform_1, window_bounds = array<i64: 16, 1>}, {pipeline_mode = #tpu.pipeline_mode<synchronous>, transform_indices = @transform_2, window_bounds = array<i64: 16, 1>}, {transform_indices = @transform_3, window_bounds = array<i64: 16, 128>}]} {
    %c0 = arith.constant 0 : index
    %c0_0 = arith.constant 0 : index
    %0 = vector.load %arg1[%c0, %c0_0] : memref<16x128xbf16, #tpu.memory_space<vmem>>, vector<16x128xbf16>
    %1 = arith.extf %0 : vector<16x128xbf16> to vector<16x128xf32>
    %c0_1 = arith.constant 0 : index
    %c0_2 = arith.constant 0 : index
    %2 = vector.load %arg2[%c0_1, %c0_2] : memref<16x1xf32, #tpu.memory_space<vmem>>, vector<16x1xf32>
    %3 = vector.broadcast %2 : vector<16x1xf32> to vector<16x128xf32>
    %4 = arith.mulf %1, %3 : vector<16x128xf32>
    %c0_3 = arith.constant 0 : index
    %c0_4 = arith.constant 0 : index
    %5 = vector.load %arg3[%c0_3, %c0_4] : memref<16x1xf32, #tpu.memory_space<vmem>>, vector<16x1xf32>
    %6 = vector.broadcast %5 : vector<16x1xf32> to vector<16x128xf32>
    %7 = arith.addf %4, %6 : vector<16x128xf32>
    %cst = arith.constant 0.000000e+00 : f32
    %8 = vector.broadcast %cst : f32 to vector<16x128xf32>
    %9 = arith.maximumf %7, %8 : vector<16x128xf32>
    %10 = arith.truncf %9 : vector<16x128xf32> to vector<16x128xbf16>
    %c0_5 = arith.constant 0 : index
    %c0_6 = arith.constant 0 : index
    %11 = vector.load %arg4[%c0_5, %c0_6] : memref<16x128xbf16, #tpu.memory_space<vmem>>, vector<16x128xbf16>
    tpu.vector_store %arg4[%c0_5, %c0_6], %10 {strides = array<i32>} : memref<16x128xbf16, #tpu.memory_space<vmem>>, vector<16x128xbf16>,
    return
  }
  func.func @transform_0(%arg0: i32) -> (i32, i32) {
    %c0_i32 = arith.constant 0 : i32
    %c0_i32_0 = arith.constant 0 : i32
    return %c0_i32, %arg0 : i32, i32
  }
  func.func @transform_1(%arg0: i32) -> (i32, i32) {
    %c0_i32 = arith.constant 0 : i32
    %c0_i32_0 = arith.constant 0 : i32
    %c0_i32_1 = arith.constant 0 : i32
    return %c0_i32, %c0_i32_0 : i32, i32
  }
  func.func @transform_2(%arg0: i32) -> (i32, i32) {
    %c0_i32 = arith.constant 0 : i32
    %c0_i32_0 = arith.constant 0 : i32
    %c0_i32_1 = arith.constant 0 : i32
    return %c0_i32, %c0_i32_0 : i32, i32
  }
  func.func @transform_3(%arg0: i32) -> (i32, i32) {
    %c0_i32 = arith.constant 0 : i32
    %c0_i32_0 = arith.constant 0 : i32
    return %c0_i32, %arg0 : i32, i32
  }
}

module attributes {stable_mosaic.version = 11 : i64} {
  func.func @_mm_stats_kernel(%arg0: i32, %arg1: i32, %arg2: memref<16x216xbf16, #tpu.memory_space<vmem>>, %arg3: memref<216x128xbf16, #tpu.memory_space<vmem>>, %arg4: memref<16x128xbf16, #tpu.memory_space<vmem>>, %arg5: memref<1x16x1xf32, #tpu.memory_space<vmem>>, %arg6: memref<1x16x1xf32, #tpu.memory_space<vmem>>, %arg7: memref<16x128xf32, #tpu.memory_space<vmem>>) attributes {dimension_semantics = [#tpu.dimension_semantics<parallel>, #tpu.dimension_semantics<arbitrary>], iteration_bounds = array<i64: 1, 1>, scalar_prefetch = 0 : i64, scratch_operands = 1 : i64, tpu.core_type = #tpu.core_type<tc>, window_params = [{transform_indices = @transform_0, window_bounds = array<i64: 16, 216>}, {transform_indices = @transform_1, window_bounds = array<i64: 216, 128>}, {transform_indices = @transform_2, window_bounds = array<i64: 16, 128>}, {transform_indices = @transform_3, window_bounds = array<i64: 1, 16, 1>}, {transform_indices = @transform_4, window_bounds = array<i64: 1, 16, 1>}]} {
    %c0_i32 = arith.constant 0 : i32
    %0 = arith.cmpi eq, %arg1, %c0_i32 : i32
    %1 = arith.extui %0 : i1 to i32
    %c0_i32_0 = arith.constant 0 : i32
    %2 = arith.cmpi ne, %1, %c0_i32_0 : i32
    scf.if %2 {
      %cst_10 = arith.constant 0.000000e+00 : f32
      %12 = vector.broadcast %cst_10 : f32 to vector<16x128xf32>
      %c0_11 = arith.constant 0 : index
      %c0_12 = arith.constant 0 : index
      %13 = vector.load %arg7[%c0_11, %c0_12] : memref<16x128xf32, #tpu.memory_space<vmem>>, vector<16x128xf32>
      tpu.vector_store %arg7[%c0_11, %c0_12], %12 {strides = array<i32>} : memref<16x128xf32, #tpu.memory_space<vmem>>, vector<16x128xf32>,
    } else {
    }
    %c0 = arith.constant 0 : index
    %c0_1 = arith.constant 0 : index
    %3 = vector.load %arg7[%c0, %c0_1] : memref<16x128xf32, #tpu.memory_space<vmem>>, vector<16x128xf32>
    %c0_2 = arith.constant 0 : index
    %c0_3 = arith.constant 0 : index
    %4 = vector.load %arg2[%c0_2, %c0_3] : memref<16x216xbf16, #tpu.memory_space<vmem>>, vector<16x216xbf16>
    %c0_4 = arith.constant 0 : index
    %c0_5 = arith.constant 0 : index
    %5 = vector.load %arg3[%c0_4, %c0_5] : memref<216x128xbf16, #tpu.memory_space<vmem>>, vector<216x128xbf16>
    %cst = arith.constant dense<0.000000e+00> : vector<16x128xf32>
    %6 = tpu.matmul %4, %5, %cst {dimension_numbers = #tpu.dot_dimension_numbers<[1], [0], [0], [1], [0, 0, 1, 1], [], []>} : vector<16x216xbf16>, vector<216x128xbf16>, vector<16x128xf32> -> vector<16x128xf32>
    %7 = arith.addf %3, %6 : vector<16x128xf32>
    %c0_6 = arith.constant 0 : index
    %c0_7 = arith.constant 0 : index
    %8 = vector.load %arg7[%c0_6, %c0_7] : memref<16x128xf32, #tpu.memory_space<vmem>>, vector<16x128xf32>
    tpu.vector_store %arg7[%c0_6, %c0_7], %7 {strides = array<i32>} : memref<16x128xf32, #tpu.memory_space<vmem>>, vector<16x128xf32>,
    %c0_i32_8 = arith.constant 0 : i32
    %9 = arith.cmpi eq, %arg1, %c0_i32_8 : i32
    %10 = arith.extui %9 : i1 to i32
    %c0_i32_9 = arith.constant 0 : i32
    %11 = arith.cmpi ne, %10, %c0_i32_9 : i32
    scf.if %11 {
      %c0_10 = arith.constant 0 : index
      %c0_11 = arith.constant 0 : index
      %12 = vector.load %arg7[%c0_10, %c0_11] : memref<16x128xf32, #tpu.memory_space<vmem>>, vector<16x128xf32>
      %13 = arith.truncf %12 : vector<16x128xf32> to vector<16x128xbf16>
      %c0_12 = arith.constant 0 : index
      %c0_13 = arith.constant 0 : index
      %14 = vector.load %arg4[%c0_12, %c0_13] : memref<16x128xbf16, #tpu.memory_space<vmem>>, vector<16x128xbf16>
      tpu.vector_store %arg4[%c0_12, %c0_13], %13 {strides = array<i32>} : memref<16x128xbf16, #tpu.memory_space<vmem>>, vector<16x128xbf16>,
      %cst_14 = arith.constant dense<0.000000e+00> : vector<16xf32>
      %15 = vector.multi_reduction <add>, %12, %cst_14 [1] : vector<16x128xf32> to vector<16xf32>
      %16 = vector.shape_cast %15 : vector<16xf32> to vector<16x1xf32>
      %c0_15 = arith.constant 0 : index
      %c0_16 = arith.constant 0 : index
      %c0_17 = arith.constant 0 : index
      %17 = vector.load %arg5[%c0_15, %c0_16, %c0_17] : memref<1x16x1xf32, #tpu.memory_space<vmem>>, vector<1x16x1xf32>
      %18 = vector.shape_cast %17 : vector<1x16x1xf32> to vector<16x1xf32>
      %19 = vector.shape_cast %16 : vector<16x1xf32> to vector<1x16x1xf32>
      tpu.vector_store %arg5[%c0_15, %c0_16, %c0_17], %19 {strides = array<i32>} : memref<1x16x1xf32, #tpu.memory_space<vmem>>, vector<1x16x1xf32>,
      %20 = arith.mulf %12, %12 : vector<16x128xf32>
      %cst_18 = arith.constant dense<0.000000e+00> : vector<16xf32>
      %21 = vector.multi_reduction <add>, %20, %cst_18 [1] : vector<16x128xf32> to vector<16xf32>
      %22 = vector.shape_cast %21 : vector<16xf32> to vector<16x1xf32>
      %c0_19 = arith.constant 0 : index
      %c0_20 = arith.constant 0 : index
      %c0_21 = arith.constant 0 : index
      %23 = vector.load %arg6[%c0_19, %c0_20, %c0_21] : memref<1x16x1xf32, #tpu.memory_space<vmem>>, vector<1x16x1xf32>
      %24 = vector.shape_cast %23 : vector<1x16x1xf32> to vector<16x1xf32>
      %25 = vector.shape_cast %22 : vector<16x1xf32> to vector<1x16x1xf32>
      tpu.vector_store %arg6[%c0_19, %c0_20, %c0_21], %25 {strides = array<i32>} : memref<1x16x1xf32, #tpu.memory_space<vmem>>, vector<1x16x1xf32>,
    } else {
    }
    return
  }
  func.func @transform_0(%arg0: i32, %arg1: i32) -> (i32, i32) {
    %c0_i32 = arith.constant 0 : i32
    %c0_i32_0 = arith.constant 0 : i32
    return %c0_i32, %arg1 : i32, i32
  }
  func.func @transform_1(%arg0: i32, %arg1: i32) -> (i32, i32) {
    %c0_i32 = arith.constant 0 : i32
    return %arg1, %arg0 : i32, i32
  }
  func.func @transform_2(%arg0: i32, %arg1: i32) -> (i32, i32) {
    %c0_i32 = arith.constant 0 : i32
    %c0_i32_0 = arith.constant 0 : i32
    return %c0_i32, %arg0 : i32, i32
  }
  func.func @transform_3(%arg0: i32, %arg1: i32) -> (i32, i32, i32) {
    %c0_i32 = arith.constant 0 : i32
    %c0_i32_0 = arith.constant 0 : i32
    %c0_i32_1 = arith.constant 0 : i32
    return %arg0, %c0_i32, %c0_i32_0 : i32, i32, i32
  }
  func.func @transform_4(%arg0: i32, %arg1: i32) -> (i32, i32, i32) {
    %c0_i32 = arith.constant 0 : i32
    %c0_i32_0 = arith.constant 0 : i32
    %c0_i32_1 = arith.constant 0 : i32
    return %arg0, %c0_i32, %c0_i32_0 : i32, i32, i32
  }
}

module attributes {stable_mosaic.version = 11 : i64} {
  func.func @_mm_stats_kernel(%arg0: i32, %arg1: i32, %arg2: memref<32x432xbf16, #tpu.memory_space<vmem>>, %arg3: memref<432x128xbf16, #tpu.memory_space<vmem>>, %arg4: memref<32x128xbf16, #tpu.memory_space<vmem>>, %arg5: memref<1x32x1xf32, #tpu.memory_space<vmem>>, %arg6: memref<1x32x1xf32, #tpu.memory_space<vmem>>, %arg7: memref<32x128xf32, #tpu.memory_space<vmem>>) attributes {dimension_semantics = [#tpu.dimension_semantics<parallel>, #tpu.dimension_semantics<arbitrary>], iteration_bounds = array<i64: 1, 1>, scalar_prefetch = 0 : i64, scratch_operands = 1 : i64, tpu.core_type = #tpu.core_type<tc>, window_params = [{transform_indices = @transform_0, window_bounds = array<i64: 32, 432>}, {transform_indices = @transform_1, window_bounds = array<i64: 432, 128>}, {transform_indices = @transform_2, window_bounds = array<i64: 32, 128>}, {transform_indices = @transform_3, window_bounds = array<i64: 1, 32, 1>}, {transform_indices = @transform_4, window_bounds = array<i64: 1, 32, 1>}]} {
    %c0_i32 = arith.constant 0 : i32
    %0 = arith.cmpi eq, %arg1, %c0_i32 : i32
    %1 = arith.extui %0 : i1 to i32
    %c0_i32_0 = arith.constant 0 : i32
    %2 = arith.cmpi ne, %1, %c0_i32_0 : i32
    scf.if %2 {
      %cst_10 = arith.constant 0.000000e+00 : f32
      %12 = vector.broadcast %cst_10 : f32 to vector<32x128xf32>
      %c0_11 = arith.constant 0 : index
      %c0_12 = arith.constant 0 : index
      %13 = vector.load %arg7[%c0_11, %c0_12] : memref<32x128xf32, #tpu.memory_space<vmem>>, vector<32x128xf32>
      tpu.vector_store %arg7[%c0_11, %c0_12], %12 {strides = array<i32>} : memref<32x128xf32, #tpu.memory_space<vmem>>, vector<32x128xf32>,
    } else {
    }
    %c0 = arith.constant 0 : index
    %c0_1 = arith.constant 0 : index
    %3 = vector.load %arg7[%c0, %c0_1] : memref<32x128xf32, #tpu.memory_space<vmem>>, vector<32x128xf32>
    %c0_2 = arith.constant 0 : index
    %c0_3 = arith.constant 0 : index
    %4 = vector.load %arg2[%c0_2, %c0_3] : memref<32x432xbf16, #tpu.memory_space<vmem>>, vector<32x432xbf16>
    %c0_4 = arith.constant 0 : index
    %c0_5 = arith.constant 0 : index
    %5 = vector.load %arg3[%c0_4, %c0_5] : memref<432x128xbf16, #tpu.memory_space<vmem>>, vector<432x128xbf16>
    %cst = arith.constant dense<0.000000e+00> : vector<32x128xf32>
    %6 = tpu.matmul %4, %5, %cst {dimension_numbers = #tpu.dot_dimension_numbers<[1], [0], [0], [1], [0, 0, 1, 1], [], []>} : vector<32x432xbf16>, vector<432x128xbf16>, vector<32x128xf32> -> vector<32x128xf32>
    %7 = arith.addf %3, %6 : vector<32x128xf32>
    %c0_6 = arith.constant 0 : index
    %c0_7 = arith.constant 0 : index
    %8 = vector.load %arg7[%c0_6, %c0_7] : memref<32x128xf32, #tpu.memory_space<vmem>>, vector<32x128xf32>
    tpu.vector_store %arg7[%c0_6, %c0_7], %7 {strides = array<i32>} : memref<32x128xf32, #tpu.memory_space<vmem>>, vector<32x128xf32>,
    %c0_i32_8 = arith.constant 0 : i32
    %9 = arith.cmpi eq, %arg1, %c0_i32_8 : i32
    %10 = arith.extui %9 : i1 to i32
    %c0_i32_9 = arith.constant 0 : i32
    %11 = arith.cmpi ne, %10, %c0_i32_9 : i32
    scf.if %11 {
      %c0_10 = arith.constant 0 : index
      %c0_11 = arith.constant 0 : index
      %12 = vector.load %arg7[%c0_10, %c0_11] : memref<32x128xf32, #tpu.memory_space<vmem>>, vector<32x128xf32>
      %13 = arith.truncf %12 : vector<32x128xf32> to vector<32x128xbf16>
      %c0_12 = arith.constant 0 : index
      %c0_13 = arith.constant 0 : index
      %14 = vector.load %arg4[%c0_12, %c0_13] : memref<32x128xbf16, #tpu.memory_space<vmem>>, vector<32x128xbf16>
      tpu.vector_store %arg4[%c0_12, %c0_13], %13 {strides = array<i32>} : memref<32x128xbf16, #tpu.memory_space<vmem>>, vector<32x128xbf16>,
      %cst_14 = arith.constant dense<0.000000e+00> : vector<32xf32>
      %15 = vector.multi_reduction <add>, %12, %cst_14 [1] : vector<32x128xf32> to vector<32xf32>
      %16 = vector.shape_cast %15 : vector<32xf32> to vector<32x1xf32>
      %c0_15 = arith.constant 0 : index
      %c0_16 = arith.constant 0 : index
      %c0_17 = arith.constant 0 : index
      %17 = vector.load %arg5[%c0_15, %c0_16, %c0_17] : memref<1x32x1xf32, #tpu.memory_space<vmem>>, vector<1x32x1xf32>
      %18 = vector.shape_cast %17 : vector<1x32x1xf32> to vector<32x1xf32>
      %19 = vector.shape_cast %16 : vector<32x1xf32> to vector<1x32x1xf32>
      tpu.vector_store %arg5[%c0_15, %c0_16, %c0_17], %19 {strides = array<i32>} : memref<1x32x1xf32, #tpu.memory_space<vmem>>, vector<1x32x1xf32>,
      %20 = arith.mulf %12, %12 : vector<32x128xf32>
      %cst_18 = arith.constant dense<0.000000e+00> : vector<32xf32>
      %21 = vector.multi_reduction <add>, %20, %cst_18 [1] : vector<32x128xf32> to vector<32xf32>
      %22 = vector.shape_cast %21 : vector<32xf32> to vector<32x1xf32>
      %c0_19 = arith.constant 0 : index
      %c0_20 = arith.constant 0 : index
      %c0_21 = arith.constant 0 : index
      %23 = vector.load %arg6[%c0_19, %c0_20, %c0_21] : memref<1x32x1xf32, #tpu.memory_space<vmem>>, vector<1x32x1xf32>
      %24 = vector.shape_cast %23 : vector<1x32x1xf32> to vector<32x1xf32>
      %25 = vector.shape_cast %22 : vector<32x1xf32> to vector<1x32x1xf32>
      tpu.vector_store %arg6[%c0_19, %c0_20, %c0_21], %25 {strides = array<i32>} : memref<1x32x1xf32, #tpu.memory_space<vmem>>, vector<1x32x1xf32>,
    } else {
    }
    return
  }
  func.func @transform_0(%arg0: i32, %arg1: i32) -> (i32, i32) {
    %c0_i32 = arith.constant 0 : i32
    %c0_i32_0 = arith.constant 0 : i32
    return %c0_i32, %arg1 : i32, i32
  }
  func.func @transform_1(%arg0: i32, %arg1: i32) -> (i32, i32) {
    %c0_i32 = arith.constant 0 : i32
    return %arg1, %arg0 : i32, i32
  }
  func.func @transform_2(%arg0: i32, %arg1: i32) -> (i32, i32) {
    %c0_i32 = arith.constant 0 : i32
    %c0_i32_0 = arith.constant 0 : i32
    return %c0_i32, %arg0 : i32, i32
  }
  func.func @transform_3(%arg0: i32, %arg1: i32) -> (i32, i32, i32) {
    %c0_i32 = arith.constant 0 : i32
    %c0_i32_0 = arith.constant 0 : i32
    %c0_i32_1 = arith.constant 0 : i32
    return %arg0, %c0_i32, %c0_i32_0 : i32, i32, i32
  }
  func.func @transform_4(%arg0: i32, %arg1: i32) -> (i32, i32, i32) {
    %c0_i32 = arith.constant 0 : i32
    %c0_i32_0 = arith.constant 0 : i32
    %c0_i32_1 = arith.constant 0 : i32
    return %arg0, %c0_i32, %c0_i32_0 : i32, i32, i32
  }
}

module attributes {stable_mosaic.version = 11 : i64} {
  func.func @_bn_relu_kernel(%arg0: i32, %arg1: memref<32x128xbf16, #tpu.memory_space<vmem>>, %arg2: memref<32x1xf32, #tpu.memory_space<vmem>>, %arg3: memref<32x1xf32, #tpu.memory_space<vmem>>, %arg4: memref<32x128xbf16, #tpu.memory_space<vmem>>) attributes {dimension_semantics = [#tpu.dimension_semantics<parallel>], iteration_bounds = array<i64: 1>, scalar_prefetch = 0 : i64, scratch_operands = 0 : i64, tpu.core_type = #tpu.core_type<tc>, window_params = [{transform_indices = @transform_0, window_bounds = array<i64: 32, 128>}, {pipeline_mode = #tpu.pipeline_mode<synchronous>, transform_indices = @transform_1, window_bounds = array<i64: 32, 1>}, {pipeline_mode = #tpu.pipeline_mode<synchronous>, transform_indices = @transform_2, window_bounds = array<i64: 32, 1>}, {transform_indices = @transform_3, window_bounds = array<i64: 32, 128>}]} {
    %c0 = arith.constant 0 : index
    %c0_0 = arith.constant 0 : index
    %0 = vector.load %arg1[%c0, %c0_0] : memref<32x128xbf16, #tpu.memory_space<vmem>>, vector<32x128xbf16>
    %1 = arith.extf %0 : vector<32x128xbf16> to vector<32x128xf32>
    %c0_1 = arith.constant 0 : index
    %c0_2 = arith.constant 0 : index
    %2 = vector.load %arg2[%c0_1, %c0_2] : memref<32x1xf32, #tpu.memory_space<vmem>>, vector<32x1xf32>
    %3 = vector.broadcast %2 : vector<32x1xf32> to vector<32x128xf32>
    %4 = arith.mulf %1, %3 : vector<32x128xf32>
    %c0_3 = arith.constant 0 : index
    %c0_4 = arith.constant 0 : index
    %5 = vector.load %arg3[%c0_3, %c0_4] : memref<32x1xf32, #tpu.memory_space<vmem>>, vector<32x1xf32>
    %6 = vector.broadcast %5 : vector<32x1xf32> to vector<32x128xf32>
    %7 = arith.addf %4, %6 : vector<32x128xf32>
    %cst = arith.constant 0.000000e+00 : f32
    %8 = vector.broadcast %cst : f32 to vector<32x128xf32>
    %9 = arith.maximumf %7, %8 : vector<32x128xf32>
    %10 = arith.truncf %9 : vector<32x128xf32> to vector<32x128xbf16>
    %c0_5 = arith.constant 0 : index
    %c0_6 = arith.constant 0 : index
    %11 = vector.load %arg4[%c0_5, %c0_6] : memref<32x128xbf16, #tpu.memory_space<vmem>>, vector<32x128xbf16>
    tpu.vector_store %arg4[%c0_5, %c0_6], %10 {strides = array<i32>} : memref<32x128xbf16, #tpu.memory_space<vmem>>, vector<32x128xbf16>,
    return
  }
  func.func @transform_0(%arg0: i32) -> (i32, i32) {
    %c0_i32 = arith.constant 0 : i32
    %c0_i32_0 = arith.constant 0 : i32
    return %c0_i32, %arg0 : i32, i32
  }
  func.func @transform_1(%arg0: i32) -> (i32, i32) {
    %c0_i32 = arith.constant 0 : i32
    %c0_i32_0 = arith.constant 0 : i32
    %c0_i32_1 = arith.constant 0 : i32
    return %c0_i32, %c0_i32_0 : i32, i32
  }
  func.func @transform_2(%arg0: i32) -> (i32, i32) {
    %c0_i32 = arith.constant 0 : i32
    %c0_i32_0 = arith.constant 0 : i32
    %c0_i32_1 = arith.constant 0 : i32
    return %c0_i32, %c0_i32_0 : i32, i32
  }
  func.func @transform_3(%arg0: i32) -> (i32, i32) {
    %c0_i32 = arith.constant 0 : i32
    %c0_i32_0 = arith.constant 0 : i32
    return %c0_i32, %arg0 : i32, i32
  }
}

module attributes {stable_mosaic.version = 11 : i64} {
  func.func @_bn_res_kernel(%arg0: i32, %arg1: memref<32x128xbf16, #tpu.memory_space<vmem>>, %arg2: memref<32x1xf32, #tpu.memory_space<vmem>>, %arg3: memref<32x1xf32, #tpu.memory_space<vmem>>, %arg4: memref<32x128xbf16, #tpu.memory_space<vmem>>, %arg5: memref<32x128xbf16, #tpu.memory_space<vmem>>) attributes {dimension_semantics = [#tpu.dimension_semantics<parallel>], iteration_bounds = array<i64: 1>, scalar_prefetch = 0 : i64, scratch_operands = 0 : i64, tpu.core_type = #tpu.core_type<tc>, window_params = [{transform_indices = @transform_0, window_bounds = array<i64: 32, 128>}, {pipeline_mode = #tpu.pipeline_mode<synchronous>, transform_indices = @transform_1, window_bounds = array<i64: 32, 1>}, {pipeline_mode = #tpu.pipeline_mode<synchronous>, transform_indices = @transform_2, window_bounds = array<i64: 32, 1>}, {transform_indices = @transform_3, window_bounds = array<i64: 32, 128>}, {transform_indices = @transform_4, window_bounds = array<i64: 32, 128>}]} {
    %c0 = arith.constant 0 : index
    %c0_0 = arith.constant 0 : index
    %0 = vector.load %arg1[%c0, %c0_0] : memref<32x128xbf16, #tpu.memory_space<vmem>>, vector<32x128xbf16>
    %1 = arith.extf %0 : vector<32x128xbf16> to vector<32x128xf32>
    %c0_1 = arith.constant 0 : index
    %c0_2 = arith.constant 0 : index
    %2 = vector.load %arg2[%c0_1, %c0_2] : memref<32x1xf32, #tpu.memory_space<vmem>>, vector<32x1xf32>
    %3 = vector.broadcast %2 : vector<32x1xf32> to vector<32x128xf32>
    %4 = arith.mulf %1, %3 : vector<32x128xf32>
    %c0_3 = arith.constant 0 : index
    %c0_4 = arith.constant 0 : index
    %5 = vector.load %arg3[%c0_3, %c0_4] : memref<32x1xf32, #tpu.memory_space<vmem>>, vector<32x1xf32>
    %6 = vector.broadcast %5 : vector<32x1xf32> to vector<32x128xf32>
    %7 = arith.addf %4, %6 : vector<32x128xf32>
    %c0_5 = arith.constant 0 : index
    %c0_6 = arith.constant 0 : index
    %8 = vector.load %arg4[%c0_5, %c0_6] : memref<32x128xbf16, #tpu.memory_space<vmem>>, vector<32x128xbf16>
    %9 = arith.extf %8 : vector<32x128xbf16> to vector<32x128xf32>
    %10 = arith.addf %7, %9 : vector<32x128xf32>
    %11 = arith.truncf %10 : vector<32x128xf32> to vector<32x128xbf16>
    %c0_7 = arith.constant 0 : index
    %c0_8 = arith.constant 0 : index
    %12 = vector.load %arg5[%c0_7, %c0_8] : memref<32x128xbf16, #tpu.memory_space<vmem>>, vector<32x128xbf16>
    tpu.vector_store %arg5[%c0_7, %c0_8], %11 {strides = array<i32>} : memref<32x128xbf16, #tpu.memory_space<vmem>>, vector<32x128xbf16>,
    return
  }
  func.func @transform_0(%arg0: i32) -> (i32, i32) {
    %c0_i32 = arith.constant 0 : i32
    %c0_i32_0 = arith.constant 0 : i32
    return %c0_i32, %arg0 : i32, i32
  }
  func.func @transform_1(%arg0: i32) -> (i32, i32) {
    %c0_i32 = arith.constant 0 : i32
    %c0_i32_0 = arith.constant 0 : i32
    %c0_i32_1 = arith.constant 0 : i32
    return %c0_i32, %c0_i32_0 : i32, i32
  }
  func.func @transform_2(%arg0: i32) -> (i32, i32) {
    %c0_i32 = arith.constant 0 : i32
    %c0_i32_0 = arith.constant 0 : i32
    %c0_i32_1 = arith.constant 0 : i32
    return %c0_i32, %c0_i32_0 : i32, i32
  }
  func.func @transform_3(%arg0: i32) -> (i32, i32) {
    %c0_i32 = arith.constant 0 : i32
    %c0_i32_0 = arith.constant 0 : i32
    return %c0_i32, %arg0 : i32, i32
  }
  func.func @transform_4(%arg0: i32) -> (i32, i32) {
    %c0_i32 = arith.constant 0 : i32
    %c0_i32_0 = arith.constant 0 : i32
    return %c0_i32, %arg0 : i32, i32
  }
}

module attributes {stable_mosaic.version = 11 : i64} {
  func.func @_mm_stats_kernel(%arg0: i32, %arg1: i32, %arg2: memref<32x864xbf16, #tpu.memory_space<vmem>>, %arg3: memref<864x128xbf16, #tpu.memory_space<vmem>>, %arg4: memref<32x128xbf16, #tpu.memory_space<vmem>>, %arg5: memref<1x32x1xf32, #tpu.memory_space<vmem>>, %arg6: memref<1x32x1xf32, #tpu.memory_space<vmem>>, %arg7: memref<32x128xf32, #tpu.memory_space<vmem>>) attributes {dimension_semantics = [#tpu.dimension_semantics<parallel>, #tpu.dimension_semantics<arbitrary>], iteration_bounds = array<i64: 1, 1>, scalar_prefetch = 0 : i64, scratch_operands = 1 : i64, tpu.core_type = #tpu.core_type<tc>, window_params = [{transform_indices = @transform_0, window_bounds = array<i64: 32, 864>}, {transform_indices = @transform_1, window_bounds = array<i64: 864, 128>}, {transform_indices = @transform_2, window_bounds = array<i64: 32, 128>}, {transform_indices = @transform_3, window_bounds = array<i64: 1, 32, 1>}, {transform_indices = @transform_4, window_bounds = array<i64: 1, 32, 1>}]} {
    %c0_i32 = arith.constant 0 : i32
    %0 = arith.cmpi eq, %arg1, %c0_i32 : i32
    %1 = arith.extui %0 : i1 to i32
    %c0_i32_0 = arith.constant 0 : i32
    %2 = arith.cmpi ne, %1, %c0_i32_0 : i32
    scf.if %2 {
      %cst_10 = arith.constant 0.000000e+00 : f32
      %12 = vector.broadcast %cst_10 : f32 to vector<32x128xf32>
      %c0_11 = arith.constant 0 : index
      %c0_12 = arith.constant 0 : index
      %13 = vector.load %arg7[%c0_11, %c0_12] : memref<32x128xf32, #tpu.memory_space<vmem>>, vector<32x128xf32>
      tpu.vector_store %arg7[%c0_11, %c0_12], %12 {strides = array<i32>} : memref<32x128xf32, #tpu.memory_space<vmem>>, vector<32x128xf32>,
    } else {
    }
    %c0 = arith.constant 0 : index
    %c0_1 = arith.constant 0 : index
    %3 = vector.load %arg7[%c0, %c0_1] : memref<32x128xf32, #tpu.memory_space<vmem>>, vector<32x128xf32>
    %c0_2 = arith.constant 0 : index
    %c0_3 = arith.constant 0 : index
    %4 = vector.load %arg2[%c0_2, %c0_3] : memref<32x864xbf16, #tpu.memory_space<vmem>>, vector<32x864xbf16>
    %c0_4 = arith.constant 0 : index
    %c0_5 = arith.constant 0 : index
    %5 = vector.load %arg3[%c0_4, %c0_5] : memref<864x128xbf16, #tpu.memory_space<vmem>>, vector<864x128xbf16>
    %cst = arith.constant dense<0.000000e+00> : vector<32x128xf32>
    %6 = tpu.matmul %4, %5, %cst {dimension_numbers = #tpu.dot_dimension_numbers<[1], [0], [0], [1], [0, 0, 1, 1], [], []>} : vector<32x864xbf16>, vector<864x128xbf16>, vector<32x128xf32> -> vector<32x128xf32>
    %7 = arith.addf %3, %6 : vector<32x128xf32>
    %c0_6 = arith.constant 0 : index
    %c0_7 = arith.constant 0 : index
    %8 = vector.load %arg7[%c0_6, %c0_7] : memref<32x128xf32, #tpu.memory_space<vmem>>, vector<32x128xf32>
    tpu.vector_store %arg7[%c0_6, %c0_7], %7 {strides = array<i32>} : memref<32x128xf32, #tpu.memory_space<vmem>>, vector<32x128xf32>,
    %c0_i32_8 = arith.constant 0 : i32
    %9 = arith.cmpi eq, %arg1, %c0_i32_8 : i32
    %10 = arith.extui %9 : i1 to i32
    %c0_i32_9 = arith.constant 0 : i32
    %11 = arith.cmpi ne, %10, %c0_i32_9 : i32
    scf.if %11 {
      %c0_10 = arith.constant 0 : index
      %c0_11 = arith.constant 0 : index
      %12 = vector.load %arg7[%c0_10, %c0_11] : memref<32x128xf32, #tpu.memory_space<vmem>>, vector<32x128xf32>
      %13 = arith.truncf %12 : vector<32x128xf32> to vector<32x128xbf16>
      %c0_12 = arith.constant 0 : index
      %c0_13 = arith.constant 0 : index
      %14 = vector.load %arg4[%c0_12, %c0_13] : memref<32x128xbf16, #tpu.memory_space<vmem>>, vector<32x128xbf16>
      tpu.vector_store %arg4[%c0_12, %c0_13], %13 {strides = array<i32>} : memref<32x128xbf16, #tpu.memory_space<vmem>>, vector<32x128xbf16>,
      %cst_14 = arith.constant dense<0.000000e+00> : vector<32xf32>
      %15 = vector.multi_reduction <add>, %12, %cst_14 [1] : vector<32x128xf32> to vector<32xf32>
      %16 = vector.shape_cast %15 : vector<32xf32> to vector<32x1xf32>
      %c0_15 = arith.constant 0 : index
      %c0_16 = arith.constant 0 : index
      %c0_17 = arith.constant 0 : index
      %17 = vector.load %arg5[%c0_15, %c0_16, %c0_17] : memref<1x32x1xf32, #tpu.memory_space<vmem>>, vector<1x32x1xf32>
      %18 = vector.shape_cast %17 : vector<1x32x1xf32> to vector<32x1xf32>
      %19 = vector.shape_cast %16 : vector<32x1xf32> to vector<1x32x1xf32>
      tpu.vector_store %arg5[%c0_15, %c0_16, %c0_17], %19 {strides = array<i32>} : memref<1x32x1xf32, #tpu.memory_space<vmem>>, vector<1x32x1xf32>,
      %20 = arith.mulf %12, %12 : vector<32x128xf32>
      %cst_18 = arith.constant dense<0.000000e+00> : vector<32xf32>
      %21 = vector.multi_reduction <add>, %20, %cst_18 [1] : vector<32x128xf32> to vector<32xf32>
      %22 = vector.shape_cast %21 : vector<32xf32> to vector<32x1xf32>
      %c0_19 = arith.constant 0 : index
      %c0_20 = arith.constant 0 : index
      %c0_21 = arith.constant 0 : index
      %23 = vector.load %arg6[%c0_19, %c0_20, %c0_21] : memref<1x32x1xf32, #tpu.memory_space<vmem>>, vector<1x32x1xf32>
      %24 = vector.shape_cast %23 : vector<1x32x1xf32> to vector<32x1xf32>
      %25 = vector.shape_cast %22 : vector<32x1xf32> to vector<1x32x1xf32>
      tpu.vector_store %arg6[%c0_19, %c0_20, %c0_21], %25 {strides = array<i32>} : memref<1x32x1xf32, #tpu.memory_space<vmem>>, vector<1x32x1xf32>,
    } else {
    }
    return
  }
  func.func @transform_0(%arg0: i32, %arg1: i32) -> (i32, i32) {
    %c0_i32 = arith.constant 0 : i32
    %c0_i32_0 = arith.constant 0 : i32
    return %c0_i32, %arg1 : i32, i32
  }
  func.func @transform_1(%arg0: i32, %arg1: i32) -> (i32, i32) {
    %c0_i32 = arith.constant 0 : i32
    return %arg1, %arg0 : i32, i32
  }
  func.func @transform_2(%arg0: i32, %arg1: i32) -> (i32, i32) {
    %c0_i32 = arith.constant 0 : i32
    %c0_i32_0 = arith.constant 0 : i32
    return %c0_i32, %arg0 : i32, i32
  }
  func.func @transform_3(%arg0: i32, %arg1: i32) -> (i32, i32, i32) {
    %c0_i32 = arith.constant 0 : i32
    %c0_i32_0 = arith.constant 0 : i32
    %c0_i32_1 = arith.constant 0 : i32
    return %arg0, %c0_i32, %c0_i32_0 : i32, i32, i32
  }
  func.func @transform_4(%arg0: i32, %arg1: i32) -> (i32, i32, i32) {
    %c0_i32 = arith.constant 0 : i32
    %c0_i32_0 = arith.constant 0 : i32
    %c0_i32_1 = arith.constant 0 : i32
    return %arg0, %c0_i32, %c0_i32_0 : i32, i32, i32
  }
}

module attributes {stable_mosaic.version = 11 : i64} {
  func.func @_mm_stats_kernel(%arg0: i32, %arg1: i32, %arg2: memref<16x64xbf16, #tpu.memory_space<vmem>>, %arg3: memref<64x128xbf16, #tpu.memory_space<vmem>>, %arg4: memref<16x128xbf16, #tpu.memory_space<vmem>>, %arg5: memref<1x16x1xf32, #tpu.memory_space<vmem>>, %arg6: memref<1x16x1xf32, #tpu.memory_space<vmem>>, %arg7: memref<16x128xf32, #tpu.memory_space<vmem>>) attributes {dimension_semantics = [#tpu.dimension_semantics<parallel>, #tpu.dimension_semantics<arbitrary>], iteration_bounds = array<i64: 1, 1>, scalar_prefetch = 0 : i64, scratch_operands = 1 : i64, tpu.core_type = #tpu.core_type<tc>, window_params = [{transform_indices = @transform_0, window_bounds = array<i64: 16, 64>}, {transform_indices = @transform_1, window_bounds = array<i64: 64, 128>}, {transform_indices = @transform_2, window_bounds = array<i64: 16, 128>}, {transform_indices = @transform_3, window_bounds = array<i64: 1, 16, 1>}, {transform_indices = @transform_4, window_bounds = array<i64: 1, 16, 1>}]} {
    %c0_i32 = arith.constant 0 : i32
    %0 = arith.cmpi eq, %arg1, %c0_i32 : i32
    %1 = arith.extui %0 : i1 to i32
    %c0_i32_0 = arith.constant 0 : i32
    %2 = arith.cmpi ne, %1, %c0_i32_0 : i32
    scf.if %2 {
      %cst_10 = arith.constant 0.000000e+00 : f32
      %12 = vector.broadcast %cst_10 : f32 to vector<16x128xf32>
      %c0_11 = arith.constant 0 : index
      %c0_12 = arith.constant 0 : index
      %13 = vector.load %arg7[%c0_11, %c0_12] : memref<16x128xf32, #tpu.memory_space<vmem>>, vector<16x128xf32>
      tpu.vector_store %arg7[%c0_11, %c0_12], %12 {strides = array<i32>} : memref<16x128xf32, #tpu.memory_space<vmem>>, vector<16x128xf32>,
    } else {
    }
    %c0 = arith.constant 0 : index
    %c0_1 = arith.constant 0 : index
    %3 = vector.load %arg7[%c0, %c0_1] : memref<16x128xf32, #tpu.memory_space<vmem>>, vector<16x128xf32>
    %c0_2 = arith.constant 0 : index
    %c0_3 = arith.constant 0 : index
    %4 = vector.load %arg2[%c0_2, %c0_3] : memref<16x64xbf16, #tpu.memory_space<vmem>>, vector<16x64xbf16>
    %c0_4 = arith.constant 0 : index
    %c0_5 = arith.constant 0 : index
    %5 = vector.load %arg3[%c0_4, %c0_5] : memref<64x128xbf16, #tpu.memory_space<vmem>>, vector<64x128xbf16>
    %cst = arith.constant dense<0.000000e+00> : vector<16x128xf32>
    %6 = tpu.matmul %4, %5, %cst {dimension_numbers = #tpu.dot_dimension_numbers<[1], [0], [0], [1], [0, 0, 1, 1], [], []>} : vector<16x64xbf16>, vector<64x128xbf16>, vector<16x128xf32> -> vector<16x128xf32>
    %7 = arith.addf %3, %6 : vector<16x128xf32>
    %c0_6 = arith.constant 0 : index
    %c0_7 = arith.constant 0 : index
    %8 = vector.load %arg7[%c0_6, %c0_7] : memref<16x128xf32, #tpu.memory_space<vmem>>, vector<16x128xf32>
    tpu.vector_store %arg7[%c0_6, %c0_7], %7 {strides = array<i32>} : memref<16x128xf32, #tpu.memory_space<vmem>>, vector<16x128xf32>,
    %c0_i32_8 = arith.constant 0 : i32
    %9 = arith.cmpi eq, %arg1, %c0_i32_8 : i32
    %10 = arith.extui %9 : i1 to i32
    %c0_i32_9 = arith.constant 0 : i32
    %11 = arith.cmpi ne, %10, %c0_i32_9 : i32
    scf.if %11 {
      %c0_10 = arith.constant 0 : index
      %c0_11 = arith.constant 0 : index
      %12 = vector.load %arg7[%c0_10, %c0_11] : memref<16x128xf32, #tpu.memory_space<vmem>>, vector<16x128xf32>
      %13 = arith.truncf %12 : vector<16x128xf32> to vector<16x128xbf16>
      %c0_12 = arith.constant 0 : index
      %c0_13 = arith.constant 0 : index
      %14 = vector.load %arg4[%c0_12, %c0_13] : memref<16x128xbf16, #tpu.memory_space<vmem>>, vector<16x128xbf16>
      tpu.vector_store %arg4[%c0_12, %c0_13], %13 {strides = array<i32>} : memref<16x128xbf16, #tpu.memory_space<vmem>>, vector<16x128xbf16>,
      %cst_14 = arith.constant dense<0.000000e+00> : vector<16xf32>
      %15 = vector.multi_reduction <add>, %12, %cst_14 [1] : vector<16x128xf32> to vector<16xf32>
      %16 = vector.shape_cast %15 : vector<16xf32> to vector<16x1xf32>
      %c0_15 = arith.constant 0 : index
      %c0_16 = arith.constant 0 : index
      %c0_17 = arith.constant 0 : index
      %17 = vector.load %arg5[%c0_15, %c0_16, %c0_17] : memref<1x16x1xf32, #tpu.memory_space<vmem>>, vector<1x16x1xf32>
      %18 = vector.shape_cast %17 : vector<1x16x1xf32> to vector<16x1xf32>
      %19 = vector.shape_cast %16 : vector<16x1xf32> to vector<1x16x1xf32>
      tpu.vector_store %arg5[%c0_15, %c0_16, %c0_17], %19 {strides = array<i32>} : memref<1x16x1xf32, #tpu.memory_space<vmem>>, vector<1x16x1xf32>,
      %20 = arith.mulf %12, %12 : vector<16x128xf32>
      %cst_18 = arith.constant dense<0.000000e+00> : vector<16xf32>
      %21 = vector.multi_reduction <add>, %20, %cst_18 [1] : vector<16x128xf32> to vector<16xf32>
      %22 = vector.shape_cast %21 : vector<16xf32> to vector<16x1xf32>
      %c0_19 = arith.constant 0 : index
      %c0_20 = arith.constant 0 : index
      %c0_21 = arith.constant 0 : index
      %23 = vector.load %arg6[%c0_19, %c0_20, %c0_21] : memref<1x16x1xf32, #tpu.memory_space<vmem>>, vector<1x16x1xf32>
      %24 = vector.shape_cast %23 : vector<1x16x1xf32> to vector<16x1xf32>
      %25 = vector.shape_cast %22 : vector<16x1xf32> to vector<1x16x1xf32>
      tpu.vector_store %arg6[%c0_19, %c0_20, %c0_21], %25 {strides = array<i32>} : memref<1x16x1xf32, #tpu.memory_space<vmem>>, vector<1x16x1xf32>,
    } else {
    }
    return
  }
  func.func @transform_0(%arg0: i32, %arg1: i32) -> (i32, i32) {
    %c0_i32 = arith.constant 0 : i32
    %c0_i32_0 = arith.constant 0 : i32
    return %c0_i32, %arg1 : i32, i32
  }
  func.func @transform_1(%arg0: i32, %arg1: i32) -> (i32, i32) {
    %c0_i32 = arith.constant 0 : i32
    return %arg1, %arg0 : i32, i32
  }
  func.func @transform_2(%arg0: i32, %arg1: i32) -> (i32, i32) {
    %c0_i32 = arith.constant 0 : i32
    %c0_i32_0 = arith.constant 0 : i32
    return %c0_i32, %arg0 : i32, i32
  }
  func.func @transform_3(%arg0: i32, %arg1: i32) -> (i32, i32, i32) {
    %c0_i32 = arith.constant 0 : i32
    %c0_i32_0 = arith.constant 0 : i32
    %c0_i32_1 = arith.constant 0 : i32
    return %arg0, %c0_i32, %c0_i32_0 : i32, i32, i32
  }
  func.func @transform_4(%arg0: i32, %arg1: i32) -> (i32, i32, i32) {
    %c0_i32 = arith.constant 0 : i32
    %c0_i32_0 = arith.constant 0 : i32
    %c0_i32_1 = arith.constant 0 : i32
    return %arg0, %c0_i32, %c0_i32_0 : i32, i32, i32
  }
}

module attributes {stable_mosaic.version = 11 : i64} {
  func.func @_mm_stats_kernel(%arg0: i32, %arg1: i32, %arg2: memref<16x128xbf16, #tpu.memory_space<vmem>>, %arg3: memref<128x128xbf16, #tpu.memory_space<vmem>>, %arg4: memref<16x128xbf16, #tpu.memory_space<vmem>>, %arg5: memref<1x16x1xf32, #tpu.memory_space<vmem>>, %arg6: memref<1x16x1xf32, #tpu.memory_space<vmem>>, %arg7: memref<16x128xf32, #tpu.memory_space<vmem>>) attributes {dimension_semantics = [#tpu.dimension_semantics<parallel>, #tpu.dimension_semantics<arbitrary>], iteration_bounds = array<i64: 1, 1>, scalar_prefetch = 0 : i64, scratch_operands = 1 : i64, tpu.core_type = #tpu.core_type<tc>, window_params = [{transform_indices = @transform_0, window_bounds = array<i64: 16, 128>}, {transform_indices = @transform_1, window_bounds = array<i64: 128, 128>}, {transform_indices = @transform_2, window_bounds = array<i64: 16, 128>}, {transform_indices = @transform_3, window_bounds = array<i64: 1, 16, 1>}, {transform_indices = @transform_4, window_bounds = array<i64: 1, 16, 1>}]} {
    %c0_i32 = arith.constant 0 : i32
    %0 = arith.cmpi eq, %arg1, %c0_i32 : i32
    %1 = arith.extui %0 : i1 to i32
    %c0_i32_0 = arith.constant 0 : i32
    %2 = arith.cmpi ne, %1, %c0_i32_0 : i32
    scf.if %2 {
      %cst_10 = arith.constant 0.000000e+00 : f32
      %12 = vector.broadcast %cst_10 : f32 to vector<16x128xf32>
      %c0_11 = arith.constant 0 : index
      %c0_12 = arith.constant 0 : index
      %13 = vector.load %arg7[%c0_11, %c0_12] : memref<16x128xf32, #tpu.memory_space<vmem>>, vector<16x128xf32>
      tpu.vector_store %arg7[%c0_11, %c0_12], %12 {strides = array<i32>} : memref<16x128xf32, #tpu.memory_space<vmem>>, vector<16x128xf32>,
    } else {
    }
    %c0 = arith.constant 0 : index
    %c0_1 = arith.constant 0 : index
    %3 = vector.load %arg7[%c0, %c0_1] : memref<16x128xf32, #tpu.memory_space<vmem>>, vector<16x128xf32>
    %c0_2 = arith.constant 0 : index
    %c0_3 = arith.constant 0 : index
    %4 = vector.load %arg2[%c0_2, %c0_3] : memref<16x128xbf16, #tpu.memory_space<vmem>>, vector<16x128xbf16>
    %c0_4 = arith.constant 0 : index
    %c0_5 = arith.constant 0 : index
    %5 = vector.load %arg3[%c0_4, %c0_5] : memref<128x128xbf16, #tpu.memory_space<vmem>>, vector<128x128xbf16>
    %cst = arith.constant dense<0.000000e+00> : vector<16x128xf32>
    %6 = tpu.matmul %4, %5, %cst {dimension_numbers = #tpu.dot_dimension_numbers<[1], [0], [0], [1], [0, 0, 1, 1], [], []>} : vector<16x128xbf16>, vector<128x128xbf16>, vector<16x128xf32> -> vector<16x128xf32>
    %7 = arith.addf %3, %6 : vector<16x128xf32>
    %c0_6 = arith.constant 0 : index
    %c0_7 = arith.constant 0 : index
    %8 = vector.load %arg7[%c0_6, %c0_7] : memref<16x128xf32, #tpu.memory_space<vmem>>, vector<16x128xf32>
    tpu.vector_store %arg7[%c0_6, %c0_7], %7 {strides = array<i32>} : memref<16x128xf32, #tpu.memory_space<vmem>>, vector<16x128xf32>,
    %c0_i32_8 = arith.constant 0 : i32
    %9 = arith.cmpi eq, %arg1, %c0_i32_8 : i32
    %10 = arith.extui %9 : i1 to i32
    %c0_i32_9 = arith.constant 0 : i32
    %11 = arith.cmpi ne, %10, %c0_i32_9 : i32
    scf.if %11 {
      %c0_10 = arith.constant 0 : index
      %c0_11 = arith.constant 0 : index
      %12 = vector.load %arg7[%c0_10, %c0_11] : memref<16x128xf32, #tpu.memory_space<vmem>>, vector<16x128xf32>
      %13 = arith.truncf %12 : vector<16x128xf32> to vector<16x128xbf16>
      %c0_12 = arith.constant 0 : index
      %c0_13 = arith.constant 0 : index
      %14 = vector.load %arg4[%c0_12, %c0_13] : memref<16x128xbf16, #tpu.memory_space<vmem>>, vector<16x128xbf16>
      tpu.vector_store %arg4[%c0_12, %c0_13], %13 {strides = array<i32>} : memref<16x128xbf16, #tpu.memory_space<vmem>>, vector<16x128xbf16>,
      %cst_14 = arith.constant dense<0.000000e+00> : vector<16xf32>
      %15 = vector.multi_reduction <add>, %12, %cst_14 [1] : vector<16x128xf32> to vector<16xf32>
      %16 = vector.shape_cast %15 : vector<16xf32> to vector<16x1xf32>
      %c0_15 = arith.constant 0 : index
      %c0_16 = arith.constant 0 : index
      %c0_17 = arith.constant 0 : index
      %17 = vector.load %arg5[%c0_15, %c0_16, %c0_17] : memref<1x16x1xf32, #tpu.memory_space<vmem>>, vector<1x16x1xf32>
      %18 = vector.shape_cast %17 : vector<1x16x1xf32> to vector<16x1xf32>
      %19 = vector.shape_cast %16 : vector<16x1xf32> to vector<1x16x1xf32>
      tpu.vector_store %arg5[%c0_15, %c0_16, %c0_17], %19 {strides = array<i32>} : memref<1x16x1xf32, #tpu.memory_space<vmem>>, vector<1x16x1xf32>,
      %20 = arith.mulf %12, %12 : vector<16x128xf32>
      %cst_18 = arith.constant dense<0.000000e+00> : vector<16xf32>
      %21 = vector.multi_reduction <add>, %20, %cst_18 [1] : vector<16x128xf32> to vector<16xf32>
      %22 = vector.shape_cast %21 : vector<16xf32> to vector<16x1xf32>
      %c0_19 = arith.constant 0 : index
      %c0_20 = arith.constant 0 : index
      %c0_21 = arith.constant 0 : index
      %23 = vector.load %arg6[%c0_19, %c0_20, %c0_21] : memref<1x16x1xf32, #tpu.memory_space<vmem>>, vector<1x16x1xf32>
      %24 = vector.shape_cast %23 : vector<1x16x1xf32> to vector<16x1xf32>
      %25 = vector.shape_cast %22 : vector<16x1xf32> to vector<1x16x1xf32>
      tpu.vector_store %arg6[%c0_19, %c0_20, %c0_21], %25 {strides = array<i32>} : memref<1x16x1xf32, #tpu.memory_space<vmem>>, vector<1x16x1xf32>,
    } else {
    }
    return
  }
  func.func @transform_0(%arg0: i32, %arg1: i32) -> (i32, i32) {
    %c0_i32 = arith.constant 0 : i32
    %c0_i32_0 = arith.constant 0 : i32
    return %c0_i32, %arg1 : i32, i32
  }
  func.func @transform_1(%arg0: i32, %arg1: i32) -> (i32, i32) {
    %c0_i32 = arith.constant 0 : i32
    return %arg1, %arg0 : i32, i32
  }
  func.func @transform_2(%arg0: i32, %arg1: i32) -> (i32, i32) {
    %c0_i32 = arith.constant 0 : i32
    %c0_i32_0 = arith.constant 0 : i32
    return %c0_i32, %arg0 : i32, i32
  }
  func.func @transform_3(%arg0: i32, %arg1: i32) -> (i32, i32, i32) {
    %c0_i32 = arith.constant 0 : i32
    %c0_i32_0 = arith.constant 0 : i32
    %c0_i32_1 = arith.constant 0 : i32
    return %arg0, %c0_i32, %c0_i32_0 : i32, i32, i32
  }
  func.func @transform_4(%arg0: i32, %arg1: i32) -> (i32, i32, i32) {
    %c0_i32 = arith.constant 0 : i32
    %c0_i32_0 = arith.constant 0 : i32
    %c0_i32_1 = arith.constant 0 : i32
    return %arg0, %c0_i32, %c0_i32_0 : i32, i32, i32
  }
}

module attributes {stable_mosaic.version = 11 : i64} {
  func.func @_mm_stats_kernel(%arg0: i32, %arg1: i32, %arg2: memref<16x32xbf16, #tpu.memory_space<vmem>>, %arg3: memref<32x128xbf16, #tpu.memory_space<vmem>>, %arg4: memref<16x128xbf16, #tpu.memory_space<vmem>>, %arg5: memref<1x16x1xf32, #tpu.memory_space<vmem>>, %arg6: memref<1x16x1xf32, #tpu.memory_space<vmem>>, %arg7: memref<16x128xf32, #tpu.memory_space<vmem>>) attributes {dimension_semantics = [#tpu.dimension_semantics<parallel>, #tpu.dimension_semantics<arbitrary>], iteration_bounds = array<i64: 1, 1>, scalar_prefetch = 0 : i64, scratch_operands = 1 : i64, tpu.core_type = #tpu.core_type<tc>, window_params = [{transform_indices = @transform_0, window_bounds = array<i64: 16, 32>}, {transform_indices = @transform_1, window_bounds = array<i64: 32, 128>}, {transform_indices = @transform_2, window_bounds = array<i64: 16, 128>}, {transform_indices = @transform_3, window_bounds = array<i64: 1, 16, 1>}, {transform_indices = @transform_4, window_bounds = array<i64: 1, 16, 1>}]} {
    %c0_i32 = arith.constant 0 : i32
    %0 = arith.cmpi eq, %arg1, %c0_i32 : i32
    %1 = arith.extui %0 : i1 to i32
    %c0_i32_0 = arith.constant 0 : i32
    %2 = arith.cmpi ne, %1, %c0_i32_0 : i32
    scf.if %2 {
      %cst_10 = arith.constant 0.000000e+00 : f32
      %12 = vector.broadcast %cst_10 : f32 to vector<16x128xf32>
      %c0_11 = arith.constant 0 : index
      %c0_12 = arith.constant 0 : index
      %13 = vector.load %arg7[%c0_11, %c0_12] : memref<16x128xf32, #tpu.memory_space<vmem>>, vector<16x128xf32>
      tpu.vector_store %arg7[%c0_11, %c0_12], %12 {strides = array<i32>} : memref<16x128xf32, #tpu.memory_space<vmem>>, vector<16x128xf32>,
    } else {
    }
    %c0 = arith.constant 0 : index
    %c0_1 = arith.constant 0 : index
    %3 = vector.load %arg7[%c0, %c0_1] : memref<16x128xf32, #tpu.memory_space<vmem>>, vector<16x128xf32>
    %c0_2 = arith.constant 0 : index
    %c0_3 = arith.constant 0 : index
    %4 = vector.load %arg2[%c0_2, %c0_3] : memref<16x32xbf16, #tpu.memory_space<vmem>>, vector<16x32xbf16>
    %c0_4 = arith.constant 0 : index
    %c0_5 = arith.constant 0 : index
    %5 = vector.load %arg3[%c0_4, %c0_5] : memref<32x128xbf16, #tpu.memory_space<vmem>>, vector<32x128xbf16>
    %cst = arith.constant dense<0.000000e+00> : vector<16x128xf32>
    %6 = tpu.matmul %4, %5, %cst {dimension_numbers = #tpu.dot_dimension_numbers<[1], [0], [0], [1], [0, 0, 1, 1], [], []>} : vector<16x32xbf16>, vector<32x128xbf16>, vector<16x128xf32> -> vector<16x128xf32>
    %7 = arith.addf %3, %6 : vector<16x128xf32>
    %c0_6 = arith.constant 0 : index
    %c0_7 = arith.constant 0 : index
    %8 = vector.load %arg7[%c0_6, %c0_7] : memref<16x128xf32, #tpu.memory_space<vmem>>, vector<16x128xf32>
    tpu.vector_store %arg7[%c0_6, %c0_7], %7 {strides = array<i32>} : memref<16x128xf32, #tpu.memory_space<vmem>>, vector<16x128xf32>,
    %c0_i32_8 = arith.constant 0 : i32
    %9 = arith.cmpi eq, %arg1, %c0_i32_8 : i32
    %10 = arith.extui %9 : i1 to i32
    %c0_i32_9 = arith.constant 0 : i32
    %11 = arith.cmpi ne, %10, %c0_i32_9 : i32
    scf.if %11 {
      %c0_10 = arith.constant 0 : index
      %c0_11 = arith.constant 0 : index
      %12 = vector.load %arg7[%c0_10, %c0_11] : memref<16x128xf32, #tpu.memory_space<vmem>>, vector<16x128xf32>
      %13 = arith.truncf %12 : vector<16x128xf32> to vector<16x128xbf16>
      %c0_12 = arith.constant 0 : index
      %c0_13 = arith.constant 0 : index
      %14 = vector.load %arg4[%c0_12, %c0_13] : memref<16x128xbf16, #tpu.memory_space<vmem>>, vector<16x128xbf16>
      tpu.vector_store %arg4[%c0_12, %c0_13], %13 {strides = array<i32>} : memref<16x128xbf16, #tpu.memory_space<vmem>>, vector<16x128xbf16>,
      %cst_14 = arith.constant dense<0.000000e+00> : vector<16xf32>
      %15 = vector.multi_reduction <add>, %12, %cst_14 [1] : vector<16x128xf32> to vector<16xf32>
      %16 = vector.shape_cast %15 : vector<16xf32> to vector<16x1xf32>
      %c0_15 = arith.constant 0 : index
      %c0_16 = arith.constant 0 : index
      %c0_17 = arith.constant 0 : index
      %17 = vector.load %arg5[%c0_15, %c0_16, %c0_17] : memref<1x16x1xf32, #tpu.memory_space<vmem>>, vector<1x16x1xf32>
      %18 = vector.shape_cast %17 : vector<1x16x1xf32> to vector<16x1xf32>
      %19 = vector.shape_cast %16 : vector<16x1xf32> to vector<1x16x1xf32>
      tpu.vector_store %arg5[%c0_15, %c0_16, %c0_17], %19 {strides = array<i32>} : memref<1x16x1xf32, #tpu.memory_space<vmem>>, vector<1x16x1xf32>,
      %20 = arith.mulf %12, %12 : vector<16x128xf32>
      %cst_18 = arith.constant dense<0.000000e+00> : vector<16xf32>
      %21 = vector.multi_reduction <add>, %20, %cst_18 [1] : vector<16x128xf32> to vector<16xf32>
      %22 = vector.shape_cast %21 : vector<16xf32> to vector<16x1xf32>
      %c0_19 = arith.constant 0 : index
      %c0_20 = arith.constant 0 : index
      %c0_21 = arith.constant 0 : index
      %23 = vector.load %arg6[%c0_19, %c0_20, %c0_21] : memref<1x16x1xf32, #tpu.memory_space<vmem>>, vector<1x16x1xf32>
      %24 = vector.shape_cast %23 : vector<1x16x1xf32> to vector<16x1xf32>
      %25 = vector.shape_cast %22 : vector<16x1xf32> to vector<1x16x1xf32>
      tpu.vector_store %arg6[%c0_19, %c0_20, %c0_21], %25 {strides = array<i32>} : memref<1x16x1xf32, #tpu.memory_space<vmem>>, vector<1x16x1xf32>,
    } else {
    }
    return
  }
  func.func @transform_0(%arg0: i32, %arg1: i32) -> (i32, i32) {
    %c0_i32 = arith.constant 0 : i32
    %c0_i32_0 = arith.constant 0 : i32
    return %c0_i32, %arg1 : i32, i32
  }
  func.func @transform_1(%arg0: i32, %arg1: i32) -> (i32, i32) {
    %c0_i32 = arith.constant 0 : i32
    return %arg1, %arg0 : i32, i32
  }
  func.func @transform_2(%arg0: i32, %arg1: i32) -> (i32, i32) {
    %c0_i32 = arith.constant 0 : i32
    %c0_i32_0 = arith.constant 0 : i32
    return %c0_i32, %arg0 : i32, i32
  }
  func.func @transform_3(%arg0: i32, %arg1: i32) -> (i32, i32, i32) {
    %c0_i32 = arith.constant 0 : i32
    %c0_i32_0 = arith.constant 0 : i32
    %c0_i32_1 = arith.constant 0 : i32
    return %arg0, %c0_i32, %c0_i32_0 : i32, i32, i32
  }
  func.func @transform_4(%arg0: i32, %arg1: i32) -> (i32, i32, i32) {
    %c0_i32 = arith.constant 0 : i32
    %c0_i32_0 = arith.constant 0 : i32
    %c0_i32_1 = arith.constant 0 : i32
    return %arg0, %c0_i32, %c0_i32_0 : i32, i32, i32
  }
}

module attributes {stable_mosaic.version = 11 : i64} {
  func.func @_mm_stats_kernel(%arg0: i32, %arg1: i32, %arg2: memref<16x256xbf16, #tpu.memory_space<vmem>>, %arg3: memref<256x128xbf16, #tpu.memory_space<vmem>>, %arg4: memref<16x128xbf16, #tpu.memory_space<vmem>>, %arg5: memref<1x16x1xf32, #tpu.memory_space<vmem>>, %arg6: memref<1x16x1xf32, #tpu.memory_space<vmem>>, %arg7: memref<16x128xf32, #tpu.memory_space<vmem>>) attributes {dimension_semantics = [#tpu.dimension_semantics<parallel>, #tpu.dimension_semantics<arbitrary>], iteration_bounds = array<i64: 1, 1>, scalar_prefetch = 0 : i64, scratch_operands = 1 : i64, tpu.core_type = #tpu.core_type<tc>, window_params = [{transform_indices = @transform_0, window_bounds = array<i64: 16, 256>}, {transform_indices = @transform_1, window_bounds = array<i64: 256, 128>}, {transform_indices = @transform_2, window_bounds = array<i64: 16, 128>}, {transform_indices = @transform_3, window_bounds = array<i64: 1, 16, 1>}, {transform_indices = @transform_4, window_bounds = array<i64: 1, 16, 1>}]} {
    %c0_i32 = arith.constant 0 : i32
    %0 = arith.cmpi eq, %arg1, %c0_i32 : i32
    %1 = arith.extui %0 : i1 to i32
    %c0_i32_0 = arith.constant 0 : i32
    %2 = arith.cmpi ne, %1, %c0_i32_0 : i32
    scf.if %2 {
      %cst_10 = arith.constant 0.000000e+00 : f32
      %12 = vector.broadcast %cst_10 : f32 to vector<16x128xf32>
      %c0_11 = arith.constant 0 : index
      %c0_12 = arith.constant 0 : index
      %13 = vector.load %arg7[%c0_11, %c0_12] : memref<16x128xf32, #tpu.memory_space<vmem>>, vector<16x128xf32>
      tpu.vector_store %arg7[%c0_11, %c0_12], %12 {strides = array<i32>} : memref<16x128xf32, #tpu.memory_space<vmem>>, vector<16x128xf32>,
    } else {
    }
    %c0 = arith.constant 0 : index
    %c0_1 = arith.constant 0 : index
    %3 = vector.load %arg7[%c0, %c0_1] : memref<16x128xf32, #tpu.memory_space<vmem>>, vector<16x128xf32>
    %c0_2 = arith.constant 0 : index
    %c0_3 = arith.constant 0 : index
    %4 = vector.load %arg2[%c0_2, %c0_3] : memref<16x256xbf16, #tpu.memory_space<vmem>>, vector<16x256xbf16>
    %c0_4 = arith.constant 0 : index
    %c0_5 = arith.constant 0 : index
    %5 = vector.load %arg3[%c0_4, %c0_5] : memref<256x128xbf16, #tpu.memory_space<vmem>>, vector<256x128xbf16>
    %cst = arith.constant dense<0.000000e+00> : vector<16x128xf32>
    %6 = tpu.matmul %4, %5, %cst {dimension_numbers = #tpu.dot_dimension_numbers<[1], [0], [0], [1], [0, 0, 1, 1], [], []>} : vector<16x256xbf16>, vector<256x128xbf16>, vector<16x128xf32> -> vector<16x128xf32>
    %7 = arith.addf %3, %6 : vector<16x128xf32>
    %c0_6 = arith.constant 0 : index
    %c0_7 = arith.constant 0 : index
    %8 = vector.load %arg7[%c0_6, %c0_7] : memref<16x128xf32, #tpu.memory_space<vmem>>, vector<16x128xf32>
    tpu.vector_store %arg7[%c0_6, %c0_7], %7 {strides = array<i32>} : memref<16x128xf32, #tpu.memory_space<vmem>>, vector<16x128xf32>,
    %c0_i32_8 = arith.constant 0 : i32
    %9 = arith.cmpi eq, %arg1, %c0_i32_8 : i32
    %10 = arith.extui %9 : i1 to i32
    %c0_i32_9 = arith.constant 0 : i32
    %11 = arith.cmpi ne, %10, %c0_i32_9 : i32
    scf.if %11 {
      %c0_10 = arith.constant 0 : index
      %c0_11 = arith.constant 0 : index
      %12 = vector.load %arg7[%c0_10, %c0_11] : memref<16x128xf32, #tpu.memory_space<vmem>>, vector<16x128xf32>
      %13 = arith.truncf %12 : vector<16x128xf32> to vector<16x128xbf16>
      %c0_12 = arith.constant 0 : index
      %c0_13 = arith.constant 0 : index
      %14 = vector.load %arg4[%c0_12, %c0_13] : memref<16x128xbf16, #tpu.memory_space<vmem>>, vector<16x128xbf16>
      tpu.vector_store %arg4[%c0_12, %c0_13], %13 {strides = array<i32>} : memref<16x128xbf16, #tpu.memory_space<vmem>>, vector<16x128xbf16>,
      %cst_14 = arith.constant dense<0.000000e+00> : vector<16xf32>
      %15 = vector.multi_reduction <add>, %12, %cst_14 [1] : vector<16x128xf32> to vector<16xf32>
      %16 = vector.shape_cast %15 : vector<16xf32> to vector<16x1xf32>
      %c0_15 = arith.constant 0 : index
      %c0_16 = arith.constant 0 : index
      %c0_17 = arith.constant 0 : index
      %17 = vector.load %arg5[%c0_15, %c0_16, %c0_17] : memref<1x16x1xf32, #tpu.memory_space<vmem>>, vector<1x16x1xf32>
      %18 = vector.shape_cast %17 : vector<1x16x1xf32> to vector<16x1xf32>
      %19 = vector.shape_cast %16 : vector<16x1xf32> to vector<1x16x1xf32>
      tpu.vector_store %arg5[%c0_15, %c0_16, %c0_17], %19 {strides = array<i32>} : memref<1x16x1xf32, #tpu.memory_space<vmem>>, vector<1x16x1xf32>,
      %20 = arith.mulf %12, %12 : vector<16x128xf32>
      %cst_18 = arith.constant dense<0.000000e+00> : vector<16xf32>
      %21 = vector.multi_reduction <add>, %20, %cst_18 [1] : vector<16x128xf32> to vector<16xf32>
      %22 = vector.shape_cast %21 : vector<16xf32> to vector<16x1xf32>
      %c0_19 = arith.constant 0 : index
      %c0_20 = arith.constant 0 : index
      %c0_21 = arith.constant 0 : index
      %23 = vector.load %arg6[%c0_19, %c0_20, %c0_21] : memref<1x16x1xf32, #tpu.memory_space<vmem>>, vector<1x16x1xf32>
      %24 = vector.shape_cast %23 : vector<1x16x1xf32> to vector<16x1xf32>
      %25 = vector.shape_cast %22 : vector<16x1xf32> to vector<1x16x1xf32>
      tpu.vector_store %arg6[%c0_19, %c0_20, %c0_21], %25 {strides = array<i32>} : memref<1x16x1xf32, #tpu.memory_space<vmem>>, vector<1x16x1xf32>,
    } else {
    }
    return
  }
  func.func @transform_0(%arg0: i32, %arg1: i32) -> (i32, i32) {
    %c0_i32 = arith.constant 0 : i32
    %c0_i32_0 = arith.constant 0 : i32
    return %c0_i32, %arg1 : i32, i32
  }
  func.func @transform_1(%arg0: i32, %arg1: i32) -> (i32, i32) {
    %c0_i32 = arith.constant 0 : i32
    return %arg1, %arg0 : i32, i32
  }
  func.func @transform_2(%arg0: i32, %arg1: i32) -> (i32, i32) {
    %c0_i32 = arith.constant 0 : i32
    %c0_i32_0 = arith.constant 0 : i32
    return %c0_i32, %arg0 : i32, i32
  }
  func.func @transform_3(%arg0: i32, %arg1: i32) -> (i32, i32, i32) {
    %c0_i32 = arith.constant 0 : i32
    %c0_i32_0 = arith.constant 0 : i32
    %c0_i32_1 = arith.constant 0 : i32
    return %arg0, %c0_i32, %c0_i32_0 : i32, i32, i32
  }
  func.func @transform_4(%arg0: i32, %arg1: i32) -> (i32, i32, i32) {
    %c0_i32 = arith.constant 0 : i32
    %c0_i32_0 = arith.constant 0 : i32
    %c0_i32_1 = arith.constant 0 : i32
    return %arg0, %c0_i32, %c0_i32_0 : i32, i32, i32
  }
}

module attributes {stable_mosaic.version = 11 : i64} {
  func.func @_mm_stats_kernel(%arg0: i32, %arg1: i32, %arg2: memref<8x32xbf16, #tpu.memory_space<vmem>>, %arg3: memref<32x128xbf16, #tpu.memory_space<vmem>>, %arg4: memref<8x128xbf16, #tpu.memory_space<vmem>>, %arg5: memref<1x8x1xf32, #tpu.memory_space<vmem>>, %arg6: memref<1x8x1xf32, #tpu.memory_space<vmem>>, %arg7: memref<8x128xf32, #tpu.memory_space<vmem>>) attributes {dimension_semantics = [#tpu.dimension_semantics<parallel>, #tpu.dimension_semantics<arbitrary>], iteration_bounds = array<i64: 1, 1>, scalar_prefetch = 0 : i64, scratch_operands = 1 : i64, tpu.core_type = #tpu.core_type<tc>, window_params = [{transform_indices = @transform_0, window_bounds = array<i64: 8, 32>}, {transform_indices = @transform_1, window_bounds = array<i64: 32, 128>}, {transform_indices = @transform_2, window_bounds = array<i64: 8, 128>}, {transform_indices = @transform_3, window_bounds = array<i64: 1, 8, 1>}, {transform_indices = @transform_4, window_bounds = array<i64: 1, 8, 1>}]} {
    %c0_i32 = arith.constant 0 : i32
    %0 = arith.cmpi eq, %arg1, %c0_i32 : i32
    %1 = arith.extui %0 : i1 to i32
    %c0_i32_0 = arith.constant 0 : i32
    %2 = arith.cmpi ne, %1, %c0_i32_0 : i32
    scf.if %2 {
      %cst_10 = arith.constant 0.000000e+00 : f32
      %12 = vector.broadcast %cst_10 : f32 to vector<8x128xf32>
      %c0_11 = arith.constant 0 : index
      %c0_12 = arith.constant 0 : index
      %13 = vector.load %arg7[%c0_11, %c0_12] : memref<8x128xf32, #tpu.memory_space<vmem>>, vector<8x128xf32>
      tpu.vector_store %arg7[%c0_11, %c0_12], %12 {strides = array<i32>} : memref<8x128xf32, #tpu.memory_space<vmem>>, vector<8x128xf32>,
    } else {
    }
    %c0 = arith.constant 0 : index
    %c0_1 = arith.constant 0 : index
    %3 = vector.load %arg7[%c0, %c0_1] : memref<8x128xf32, #tpu.memory_space<vmem>>, vector<8x128xf32>
    %c0_2 = arith.constant 0 : index
    %c0_3 = arith.constant 0 : index
    %4 = vector.load %arg2[%c0_2, %c0_3] : memref<8x32xbf16, #tpu.memory_space<vmem>>, vector<8x32xbf16>
    %c0_4 = arith.constant 0 : index
    %c0_5 = arith.constant 0 : index
    %5 = vector.load %arg3[%c0_4, %c0_5] : memref<32x128xbf16, #tpu.memory_space<vmem>>, vector<32x128xbf16>
    %cst = arith.constant dense<0.000000e+00> : vector<8x128xf32>
    %6 = tpu.matmul %4, %5, %cst {dimension_numbers = #tpu.dot_dimension_numbers<[1], [0], [0], [1], [0, 0, 1, 1], [], []>} : vector<8x32xbf16>, vector<32x128xbf16>, vector<8x128xf32> -> vector<8x128xf32>
    %7 = arith.addf %3, %6 : vector<8x128xf32>
    %c0_6 = arith.constant 0 : index
    %c0_7 = arith.constant 0 : index
    %8 = vector.load %arg7[%c0_6, %c0_7] : memref<8x128xf32, #tpu.memory_space<vmem>>, vector<8x128xf32>
    tpu.vector_store %arg7[%c0_6, %c0_7], %7 {strides = array<i32>} : memref<8x128xf32, #tpu.memory_space<vmem>>, vector<8x128xf32>,
    %c0_i32_8 = arith.constant 0 : i32
    %9 = arith.cmpi eq, %arg1, %c0_i32_8 : i32
    %10 = arith.extui %9 : i1 to i32
    %c0_i32_9 = arith.constant 0 : i32
    %11 = arith.cmpi ne, %10, %c0_i32_9 : i32
    scf.if %11 {
      %c0_10 = arith.constant 0 : index
      %c0_11 = arith.constant 0 : index
      %12 = vector.load %arg7[%c0_10, %c0_11] : memref<8x128xf32, #tpu.memory_space<vmem>>, vector<8x128xf32>
      %13 = arith.truncf %12 : vector<8x128xf32> to vector<8x128xbf16>
      %c0_12 = arith.constant 0 : index
      %c0_13 = arith.constant 0 : index
      %14 = vector.load %arg4[%c0_12, %c0_13] : memref<8x128xbf16, #tpu.memory_space<vmem>>, vector<8x128xbf16>
      tpu.vector_store %arg4[%c0_12, %c0_13], %13 {strides = array<i32>} : memref<8x128xbf16, #tpu.memory_space<vmem>>, vector<8x128xbf16>,
      %cst_14 = arith.constant dense<0.000000e+00> : vector<8xf32>
      %15 = vector.multi_reduction <add>, %12, %cst_14 [1] : vector<8x128xf32> to vector<8xf32>
      %16 = vector.shape_cast %15 : vector<8xf32> to vector<8x1xf32>
      %c0_15 = arith.constant 0 : index
      %c0_16 = arith.constant 0 : index
      %c0_17 = arith.constant 0 : index
      %17 = vector.load %arg5[%c0_15, %c0_16, %c0_17] : memref<1x8x1xf32, #tpu.memory_space<vmem>>, vector<1x8x1xf32>
      %18 = vector.shape_cast %17 : vector<1x8x1xf32> to vector<8x1xf32>
      %19 = vector.shape_cast %16 : vector<8x1xf32> to vector<1x8x1xf32>
      tpu.vector_store %arg5[%c0_15, %c0_16, %c0_17], %19 {strides = array<i32>} : memref<1x8x1xf32, #tpu.memory_space<vmem>>, vector<1x8x1xf32>,
      %20 = arith.mulf %12, %12 : vector<8x128xf32>
      %cst_18 = arith.constant dense<0.000000e+00> : vector<8xf32>
      %21 = vector.multi_reduction <add>, %20, %cst_18 [1] : vector<8x128xf32> to vector<8xf32>
      %22 = vector.shape_cast %21 : vector<8xf32> to vector<8x1xf32>
      %c0_19 = arith.constant 0 : index
      %c0_20 = arith.constant 0 : index
      %c0_21 = arith.constant 0 : index
      %23 = vector.load %arg6[%c0_19, %c0_20, %c0_21] : memref<1x8x1xf32, #tpu.memory_space<vmem>>, vector<1x8x1xf32>
      %24 = vector.shape_cast %23 : vector<1x8x1xf32> to vector<8x1xf32>
      %25 = vector.shape_cast %22 : vector<8x1xf32> to vector<1x8x1xf32>
      tpu.vector_store %arg6[%c0_19, %c0_20, %c0_21], %25 {strides = array<i32>} : memref<1x8x1xf32, #tpu.memory_space<vmem>>, vector<1x8x1xf32>,
    } else {
    }
    return
  }
  func.func @transform_0(%arg0: i32, %arg1: i32) -> (i32, i32) {
    %c0_i32 = arith.constant 0 : i32
    %c0_i32_0 = arith.constant 0 : i32
    return %c0_i32, %arg1 : i32, i32
  }
  func.func @transform_1(%arg0: i32, %arg1: i32) -> (i32, i32) {
    %c0_i32 = arith.constant 0 : i32
    return %arg1, %arg0 : i32, i32
  }
  func.func @transform_2(%arg0: i32, %arg1: i32) -> (i32, i32) {
    %c0_i32 = arith.constant 0 : i32
    %c0_i32_0 = arith.constant 0 : i32
    return %c0_i32, %arg0 : i32, i32
  }
  func.func @transform_3(%arg0: i32, %arg1: i32) -> (i32, i32, i32) {
    %c0_i32 = arith.constant 0 : i32
    %c0_i32_0 = arith.constant 0 : i32
    %c0_i32_1 = arith.constant 0 : i32
    return %arg0, %c0_i32, %c0_i32_0 : i32, i32, i32
  }
  func.func @transform_4(%arg0: i32, %arg1: i32) -> (i32, i32, i32) {
    %c0_i32 = arith.constant 0 : i32
    %c0_i32_0 = arith.constant 0 : i32
    %c0_i32_1 = arith.constant 0 : i32
    return %arg0, %c0_i32, %c0_i32_0 : i32, i32, i32
  }
}

module attributes {stable_mosaic.version = 11 : i64} {
  func.func @_mm_stats_kernel(%arg0: i32, %arg1: i32, %arg2: memref<8x64xbf16, #tpu.memory_space<vmem>>, %arg3: memref<64x128xbf16, #tpu.memory_space<vmem>>, %arg4: memref<8x128xbf16, #tpu.memory_space<vmem>>, %arg5: memref<1x8x1xf32, #tpu.memory_space<vmem>>, %arg6: memref<1x8x1xf32, #tpu.memory_space<vmem>>, %arg7: memref<8x128xf32, #tpu.memory_space<vmem>>) attributes {dimension_semantics = [#tpu.dimension_semantics<parallel>, #tpu.dimension_semantics<arbitrary>], iteration_bounds = array<i64: 1, 1>, scalar_prefetch = 0 : i64, scratch_operands = 1 : i64, tpu.core_type = #tpu.core_type<tc>, window_params = [{transform_indices = @transform_0, window_bounds = array<i64: 8, 64>}, {transform_indices = @transform_1, window_bounds = array<i64: 64, 128>}, {transform_indices = @transform_2, window_bounds = array<i64: 8, 128>}, {transform_indices = @transform_3, window_bounds = array<i64: 1, 8, 1>}, {transform_indices = @transform_4, window_bounds = array<i64: 1, 8, 1>}]} {
    %c0_i32 = arith.constant 0 : i32
    %0 = arith.cmpi eq, %arg1, %c0_i32 : i32
    %1 = arith.extui %0 : i1 to i32
    %c0_i32_0 = arith.constant 0 : i32
    %2 = arith.cmpi ne, %1, %c0_i32_0 : i32
    scf.if %2 {
      %cst_10 = arith.constant 0.000000e+00 : f32
      %12 = vector.broadcast %cst_10 : f32 to vector<8x128xf32>
      %c0_11 = arith.constant 0 : index
      %c0_12 = arith.constant 0 : index
      %13 = vector.load %arg7[%c0_11, %c0_12] : memref<8x128xf32, #tpu.memory_space<vmem>>, vector<8x128xf32>
      tpu.vector_store %arg7[%c0_11, %c0_12], %12 {strides = array<i32>} : memref<8x128xf32, #tpu.memory_space<vmem>>, vector<8x128xf32>,
    } else {
    }
    %c0 = arith.constant 0 : index
    %c0_1 = arith.constant 0 : index
    %3 = vector.load %arg7[%c0, %c0_1] : memref<8x128xf32, #tpu.memory_space<vmem>>, vector<8x128xf32>
    %c0_2 = arith.constant 0 : index
    %c0_3 = arith.constant 0 : index
    %4 = vector.load %arg2[%c0_2, %c0_3] : memref<8x64xbf16, #tpu.memory_space<vmem>>, vector<8x64xbf16>
    %c0_4 = arith.constant 0 : index
    %c0_5 = arith.constant 0 : index
    %5 = vector.load %arg3[%c0_4, %c0_5] : memref<64x128xbf16, #tpu.memory_space<vmem>>, vector<64x128xbf16>
    %cst = arith.constant dense<0.000000e+00> : vector<8x128xf32>
    %6 = tpu.matmul %4, %5, %cst {dimension_numbers = #tpu.dot_dimension_numbers<[1], [0], [0], [1], [0, 0, 1, 1], [], []>} : vector<8x64xbf16>, vector<64x128xbf16>, vector<8x128xf32> -> vector<8x128xf32>
    %7 = arith.addf %3, %6 : vector<8x128xf32>
    %c0_6 = arith.constant 0 : index
    %c0_7 = arith.constant 0 : index
    %8 = vector.load %arg7[%c0_6, %c0_7] : memref<8x128xf32, #tpu.memory_space<vmem>>, vector<8x128xf32>
    tpu.vector_store %arg7[%c0_6, %c0_7], %7 {strides = array<i32>} : memref<8x128xf32, #tpu.memory_space<vmem>>, vector<8x128xf32>,
    %c0_i32_8 = arith.constant 0 : i32
    %9 = arith.cmpi eq, %arg1, %c0_i32_8 : i32
    %10 = arith.extui %9 : i1 to i32
    %c0_i32_9 = arith.constant 0 : i32
    %11 = arith.cmpi ne, %10, %c0_i32_9 : i32
    scf.if %11 {
      %c0_10 = arith.constant 0 : index
      %c0_11 = arith.constant 0 : index
      %12 = vector.load %arg7[%c0_10, %c0_11] : memref<8x128xf32, #tpu.memory_space<vmem>>, vector<8x128xf32>
      %13 = arith.truncf %12 : vector<8x128xf32> to vector<8x128xbf16>
      %c0_12 = arith.constant 0 : index
      %c0_13 = arith.constant 0 : index
      %14 = vector.load %arg4[%c0_12, %c0_13] : memref<8x128xbf16, #tpu.memory_space<vmem>>, vector<8x128xbf16>
      tpu.vector_store %arg4[%c0_12, %c0_13], %13 {strides = array<i32>} : memref<8x128xbf16, #tpu.memory_space<vmem>>, vector<8x128xbf16>,
      %cst_14 = arith.constant dense<0.000000e+00> : vector<8xf32>
      %15 = vector.multi_reduction <add>, %12, %cst_14 [1] : vector<8x128xf32> to vector<8xf32>
      %16 = vector.shape_cast %15 : vector<8xf32> to vector<8x1xf32>
      %c0_15 = arith.constant 0 : index
      %c0_16 = arith.constant 0 : index
      %c0_17 = arith.constant 0 : index
      %17 = vector.load %arg5[%c0_15, %c0_16, %c0_17] : memref<1x8x1xf32, #tpu.memory_space<vmem>>, vector<1x8x1xf32>
      %18 = vector.shape_cast %17 : vector<1x8x1xf32> to vector<8x1xf32>
      %19 = vector.shape_cast %16 : vector<8x1xf32> to vector<1x8x1xf32>
      tpu.vector_store %arg5[%c0_15, %c0_16, %c0_17], %19 {strides = array<i32>} : memref<1x8x1xf32, #tpu.memory_space<vmem>>, vector<1x8x1xf32>,
      %20 = arith.mulf %12, %12 : vector<8x128xf32>
      %cst_18 = arith.constant dense<0.000000e+00> : vector<8xf32>
      %21 = vector.multi_reduction <add>, %20, %cst_18 [1] : vector<8x128xf32> to vector<8xf32>
      %22 = vector.shape_cast %21 : vector<8xf32> to vector<8x1xf32>
      %c0_19 = arith.constant 0 : index
      %c0_20 = arith.constant 0 : index
      %c0_21 = arith.constant 0 : index
      %23 = vector.load %arg6[%c0_19, %c0_20, %c0_21] : memref<1x8x1xf32, #tpu.memory_space<vmem>>, vector<1x8x1xf32>
      %24 = vector.shape_cast %23 : vector<1x8x1xf32> to vector<8x1xf32>
      %25 = vector.shape_cast %22 : vector<8x1xf32> to vector<1x8x1xf32>
      tpu.vector_store %arg6[%c0_19, %c0_20, %c0_21], %25 {strides = array<i32>} : memref<1x8x1xf32, #tpu.memory_space<vmem>>, vector<1x8x1xf32>,
    } else {
    }
    return
  }
  func.func @transform_0(%arg0: i32, %arg1: i32) -> (i32, i32) {
    %c0_i32 = arith.constant 0 : i32
    %c0_i32_0 = arith.constant 0 : i32
    return %c0_i32, %arg1 : i32, i32
  }
  func.func @transform_1(%arg0: i32, %arg1: i32) -> (i32, i32) {
    %c0_i32 = arith.constant 0 : i32
    return %arg1, %arg0 : i32, i32
  }
  func.func @transform_2(%arg0: i32, %arg1: i32) -> (i32, i32) {
    %c0_i32 = arith.constant 0 : i32
    %c0_i32_0 = arith.constant 0 : i32
    return %c0_i32, %arg0 : i32, i32
  }
  func.func @transform_3(%arg0: i32, %arg1: i32) -> (i32, i32, i32) {
    %c0_i32 = arith.constant 0 : i32
    %c0_i32_0 = arith.constant 0 : i32
    %c0_i32_1 = arith.constant 0 : i32
    return %arg0, %c0_i32, %c0_i32_0 : i32, i32, i32
  }
  func.func @transform_4(%arg0: i32, %arg1: i32) -> (i32, i32, i32) {
    %c0_i32 = arith.constant 0 : i32
    %c0_i32_0 = arith.constant 0 : i32
    %c0_i32_1 = arith.constant 0 : i32
    return %arg0, %c0_i32, %c0_i32_0 : i32, i32, i32
  }
}

module attributes {stable_mosaic.version = 11 : i64} {
  func.func @_mm_stats_kernel(%arg0: i32, %arg1: i32, %arg2: memref<8x128xbf16, #tpu.memory_space<vmem>>, %arg3: memref<128x128xbf16, #tpu.memory_space<vmem>>, %arg4: memref<8x128xbf16, #tpu.memory_space<vmem>>, %arg5: memref<1x8x1xf32, #tpu.memory_space<vmem>>, %arg6: memref<1x8x1xf32, #tpu.memory_space<vmem>>, %arg7: memref<8x128xf32, #tpu.memory_space<vmem>>) attributes {dimension_semantics = [#tpu.dimension_semantics<parallel>, #tpu.dimension_semantics<arbitrary>], iteration_bounds = array<i64: 1, 1>, scalar_prefetch = 0 : i64, scratch_operands = 1 : i64, tpu.core_type = #tpu.core_type<tc>, window_params = [{transform_indices = @transform_0, window_bounds = array<i64: 8, 128>}, {transform_indices = @transform_1, window_bounds = array<i64: 128, 128>}, {transform_indices = @transform_2, window_bounds = array<i64: 8, 128>}, {transform_indices = @transform_3, window_bounds = array<i64: 1, 8, 1>}, {transform_indices = @transform_4, window_bounds = array<i64: 1, 8, 1>}]} {
    %c0_i32 = arith.constant 0 : i32
    %0 = arith.cmpi eq, %arg1, %c0_i32 : i32
    %1 = arith.extui %0 : i1 to i32
    %c0_i32_0 = arith.constant 0 : i32
    %2 = arith.cmpi ne, %1, %c0_i32_0 : i32
    scf.if %2 {
      %cst_10 = arith.constant 0.000000e+00 : f32
      %12 = vector.broadcast %cst_10 : f32 to vector<8x128xf32>
      %c0_11 = arith.constant 0 : index
      %c0_12 = arith.constant 0 : index
      %13 = vector.load %arg7[%c0_11, %c0_12] : memref<8x128xf32, #tpu.memory_space<vmem>>, vector<8x128xf32>
      tpu.vector_store %arg7[%c0_11, %c0_12], %12 {strides = array<i32>} : memref<8x128xf32, #tpu.memory_space<vmem>>, vector<8x128xf32>,
    } else {
    }
    %c0 = arith.constant 0 : index
    %c0_1 = arith.constant 0 : index
    %3 = vector.load %arg7[%c0, %c0_1] : memref<8x128xf32, #tpu.memory_space<vmem>>, vector<8x128xf32>
    %c0_2 = arith.constant 0 : index
    %c0_3 = arith.constant 0 : index
    %4 = vector.load %arg2[%c0_2, %c0_3] : memref<8x128xbf16, #tpu.memory_space<vmem>>, vector<8x128xbf16>
    %c0_4 = arith.constant 0 : index
    %c0_5 = arith.constant 0 : index
    %5 = vector.load %arg3[%c0_4, %c0_5] : memref<128x128xbf16, #tpu.memory_space<vmem>>, vector<128x128xbf16>
    %cst = arith.constant dense<0.000000e+00> : vector<8x128xf32>
    %6 = tpu.matmul %4, %5, %cst {dimension_numbers = #tpu.dot_dimension_numbers<[1], [0], [0], [1], [0, 0, 1, 1], [], []>} : vector<8x128xbf16>, vector<128x128xbf16>, vector<8x128xf32> -> vector<8x128xf32>
    %7 = arith.addf %3, %6 : vector<8x128xf32>
    %c0_6 = arith.constant 0 : index
    %c0_7 = arith.constant 0 : index
    %8 = vector.load %arg7[%c0_6, %c0_7] : memref<8x128xf32, #tpu.memory_space<vmem>>, vector<8x128xf32>
    tpu.vector_store %arg7[%c0_6, %c0_7], %7 {strides = array<i32>} : memref<8x128xf32, #tpu.memory_space<vmem>>, vector<8x128xf32>,
    %c0_i32_8 = arith.constant 0 : i32
    %9 = arith.cmpi eq, %arg1, %c0_i32_8 : i32
    %10 = arith.extui %9 : i1 to i32
    %c0_i32_9 = arith.constant 0 : i32
    %11 = arith.cmpi ne, %10, %c0_i32_9 : i32
    scf.if %11 {
      %c0_10 = arith.constant 0 : index
      %c0_11 = arith.constant 0 : index
      %12 = vector.load %arg7[%c0_10, %c0_11] : memref<8x128xf32, #tpu.memory_space<vmem>>, vector<8x128xf32>
      %13 = arith.truncf %12 : vector<8x128xf32> to vector<8x128xbf16>
      %c0_12 = arith.constant 0 : index
      %c0_13 = arith.constant 0 : index
      %14 = vector.load %arg4[%c0_12, %c0_13] : memref<8x128xbf16, #tpu.memory_space<vmem>>, vector<8x128xbf16>
      tpu.vector_store %arg4[%c0_12, %c0_13], %13 {strides = array<i32>} : memref<8x128xbf16, #tpu.memory_space<vmem>>, vector<8x128xbf16>,
      %cst_14 = arith.constant dense<0.000000e+00> : vector<8xf32>
      %15 = vector.multi_reduction <add>, %12, %cst_14 [1] : vector<8x128xf32> to vector<8xf32>
      %16 = vector.shape_cast %15 : vector<8xf32> to vector<8x1xf32>
      %c0_15 = arith.constant 0 : index
      %c0_16 = arith.constant 0 : index
      %c0_17 = arith.constant 0 : index
      %17 = vector.load %arg5[%c0_15, %c0_16, %c0_17] : memref<1x8x1xf32, #tpu.memory_space<vmem>>, vector<1x8x1xf32>
      %18 = vector.shape_cast %17 : vector<1x8x1xf32> to vector<8x1xf32>
      %19 = vector.shape_cast %16 : vector<8x1xf32> to vector<1x8x1xf32>
      tpu.vector_store %arg5[%c0_15, %c0_16, %c0_17], %19 {strides = array<i32>} : memref<1x8x1xf32, #tpu.memory_space<vmem>>, vector<1x8x1xf32>,
      %20 = arith.mulf %12, %12 : vector<8x128xf32>
      %cst_18 = arith.constant dense<0.000000e+00> : vector<8xf32>
      %21 = vector.multi_reduction <add>, %20, %cst_18 [1] : vector<8x128xf32> to vector<8xf32>
      %22 = vector.shape_cast %21 : vector<8xf32> to vector<8x1xf32>
      %c0_19 = arith.constant 0 : index
      %c0_20 = arith.constant 0 : index
      %c0_21 = arith.constant 0 : index
      %23 = vector.load %arg6[%c0_19, %c0_20, %c0_21] : memref<1x8x1xf32, #tpu.memory_space<vmem>>, vector<1x8x1xf32>
      %24 = vector.shape_cast %23 : vector<1x8x1xf32> to vector<8x1xf32>
      %25 = vector.shape_cast %22 : vector<8x1xf32> to vector<1x8x1xf32>
      tpu.vector_store %arg6[%c0_19, %c0_20, %c0_21], %25 {strides = array<i32>} : memref<1x8x1xf32, #tpu.memory_space<vmem>>, vector<1x8x1xf32>,
    } else {
    }
    return
  }
  func.func @transform_0(%arg0: i32, %arg1: i32) -> (i32, i32) {
    %c0_i32 = arith.constant 0 : i32
    %c0_i32_0 = arith.constant 0 : i32
    return %c0_i32, %arg1 : i32, i32
  }
  func.func @transform_1(%arg0: i32, %arg1: i32) -> (i32, i32) {
    %c0_i32 = arith.constant 0 : i32
    return %arg1, %arg0 : i32, i32
  }
  func.func @transform_2(%arg0: i32, %arg1: i32) -> (i32, i32) {
    %c0_i32 = arith.constant 0 : i32
    %c0_i32_0 = arith.constant 0 : i32
    return %c0_i32, %arg0 : i32, i32
  }
  func.func @transform_3(%arg0: i32, %arg1: i32) -> (i32, i32, i32) {
    %c0_i32 = arith.constant 0 : i32
    %c0_i32_0 = arith.constant 0 : i32
    %c0_i32_1 = arith.constant 0 : i32
    return %arg0, %c0_i32, %c0_i32_0 : i32, i32, i32
  }
  func.func @transform_4(%arg0: i32, %arg1: i32) -> (i32, i32, i32) {
    %c0_i32 = arith.constant 0 : i32
    %c0_i32_0 = arith.constant 0 : i32
    %c0_i32_1 = arith.constant 0 : i32
    return %arg0, %c0_i32, %c0_i32_0 : i32, i32, i32
  }
}

module attributes {stable_mosaic.version = 11 : i64} {
  func.func @_mm_stats_kernel(%arg0: i32, %arg1: i32, %arg2: memref<8x16xbf16, #tpu.memory_space<vmem>>, %arg3: memref<16x128xbf16, #tpu.memory_space<vmem>>, %arg4: memref<8x128xbf16, #tpu.memory_space<vmem>>, %arg5: memref<1x8x1xf32, #tpu.memory_space<vmem>>, %arg6: memref<1x8x1xf32, #tpu.memory_space<vmem>>, %arg7: memref<8x128xf32, #tpu.memory_space<vmem>>) attributes {dimension_semantics = [#tpu.dimension_semantics<parallel>, #tpu.dimension_semantics<arbitrary>], iteration_bounds = array<i64: 1, 1>, scalar_prefetch = 0 : i64, scratch_operands = 1 : i64, tpu.core_type = #tpu.core_type<tc>, window_params = [{transform_indices = @transform_0, window_bounds = array<i64: 8, 16>}, {transform_indices = @transform_1, window_bounds = array<i64: 16, 128>}, {transform_indices = @transform_2, window_bounds = array<i64: 8, 128>}, {transform_indices = @transform_3, window_bounds = array<i64: 1, 8, 1>}, {transform_indices = @transform_4, window_bounds = array<i64: 1, 8, 1>}]} {
    %c0_i32 = arith.constant 0 : i32
    %0 = arith.cmpi eq, %arg1, %c0_i32 : i32
    %1 = arith.extui %0 : i1 to i32
    %c0_i32_0 = arith.constant 0 : i32
    %2 = arith.cmpi ne, %1, %c0_i32_0 : i32
    scf.if %2 {
      %cst_10 = arith.constant 0.000000e+00 : f32
      %12 = vector.broadcast %cst_10 : f32 to vector<8x128xf32>
      %c0_11 = arith.constant 0 : index
      %c0_12 = arith.constant 0 : index
      %13 = vector.load %arg7[%c0_11, %c0_12] : memref<8x128xf32, #tpu.memory_space<vmem>>, vector<8x128xf32>
      tpu.vector_store %arg7[%c0_11, %c0_12], %12 {strides = array<i32>} : memref<8x128xf32, #tpu.memory_space<vmem>>, vector<8x128xf32>,
    } else {
    }
    %c0 = arith.constant 0 : index
    %c0_1 = arith.constant 0 : index
    %3 = vector.load %arg7[%c0, %c0_1] : memref<8x128xf32, #tpu.memory_space<vmem>>, vector<8x128xf32>
    %c0_2 = arith.constant 0 : index
    %c0_3 = arith.constant 0 : index
    %4 = vector.load %arg2[%c0_2, %c0_3] : memref<8x16xbf16, #tpu.memory_space<vmem>>, vector<8x16xbf16>
    %c0_4 = arith.constant 0 : index
    %c0_5 = arith.constant 0 : index
    %5 = vector.load %arg3[%c0_4, %c0_5] : memref<16x128xbf16, #tpu.memory_space<vmem>>, vector<16x128xbf16>
    %cst = arith.constant dense<0.000000e+00> : vector<8x128xf32>
    %6 = tpu.matmul %4, %5, %cst {dimension_numbers = #tpu.dot_dimension_numbers<[1], [0], [0], [1], [0, 0, 1, 1], [], []>} : vector<8x16xbf16>, vector<16x128xbf16>, vector<8x128xf32> -> vector<8x128xf32>
    %7 = arith.addf %3, %6 : vector<8x128xf32>
    %c0_6 = arith.constant 0 : index
    %c0_7 = arith.constant 0 : index
    %8 = vector.load %arg7[%c0_6, %c0_7] : memref<8x128xf32, #tpu.memory_space<vmem>>, vector<8x128xf32>
    tpu.vector_store %arg7[%c0_6, %c0_7], %7 {strides = array<i32>} : memref<8x128xf32, #tpu.memory_space<vmem>>, vector<8x128xf32>,
    %c0_i32_8 = arith.constant 0 : i32
    %9 = arith.cmpi eq, %arg1, %c0_i32_8 : i32
    %10 = arith.extui %9 : i1 to i32
    %c0_i32_9 = arith.constant 0 : i32
    %11 = arith.cmpi ne, %10, %c0_i32_9 : i32
    scf.if %11 {
      %c0_10 = arith.constant 0 : index
      %c0_11 = arith.constant 0 : index
      %12 = vector.load %arg7[%c0_10, %c0_11] : memref<8x128xf32, #tpu.memory_space<vmem>>, vector<8x128xf32>
      %13 = arith.truncf %12 : vector<8x128xf32> to vector<8x128xbf16>
      %c0_12 = arith.constant 0 : index
      %c0_13 = arith.constant 0 : index
      %14 = vector.load %arg4[%c0_12, %c0_13] : memref<8x128xbf16, #tpu.memory_space<vmem>>, vector<8x128xbf16>
      tpu.vector_store %arg4[%c0_12, %c0_13], %13 {strides = array<i32>} : memref<8x128xbf16, #tpu.memory_space<vmem>>, vector<8x128xbf16>,
      %cst_14 = arith.constant dense<0.000000e+00> : vector<8xf32>
      %15 = vector.multi_reduction <add>, %12, %cst_14 [1] : vector<8x128xf32> to vector<8xf32>
      %16 = vector.shape_cast %15 : vector<8xf32> to vector<8x1xf32>
      %c0_15 = arith.constant 0 : index
      %c0_16 = arith.constant 0 : index
      %c0_17 = arith.constant 0 : index
      %17 = vector.load %arg5[%c0_15, %c0_16, %c0_17] : memref<1x8x1xf32, #tpu.memory_space<vmem>>, vector<1x8x1xf32>
      %18 = vector.shape_cast %17 : vector<1x8x1xf32> to vector<8x1xf32>
      %19 = vector.shape_cast %16 : vector<8x1xf32> to vector<1x8x1xf32>
      tpu.vector_store %arg5[%c0_15, %c0_16, %c0_17], %19 {strides = array<i32>} : memref<1x8x1xf32, #tpu.memory_space<vmem>>, vector<1x8x1xf32>,
      %20 = arith.mulf %12, %12 : vector<8x128xf32>
      %cst_18 = arith.constant dense<0.000000e+00> : vector<8xf32>
      %21 = vector.multi_reduction <add>, %20, %cst_18 [1] : vector<8x128xf32> to vector<8xf32>
      %22 = vector.shape_cast %21 : vector<8xf32> to vector<8x1xf32>
      %c0_19 = arith.constant 0 : index
      %c0_20 = arith.constant 0 : index
      %c0_21 = arith.constant 0 : index
      %23 = vector.load %arg6[%c0_19, %c0_20, %c0_21] : memref<1x8x1xf32, #tpu.memory_space<vmem>>, vector<1x8x1xf32>
      %24 = vector.shape_cast %23 : vector<1x8x1xf32> to vector<8x1xf32>
      %25 = vector.shape_cast %22 : vector<8x1xf32> to vector<1x8x1xf32>
      tpu.vector_store %arg6[%c0_19, %c0_20, %c0_21], %25 {strides = array<i32>} : memref<1x8x1xf32, #tpu.memory_space<vmem>>, vector<1x8x1xf32>,
    } else {
    }
    return
  }
  func.func @transform_0(%arg0: i32, %arg1: i32) -> (i32, i32) {
    %c0_i32 = arith.constant 0 : i32
    %c0_i32_0 = arith.constant 0 : i32
    return %c0_i32, %arg1 : i32, i32
  }
  func.func @transform_1(%arg0: i32, %arg1: i32) -> (i32, i32) {
    %c0_i32 = arith.constant 0 : i32
    return %arg1, %arg0 : i32, i32
  }
  func.func @transform_2(%arg0: i32, %arg1: i32) -> (i32, i32) {
    %c0_i32 = arith.constant 0 : i32
    %c0_i32_0 = arith.constant 0 : i32
    return %c0_i32, %arg0 : i32, i32
  }
  func.func @transform_3(%arg0: i32, %arg1: i32) -> (i32, i32, i32) {
    %c0_i32 = arith.constant 0 : i32
    %c0_i32_0 = arith.constant 0 : i32
    %c0_i32_1 = arith.constant 0 : i32
    return %arg0, %c0_i32, %c0_i32_0 : i32, i32, i32
  }
  func.func @transform_4(%arg0: i32, %arg1: i32) -> (i32, i32, i32) {
    %c0_i32 = arith.constant 0 : i32
    %c0_i32_0 = arith.constant 0 : i32
    %c0_i32_1 = arith.constant 0 : i32
    return %arg0, %c0_i32, %c0_i32_0 : i32, i32, i32
  }
}

module attributes {stable_mosaic.version = 11 : i64} {
  func.func @_bn_relu_kernel(%arg0: i32, %arg1: memref<8x128xbf16, #tpu.memory_space<vmem>>, %arg2: memref<8x1xf32, #tpu.memory_space<vmem>>, %arg3: memref<8x1xf32, #tpu.memory_space<vmem>>, %arg4: memref<8x128xbf16, #tpu.memory_space<vmem>>) attributes {dimension_semantics = [#tpu.dimension_semantics<parallel>], iteration_bounds = array<i64: 1>, scalar_prefetch = 0 : i64, scratch_operands = 0 : i64, tpu.core_type = #tpu.core_type<tc>, window_params = [{transform_indices = @transform_0, window_bounds = array<i64: 8, 128>}, {pipeline_mode = #tpu.pipeline_mode<synchronous>, transform_indices = @transform_1, window_bounds = array<i64: 8, 1>}, {pipeline_mode = #tpu.pipeline_mode<synchronous>, transform_indices = @transform_2, window_bounds = array<i64: 8, 1>}, {transform_indices = @transform_3, window_bounds = array<i64: 8, 128>}]} {
    %c0 = arith.constant 0 : index
    %c0_0 = arith.constant 0 : index
    %0 = vector.load %arg1[%c0, %c0_0] : memref<8x128xbf16, #tpu.memory_space<vmem>>, vector<8x128xbf16>
    %1 = arith.extf %0 : vector<8x128xbf16> to vector<8x128xf32>
    %c0_1 = arith.constant 0 : index
    %c0_2 = arith.constant 0 : index
    %2 = vector.load %arg2[%c0_1, %c0_2] : memref<8x1xf32, #tpu.memory_space<vmem>>, vector<8x1xf32>
    %3 = vector.broadcast %2 : vector<8x1xf32> to vector<8x128xf32>
    %4 = arith.mulf %1, %3 : vector<8x128xf32>
    %c0_3 = arith.constant 0 : index
    %c0_4 = arith.constant 0 : index
    %5 = vector.load %arg3[%c0_3, %c0_4] : memref<8x1xf32, #tpu.memory_space<vmem>>, vector<8x1xf32>
    %6 = vector.broadcast %5 : vector<8x1xf32> to vector<8x128xf32>
    %7 = arith.addf %4, %6 : vector<8x128xf32>
    %cst = arith.constant 0.000000e+00 : f32
    %8 = vector.broadcast %cst : f32 to vector<8x128xf32>
    %9 = arith.maximumf %7, %8 : vector<8x128xf32>
    %10 = arith.truncf %9 : vector<8x128xf32> to vector<8x128xbf16>
    %c0_5 = arith.constant 0 : index
    %c0_6 = arith.constant 0 : index
    %11 = vector.load %arg4[%c0_5, %c0_6] : memref<8x128xbf16, #tpu.memory_space<vmem>>, vector<8x128xbf16>
    tpu.vector_store %arg4[%c0_5, %c0_6], %10 {strides = array<i32>} : memref<8x128xbf16, #tpu.memory_space<vmem>>, vector<8x128xbf16>,
    return
  }
  func.func @transform_0(%arg0: i32) -> (i32, i32) {
    %c0_i32 = arith.constant 0 : i32
    %c0_i32_0 = arith.constant 0 : i32
    return %c0_i32, %arg0 : i32, i32
  }
  func.func @transform_1(%arg0: i32) -> (i32, i32) {
    %c0_i32 = arith.constant 0 : i32
    %c0_i32_0 = arith.constant 0 : i32
    %c0_i32_1 = arith.constant 0 : i32
    return %c0_i32, %c0_i32_0 : i32, i32
  }
  func.func @transform_2(%arg0: i32) -> (i32, i32) {
    %c0_i32 = arith.constant 0 : i32
    %c0_i32_0 = arith.constant 0 : i32
    %c0_i32_1 = arith.constant 0 : i32
    return %c0_i32, %c0_i32_0 : i32, i32
  }
  func.func @transform_3(%arg0: i32) -> (i32, i32) {
    %c0_i32 = arith.constant 0 : i32
    %c0_i32_0 = arith.constant 0 : i32
    return %c0_i32, %arg0 : i32, i32
  }
}

module attributes {stable_mosaic.version = 11 : i64} {
  func.func @_mm_bias_kernel(%arg0: i32, %arg1: i32, %arg2: memref<2x1024xbf16, #tpu.memory_space<vmem>>, %arg3: memref<1024x256xbf16, #tpu.memory_space<vmem>>, %arg4: memref<2x1xf32, #tpu.memory_space<vmem>>, %arg5: memref<2x256xf32, #tpu.memory_space<vmem>>, %arg6: memref<2x256xf32, #tpu.memory_space<vmem>>) attributes {dimension_semantics = [#tpu.dimension_semantics<parallel>, #tpu.dimension_semantics<arbitrary>], iteration_bounds = array<i64: 2, 3>, scalar_prefetch = 0 : i64, scratch_operands = 1 : i64, tpu.core_type = #tpu.core_type<tc>, window_params = [{transform_indices = @transform_0, window_bounds = array<i64: 2, 1024>}, {transform_indices = @transform_1, window_bounds = array<i64: 1024, 256>}, {pipeline_mode = #tpu.pipeline_mode<synchronous>, transform_indices = @transform_2, window_bounds = array<i64: 2, 1>}, {transform_indices = @transform_3, window_bounds = array<i64: 2, 256>}]} {
    %c0_i32 = arith.constant 0 : i32
    %0 = arith.cmpi eq, %arg1, %c0_i32 : i32
    %1 = arith.extui %0 : i1 to i32
    %c0_i32_0 = arith.constant 0 : i32
    %2 = arith.cmpi ne, %1, %c0_i32_0 : i32
    scf.if %2 {
      %cst_9 = arith.constant 0.000000e+00 : f32
      %12 = vector.broadcast %cst_9 : f32 to vector<2x256xf32>
      %c0_10 = arith.constant 0 : index
      %c0_11 = arith.constant 0 : index
      %13 = vector.load %arg6[%c0_10, %c0_11] : memref<2x256xf32, #tpu.memory_space<vmem>>, vector<2x256xf32>
      tpu.vector_store %arg6[%c0_10, %c0_11], %12 {strides = array<i32>} : memref<2x256xf32, #tpu.memory_space<vmem>>, vector<2x256xf32>,
    } else {
    }
    %c0 = arith.constant 0 : index
    %c0_1 = arith.constant 0 : index
    %3 = vector.load %arg6[%c0, %c0_1] : memref<2x256xf32, #tpu.memory_space<vmem>>, vector<2x256xf32>
    %c0_2 = arith.constant 0 : index
    %c0_3 = arith.constant 0 : index
    %4 = vector.load %arg2[%c0_2, %c0_3] : memref<2x1024xbf16, #tpu.memory_space<vmem>>, vector<2x1024xbf16>
    %c0_4 = arith.constant 0 : index
    %c0_5 = arith.constant 0 : index
    %5 = vector.load %arg3[%c0_4, %c0_5] : memref<1024x256xbf16, #tpu.memory_space<vmem>>, vector<1024x256xbf16>
    %cst = arith.constant dense<0.000000e+00> : vector<2x256xf32>
    %6 = tpu.matmul %4, %5, %cst {dimension_numbers = #tpu.dot_dimension_numbers<[1], [0], [0], [1], [0, 0, 1, 1], [], []>} : vector<2x1024xbf16>, vector<1024x256xbf16>, vector<2x256xf32> -> vector<2x256xf32>
    %7 = arith.addf %3, %6 : vector<2x256xf32>
    %c0_6 = arith.constant 0 : index
    %c0_7 = arith.constant 0 : index
    %8 = vector.load %arg6[%c0_6, %c0_7] : memref<2x256xf32, #tpu.memory_space<vmem>>, vector<2x256xf32>
    tpu.vector_store %arg6[%c0_6, %c0_7], %7 {strides = array<i32>} : memref<2x256xf32, #tpu.memory_space<vmem>>, vector<2x256xf32>,
    %c2_i32 = arith.constant 2 : i32
    %9 = arith.cmpi eq, %arg1, %c2_i32 : i32
    %10 = arith.extui %9 : i1 to i32
    %c0_i32_8 = arith.constant 0 : i32
    %11 = arith.cmpi ne, %10, %c0_i32_8 : i32
    scf.if %11 {
      %c0_9 = arith.constant 0 : index
      %c0_10 = arith.constant 0 : index
      %12 = vector.load %arg6[%c0_9, %c0_10] : memref<2x256xf32, #tpu.memory_space<vmem>>, vector<2x256xf32>
      %c0_11 = arith.constant 0 : index
      %c0_12 = arith.constant 0 : index
      %13 = vector.load %arg4[%c0_11, %c0_12] : memref<2x1xf32, #tpu.memory_space<vmem>>, vector<2x1xf32>
      %14 = vector.broadcast %13 : vector<2x1xf32> to vector<2x256xf32>
      %15 = arith.addf %12, %14 : vector<2x256xf32>
      %c0_13 = arith.constant 0 : index
      %c0_14 = arith.constant 0 : index
      %16 = vector.load %arg5[%c0_13, %c0_14] : memref<2x256xf32, #tpu.memory_space<vmem>>, vector<2x256xf32>
      tpu.vector_store %arg5[%c0_13, %c0_14], %15 {strides = array<i32>} : memref<2x256xf32, #tpu.memory_space<vmem>>, vector<2x256xf32>,
    } else {
    }
    return
  }
  func.func @transform_0(%arg0: i32, %arg1: i32) -> (i32, i32) {
    %c0_i32 = arith.constant 0 : i32
    %c0_i32_0 = arith.constant 0 : i32
    return %c0_i32, %arg1 : i32, i32
  }
  func.func @transform_1(%arg0: i32, %arg1: i32) -> (i32, i32) {
    %c0_i32 = arith.constant 0 : i32
    return %arg1, %arg0 : i32, i32
  }
  func.func @transform_2(%arg0: i32, %arg1: i32) -> (i32, i32) {
    %c0_i32 = arith.constant 0 : i32
    %c0_i32_0 = arith.constant 0 : i32
    %c0_i32_1 = arith.constant 0 : i32
    return %c0_i32, %c0_i32_0 : i32, i32
  }
  func.func @transform_3(%arg0: i32, %arg1: i32) -> (i32, i32) {
    %c0_i32 = arith.constant 0 : i32
    %c0_i32_0 = arith.constant 0 : i32
    return %c0_i32, %arg0 : i32, i32
  }
}

</mosaic_0001>

<bundles_post_ra>
// kernel: resnet_generator_forward.47
= control target key start
LH: loop header
LB: loop body
LE: loop exit
PB: predicated region body
PF: predicated region fallthrough
CT: control target
= control target key end

     0   :  { %s1850_s15 = smov 0   ;;  %s1852_s16 = smov 0   ;;  %s2208_s0 = inlined_call_operand.vmem [shape: bf16[8,686], index: 0, kind: input, shape index: {}]   ;;  %s2209_s1 = inlined_call_operand.vmem [shape: bf16[686,512], index: 1, kind: input, shape index: {}]   ;;  %s2210_s2 = inlined_call_operand.vmem [shape: bf16[8,512], index: 2, kind: output, shape index: {0}]   ;;  %s2211_s3 = inlined_call_operand.vmem [shape: f32[2,8,1], index: 3, kind: output, shape index: {1}]   ;;  %s2212_s4 = inlined_call_operand.vmem [shape: f32[2,8,1], index: 4, kind: output, shape index: {2}]  }
   0x1   :  { %s1854_s17 = smov 0   ;;  %s1856_s18 = smov 0  }
   0x2   :  { %s1858_s19 = smov 0  }
   0x3 LB: > { %s27_s20 = sadd.s32 1, %s1819_s18  ;;  %p69_p1 = scmp.ne.s32.totalorder %s1811_s16, %s1807_s15  ;;  %s1823_s19 = sphi %s1858_s19, %s15_s19   ;;  %s1819_s18 = sphi %s1856_s18, %s2216_s18   ;;  %s1815_s17 = sphi %s1854_s17, %s2215_s17   ;;  %s1811_s16 = sphi %s1852_s16, %s2214_s16   ;;  %s1807_s15 = sphi %s1850_s15, %s2213_s15  }
   0x4   : > { %p29_p0 = scmp.ge.s32.totalorder %s27_s20, 2  ;;  %p70_p2 = scmp.eq.s32.totalorder %s1823_s19, 0 }
   0x5   : > { %s62_s22 = sadd.s32 1, %s1811_s16  ;;  %p1501_p5 = scmp.ge.s32.totalorder %s1823_s19, 2 }
   0x6   : > { %s2218_s20 = smov (%p29_p0, %s27_s20), 0  ;;  %p71_p3 = por %p70_p2, %p69_p1 }
   0x7   : > { %s58_s21 = ssub.s32 %s1819_s18, %s2218_s20  ;;  %182 = sbr.rel (%p1501_p5) target bundleno = 59 (0x3b), region = 20 }
   0x8   : > { %p60_p4 = scmp.eq.s32.totalorder %s58_s21, 0 }
   0xa   : > { %s1885_s23 = scalar_select %p60_p4, %s1811_s16, %s62_s22  }
   0xc   : > { %185 = sbr.rel (!%p71_p3) target bundleno = 59 (0x3b), region = 24  ;;  %s187_s24 = sand.u32 (%p71_p3), 1, %s1811_s16  }
   0xd   : > { %s1606_s25 = sshll.u32 (%p71_p3), %s1819_s18, 3  ;;  %s1608_s26 = smul.u32 (%p71_p3), 688, %s187_s24 }
   0xe   : > { %s1893_s29 = scalar_lea.vmem (%p71_p3), %s2209_s1, %s1606_s25 }
   0xf   : > { %v394_v0 = vld [vmem:[%s1893_s29] sm:$0xff] (%p71_p3)  ;;  %v396_v1 = vld [vmem:[%s1893_s29 + $0x10] sm:$0xff] (%p71_p3)  ;;  %s1901_s30 = scalar_lea.vmem (%p71_p3), [#allocation3], %s1608_s26 }
  0x10   : > { %v398_v2 = vld [vmem:[%s1893_s29 + $0x20] sm:$0xff] (%p71_p3)  ;;  %v400_v3 = vld [vmem:[%s1893_s29 + $0x30] sm:$0xff] (%p71_p3)  ;;  %395 = vst [vmem:[%s1901_s30] sm:$0xff] (%p71_p3), %v394_v0  ;;  %397 = vst [vmem:[%s1901_s30 + $0x8] sm:$0xff] (%p71_p3), %v396_v1 }
  0x11   : > { %v402_v4 = vld [vmem:[%s1893_s29 + $0x40] sm:$0xff]  ;;  %v404_v5 = vld [vmem:[%s1893_s29 + $0x50] sm:$0xff]  ;;  %399 = vst [vmem:[%s1901_s30 + $0x10] sm:$0xff] %v398_v2  ;;  %401 = vst [vmem:[%s1901_s30 + $0x18] sm:$0xff] %v400_v3 }
  0x12   : > { %403 = vst [vmem:[%s1901_s30 + $0x20] sm:$0xff] %v402_v4  ;;  %405 = vst [vmem:[%s1901_s30 + $0x28] sm:$0xff] %v404_v5  ;;  %v406_v6 = vld [vmem:[%s1893_s29 + $0x60] sm:$0xff]  ;;  %v408_v7 = vld [vmem:[%s1893_s29 + $0x70] sm:$0xff] }
  0x13   : > { %v410_v8 = vld [vmem:[%s1893_s29 + $0x80] sm:$0xff]  ;;  %407 = vst [vmem:[%s1901_s30 + $0x30] sm:$0xff] %v406_v6  ;;  %409 = vst [vmem:[%s1901_s30 + $0x38] sm:$0xff] %v408_v7  ;;  %v412_v9 = vld [vmem:[%s1893_s29 + $0x90] sm:$0xff] }
  0x14   : > { %411 = vst [vmem:[%s1901_s30 + $0x40] sm:$0xff] %v410_v8  ;;  %v414_v10 = vld [vmem:[%s1893_s29 + $0xa0] sm:$0xff]  ;;  %v416_v11 = vld [vmem:[%s1893_s29 + $0xb0] sm:$0xff]  ;;  %413 = vst [vmem:[%s1901_s30 + $0x48] sm:$0xff] %v412_v9 }
  0x15   : > { %415 = vst [vmem:[%s1901_s30 + $0x50] sm:$0xff] %v414_v10  ;;  %417 = vst [vmem:[%s1901_s30 + $0x58] sm:$0xff] %v416_v11  ;;  %v418_v12 = vld [vmem:[%s1893_s29 + $0xc0] sm:$0xff]  ;;  %v420_v13 = vld [vmem:[%s1893_s29 + $0xd0] sm:$0xff] }
  0x16   : > { %v422_v14 = vld [vmem:[%s1893_s29 + $0xe0] sm:$0xff]  ;;  %419 = vst [vmem:[%s1901_s30 + $0x60] sm:$0xff] %v418_v12  ;;  %421 = vst [vmem:[%s1901_s30 + $0x68] sm:$0xff] %v420_v13  ;;  %v424_v15 = vld [vmem:[%s1893_s29 + $0xf0] sm:$0xff] }
  0x17   : > { %423 = vst [vmem:[%s1901_s30 + $0x70] sm:$0xff] %v422_v14  ;;  %v426_v16 = vld [vmem:[%s1893_s29 + $0x100] sm:$0xff]  ;;  %v428_v17 = vld [vmem:[%s1893_s29 + $0x110] sm:$0xff]  ;;  %425 = vst [vmem:[%s1901_s30 + $0x78] sm:$0xff] %v424_v15 }
  0x18   : > { %427 = vst [vmem:[%s1901_s30 + $0x80] sm:$0xff] %v426_v16  ;;  %429 = vst [vmem:[%s1901_s30 + $0x88] sm:$0xff] %v428_v17  ;;  %v430_v18 = vld [vmem:[%s1893_s29 + $0x120] sm:$0xff]  ;;  %v432_v19 = vld [vmem:[%s1893_s29 + $0x130] sm:$0xff] }
  0x19   : > { %v434_v20 = vld [vmem:[%s1893_s29 + $0x140] sm:$0xff]  ;;  %431 = vst [vmem:[%s1901_s30 + $0x90] sm:$0xff] %v430_v18  ;;  %433 = vst [vmem:[%s1901_s30 + $0x98] sm:$0xff] %v432_v19  ;;  %v436_v21 = vld [vmem:[%s1893_s29 + $0x150] sm:$0xff] }
  0x1a   : > { %435 = vst [vmem:[%s1901_s30 + $0xa0] sm:$0xff] %v434_v20  ;;  %v438_v22 = vld [vmem:[%s1893_s29 + $0x160] sm:$0xff]  ;;  %v440_v23 = vld [vmem:[%s1893_s29 + $0x170] sm:$0xff]  ;;  %437 = vst [vmem:[%s1901_s30 + $0xa8] sm:$0xff] %v436_v21 }
  0x1b   : > { %439 = vst [vmem:[%s1901_s30 + $0xb0] sm:$0xff] %v438_v22  ;;  %441 = vst [vmem:[%s1901_s30 + $0xb8] sm:$0xff] %v440_v23  ;;  %v442_v24 = vld [vmem:[%s1893_s29 + $0x180] sm:$0xff]  ;;  %v444_v25 = vld [vmem:[%s1893_s29 + $0x190] sm:$0xff] }
  0x1c   : > { %v446_v26 = vld [vmem:[%s1893_s29 + $0x1a0] sm:$0xff]  ;;  %443 = vst [vmem:[%s1901_s30 + $0xc0] sm:$0xff] %v442_v24  ;;  %445 = vst [vmem:[%s1901_s30 + $0xc8] sm:$0xff] %v444_v25  ;;  %v448_v27 = vld [vmem:[%s1893_s29 + $0x1b0] sm:$0xff] }
  0x1d   : > { %447 = vst [vmem:[%s1901_s30 + $0xd0] sm:$0xff] %v446_v26  ;;  %v450_v28 = vld [vmem:[%s1893_s29 + $0x1c0] sm:$0xff]  ;;  %v452_v29 = vld [vmem:[%s1893_s29 + $0x1d0] sm:$0xff]  ;;  %449 = vst [vmem:[%s1901_s30 + $0xd8] sm:$0xff] %v448_v27 }
  0x1e   : > { %451 = vst [vmem:[%s1901_s30 + $0xe0] sm:$0xff] %v450_v28  ;;  %453 = vst [vmem:[%s1901_s30 + $0xe8] sm:$0xff] %v452_v29  ;;  %v454_v30 = vld [vmem:[%s1893_s29 + $0x1e0] sm:$0xff]  ;;  %v456_v31 = vld [vmem:[%s1893_s29 + $0x1f0] sm:$0xff] }
  0x1f   : > { %v458_v32 = vld [vmem:[%s1893_s29 + $0x200] sm:$0xff]  ;;  %455 = vst [vmem:[%s1901_s30 + $0xf0] sm:$0xff] %v454_v30  ;;  %457 = vst [vmem:[%s1901_s30 + $0xf8] sm:$0xff] %v456_v31  ;;  %v460_v33 = vld [vmem:[%s1893_s29 + $0x210] sm:$0xff] }
  0x20   : > { %459 = vst [vmem:[%s1901_s30 + $0x100] sm:$0xff] %v458_v32  ;;  %v462_v34 = vld [vmem:[%s1893_s29 + $0x220] sm:$0xff]  ;;  %v464_v35 = vld [vmem:[%s1893_s29 + $0x230] sm:$0xff]  ;;  %461 = vst [vmem:[%s1901_s30 + $0x108] sm:$0xff] %v460_v33 }
  0x21   : > { %463 = vst [vmem:[%s1901_s30 + $0x110] sm:$0xff] %v462_v34  ;;  %465 = vst [vmem:[%s1901_s30 + $0x118] sm:$0xff] %v464_v35  ;;  %v466_v36 = vld [vmem:[%s1893_s29 + $0x240] sm:$0xff]  ;;  %v468_v37 = vld [vmem:[%s1893_s29 + $0x250] sm:$0xff] }
  0x22   : > { %v470_v38 = vld [vmem:[%s1893_s29 + $0x260] sm:$0xff]  ;;  %467 = vst [vmem:[%s1901_s30 + $0x120] sm:$0xff] %v466_v36  ;;  %469 = vst [vmem:[%s1901_s30 + $0x128] sm:$0xff] %v468_v37  ;;  %v472_v39 = vld [vmem:[%s1893_s29 + $0x270] sm:$0xff] }
  0x23   : > { %471 = vst [vmem:[%s1901_s30 + $0x130] sm:$0xff] %v470_v38  ;;  %v474_v40 = vld [vmem:[%s1893_s29 + $0x280] sm:$0xff]  ;;  %v476_v41 = vld [vmem:[%s1893_s29 + $0x290] sm:$0xff]  ;;  %473 = vst [vmem:[%s1901_s30 + $0x138] sm:$0xff] %v472_v39 }
  0x24   : > { %475 = vst [vmem:[%s1901_s30 + $0x140] sm:$0xff] %v474_v40  ;;  %477 = vst [vmem:[%s1901_s30 + $0x148] sm:$0xff] %v476_v41  ;;  %v478_v42 = vld [vmem:[%s1893_s29 + $0x2a0] sm:$0xff]  ;;  %v480_v43 = vld [vmem:[%s1893_s29 + $0x2b0] sm:$0xff] }
  0x25   : > { %v482_v44 = vld [vmem:[%s1893_s29 + $0x2c0] sm:$0xff]  ;;  %479 = vst [vmem:[%s1901_s30 + $0x150] sm:$0xff] %v478_v42  ;;  %481 = vst [vmem:[%s1901_s30 + $0x158] sm:$0xff] %v480_v43  ;;  %v484_v45 = vld [vmem:[%s1893_s29 + $0x2d0] sm:$0xff] }
  0x26   : > { %483 = vst [vmem:[%s1901_s30 + $0x160] sm:$0xff] %v482_v44  ;;  %v486_v46 = vld [vmem:[%s1893_s29 + $0x2e0] sm:$0xff]  ;;  %v488_v47 = vld [vmem:[%s1893_s29 + $0x2f0] sm:$0xff]  ;;  %485 = vst [vmem:[%s1901_s30 + $0x168] sm:$0xff] %v484_v45 }
  0x27   : > { %487 = vst [vmem:[%s1901_s30 + $0x170] sm:$0xff] %v486_v46  ;;  %489 = vst [vmem:[%s1901_s30 + $0x178] sm:$0xff] %v488_v47  ;;  %v490_v48 = vld [vmem:[%s1893_s29 + $0x300] sm:$0xff]  ;;  %v492_v49 = vld [vmem:[%s1893_s29 + $0x310] sm:$0xff] }
  0x28   : > { %v494_v50 = vld [vmem:[%s1893_s29 + $0x320] sm:$0xff]  ;;  %491 = vst [vmem:[%s1901_s30 + $0x180] sm:$0xff] %v490_v48  ;;  %493 = vst [vmem:[%s1901_s30 + $0x188] sm:$0xff] %v492_v49  ;;  %v496_v51 = vld [vmem:[%s1893_s29 + $0x330] sm:$0xff] }
  0x29   : > { %495 = vst [vmem:[%s1901_s30 + $0x190] sm:$0xff] %v494_v50  ;;  %v498_v52 = vld [vmem:[%s1893_s29 + $0x340] sm:$0xff]  ;;  %v500_v53 = vld [vmem:[%s1893_s29 + $0x350] sm:$0xff]  ;;  %497 = vst [vmem:[%s1901_s30 + $0x198] sm:$0xff] %v496_v51 }
  0x2a   : > { %499 = vst [vmem:[%s1901_s30 + $0x1a0] sm:$0xff] %v498_v52  ;;  %501 = vst [vmem:[%s1901_s30 + $0x1a8] sm:$0xff] %v500_v53  ;;  %v502_v54 = vld [vmem:[%s1893_s29 + $0x360] sm:$0xff]  ;;  %v504_v55 = vld [vmem:[%s1893_s29 + $0x370] sm:$0xff] }
  0x2b   : > { %v506_v56 = vld [vmem:[%s1893_s29 + $0x380] sm:$0xff]  ;;  %503 = vst [vmem:[%s1901_s30 + $0x1b0] sm:$0xff] %v502_v54  ;;  %505 = vst [vmem:[%s1901_s30 + $0x1b8] sm:$0xff] %v504_v55  ;;  %v508_v57 = vld [vmem:[%s1893_s29 + $0x390] sm:$0xff] }
  0x2c   : > { %507 = vst [vmem:[%s1901_s30 + $0x1c0] sm:$0xff] %v506_v56  ;;  %v510_v58 = vld [vmem:[%s1893_s29 + $0x3a0] sm:$0xff]  ;;  %v512_v59 = vld [vmem:[%s1893_s29 + $0x3b0] sm:$0xff]  ;;  %509 = vst [vmem:[%s1901_s30 + $0x1c8] sm:$0xff] %v508_v57 }
  0x2d   : > { %511 = vst [vmem:[%s1901_s30 + $0x1d0] sm:$0xff] %v510_v58  ;;  %513 = vst [vmem:[%s1901_s30 + $0x1d8] sm:$0xff] %v512_v59  ;;  %v514_v60 = vld [vmem:[%s1893_s29 + $0x3c0] sm:$0xff]  ;;  %v516_v61 = vld [vmem:[%s1893_s29 + $0x3d0] sm:$0xff] }
  0x2e   : > { %v518_v62 = vld [vmem:[%s1893_s29 + $0x3e0] sm:$0xff]  ;;  %515 = vst [vmem:[%s1901_s30 + $0x1e0] sm:$0xff] %v514_v60  ;;  %517 = vst [vmem:[%s1901_s30 + $0x1e8] sm:$0xff] %v516_v61  ;;  %v520_v63 = vld [vmem:[%s1893_s29 + $0x3f0] sm:$0xff] }
  0x2f   : > { %519 = vst [vmem:[%s1901_s30 + $0x1f0] sm:$0xff] %v518_v62  ;;  %v522_v0 = vld [vmem:[%s1893_s29 + $0x400] sm:$0xff]  ;;  %v524_v1 = vld [vmem:[%s1893_s29 + $0x410] sm:$0xff]  ;;  %521 = vst [vmem:[%s1901_s30 + $0x1f8] sm:$0xff] %v520_v63 }
  0x30   : > { %523 = vst [vmem:[%s1901_s30 + $0x200] sm:$0xff] %v522_v0  ;;  %525 = vst [vmem:[%s1901_s30 + $0x208] sm:$0xff] %v524_v1  ;;  %v526_v2 = vld [vmem:[%s1893_s29 + $0x420] sm:$0xff]  ;;  %v528_v3 = vld [vmem:[%s1893_s29 + $0x430] sm:$0xff] }
  0x31   : > { %v530_v4 = vld [vmem:[%s1893_s29 + $0x440] sm:$0xff]  ;;  %527 = vst [vmem:[%s1901_s30 + $0x210] sm:$0xff] %v526_v2  ;;  %529 = vst [vmem:[%s1901_s30 + $0x218] sm:$0xff] %v528_v3  ;;  %v532_v5 = vld [vmem:[%s1893_s29 + $0x450] sm:$0xff] }
  0x32   : > { %531 = vst [vmem:[%s1901_s30 + $0x220] sm:$0xff] %v530_v4  ;;  %v534_v6 = vld [vmem:[%s1893_s29 + $0x460] sm:$0xff]  ;;  %v536_v7 = vld [vmem:[%s1893_s29 + $0x470] sm:$0xff]  ;;  %533 = vst [vmem:[%s1901_s30 + $0x228] sm:$0xff] %v532_v5 }
  0x33   : > { %535 = vst [vmem:[%s1901_s30 + $0x230] sm:$0xff] %v534_v6  ;;  %537 = vst [vmem:[%s1901_s30 + $0x238] sm:$0xff] %v536_v7  ;;  %v538_v8 = vld [vmem:[%s1893_s29 + $0x480] sm:$0xff]  ;;  %v540_v9 = vld [vmem:[%s1893_s29 + $0x490] sm:$0xff] }
  0x34   : > { %v542_v10 = vld [vmem:[%s1893_s29 + $0x4a0] sm:$0xff]  ;;  %539 = vst [vmem:[%s1901_s30 + $0x240] sm:$0xff] %v538_v8  ;;  %541 = vst [vmem:[%s1901_s30 + $0x248] sm:$0xff] %v540_v9  ;;  %v544_v11 = vld [vmem:[%s1893_s29 + $0x4b0] sm:$0xff] }
  0x35   : > { %543 = vst [vmem:[%s1901_s30 + $0x250] sm:$0xff] %v542_v10  ;;  %v546_v12 = vld [vmem:[%s1893_s29 + $0x4c0] sm:$0xff]  ;;  %v548_v13 = vld [vmem:[%s1893_s29 + $0x4d0] sm:$0xff]  ;;  %545 = vst [vmem:[%s1901_s30 + $0x258] sm:$0xff] %v544_v11 }
  0x36   : > { %547 = vst [vmem:[%s1901_s30 + $0x260] sm:$0xff] %v546_v12  ;;  %549 = vst [vmem:[%s1901_s30 + $0x268] sm:$0xff] %v548_v13  ;;  %v550_v14 = vld [vmem:[%s1893_s29 + $0x4e0] sm:$0xff]  ;;  %v552_v15 = vld [vmem:[%s1893_s29 + $0x4f0] sm:$0xff] }
  0x37   : > { %v554_v16 = vld [vmem:[%s1893_s29 + $0x500] sm:$0xff]  ;;  %551 = vst [vmem:[%s1901_s30 + $0x270] sm:$0xff] %v550_v14  ;;  %553 = vst [vmem:[%s1901_s30 + $0x278] sm:$0xff] %v552_v15  ;;  %v556_v17 = vld [vmem:[%s1893_s29 + $0x510] sm:$0xff] }
  0x38   : > { %555 = vst [vmem:[%s1901_s30 + $0x280] sm:$0xff] %v554_v16  ;;  %v558_v18 = vld [vmem:[%s1893_s29 + $0x520] sm:$0xff]  ;;  %v560_v19 = vld [vmem:[%s1893_s29 + $0x530] sm:$0xff]  ;;  %557 = vst [vmem:[%s1901_s30 + $0x288] sm:$0xff] %v556_v17 }
  0x39   : > { %559 = vst [vmem:[%s1901_s30 + $0x290] sm:$0xff] %v558_v18  ;;  %561 = vst [vmem:[%s1901_s30 + $0x298] sm:$0xff] %v560_v19  ;;  %v562_v20 = vld [vmem:[%s1893_s29 + $0x540] sm:$0xff]  ;;  %v564_v21 = vld [vmem:[%s1893_s29 + $0x550] sm:$0xff] }
  0x3a   : > { %563 = vst [vmem:[%s1901_s30 + $0x2a0] sm:$0xff] %v562_v20  ;;  %565 = vst [vmem:[%s1901_s30 + $0x2a8] sm:$0xff] %v564_v21 }
  0x3b PF: > { %p1504_p6 = scmp.ge.s32.totalorder %s1823_s19, 1  ;;  %p570_p7 = scmp.lt.s32.totalorder %s1823_s19, 3 }
  0x3d   : > { %p571_p8 = pnand %p1504_p6, %p570_p7 }
  0x3e   : > { %s577_s5 = sand.u32 (!%p571_p8), 1, %s1807_s15   ;;  %s1505_s14 = sshll.u32 (!%p571_p8), %s1815_s17, 1 }
  0x3f   : > { %574 = sbr.rel (%p571_p8) target bundleno = 521 (0x209), region = 62  ;;  %p624_p9 = scmp.lt.s32.totalorder (!%p571_p8), %s1505_s14, 3 }
  0x40   : > { %s1609_s10 = smul.u32 (!%p571_p8), 688, %s577_s5  ;;  %p629_p10 = scmp.lt.s32.totalorder (!%p571_p8), %s1815_s17, 1 }
  0x42   : > { %s2086_s11 = scalar_lea.vmem (!%p571_p8), [#allocation3], %s1609_s10 }
  0x44   : > { %v2075_v22 = vld [vmem:[%s2208_s0] sm:$0xff]  ;;  %v2080_v23 = vld [vmem:[%s2208_s0 + $0x8] sm:$0xff]  ;;  %vm1183_vm0 = vcmask 375808   ;;  %vm1187_vm1 = vcmask 1046528   ;;  %s2220_s14 = smov (!%p624_p9, %s1505_s14), 3  ;;  %s2222_s17 = smov (!%p629_p10, %s1815_s17), 1 }
  0x45   : > { %v1510_v24 = vcombine.high %v2075_v22, %v2075_v22  ;;  %v1512_v25 = vcombine.high %v2080_v23, %v2080_v23  ;;  %v1650_v26 = vld [vmem:[%s2086_s11 + $0x74] ss:$8 sps:$4 sm:$0xff]   ;;  %v1654_v28 = vld [vmem:[%s2086_s11 + $0x70] ss:$8 sps:$4 sm:$0xff]   ;;  %v1656_v30 = vld [vmem:[%s2086_s11 + $0x64] ss:$8 sps:$4 sm:$0xff]  }
  0x46   : > { %v1652_v27 = vld [vmem:[%s2086_s11 + $0x174] ss:$8 sps:$4 sm:$0xff]   ;;  %1194 = vmatprep.subr.bf16.mxu0 %v1650_v26  ;;  %v1655_v29 = vld [vmem:[%s2086_s11 + $0x170] ss:$8 sps:$4 sm:$0xff]   ;;  %v1658_v31 = vld [vmem:[%s2086_s11 + $0x164] ss:$8 sps:$4 sm:$0xff]  }
  0x47   : > { %1226 = vmatprep.mubr.bf16.mxu0 %v1510_v24  ;;  %1267 = vmatprep.mubr.bf16.mxu1 %v1512_v25  ;;  %v1660_v32 = vld [vmem:[%s2086_s11 + $0x60] ss:$8 sps:$4 sm:$0xff]   ;;  %v1662_v34 = vld [vmem:[%s2086_s11 + $0x54] ss:$8 sps:$4 sm:$0xff]   ;;  %v1666_v36 = vld [vmem:[%s2086_s11 + $0x50] ss:$8 sps:$4 sm:$0xff]  }
  0x48   : > { %1235 = vmatprep.subr.bf16.mxu1 %v1652_v27  ;;  %1195 = vmatpush1.bf16.msra.mxu0 %v1654_v28  ;;  %v1661_v33 = vld [vmem:[%s2086_s11 + $0x160] ss:$8 sps:$4 sm:$0xff]   ;;  %v1664_v35 = vld [vmem:[%s2086_s11 + $0x154] ss:$8 sps:$4 sm:$0xff]   ;;  %v1667_v37 = vld [vmem:[%s2086_s11 + $0x150] ss:$8 sps:$4 sm:$0xff]  }
  0x49   : > { %1236 = vmatpush1.bf16.msra.mxu1 %v1655_v29  ;;  %1196 = vmatprep.subr.bf16.mxu0 %v1656_v30  ;;  %v1668_v38 = vld [vmem:[%s2086_s11 + $0x44] ss:$8 sps:$4 sm:$0xff]   ;;  %v1672_v40 = vld [vmem:[%s2086_s11 + $0x40] ss:$8 sps:$4 sm:$0xff]   ;;  %v1674_v42 = vld [vmem:[%s2086_s11 + $0x34] ss:$8 sps:$4 sm:$0xff]   ;;  %v1509_v30 = vcombine.low %v2075_v22, %v2075_v22 }
  0x4a   : > { %1237 = vmatprep.subr.bf16.mxu1 %v1658_v31  ;;  %v1670_v39 = vld [vmem:[%s2086_s11 + $0x144] ss:$8 sps:$4 sm:$0xff]   ;;  %v1673_v41 = vld [vmem:[%s2086_s11 + $0x140] ss:$8 sps:$4 sm:$0xff]   ;;  %v1676_v43 = vld [vmem:[%s2086_s11 + $0x134] ss:$8 sps:$4 sm:$0xff]   ;;  %v1511_v31 = vcombine.low %v2080_v23, %v2080_v23 }
  0x4b   : > { %v1678_v44 = vld [vmem:[%s2086_s11 + $0x30] ss:$8 sps:$4 sm:$0xff]   ;;  %v1680_v46 = vld [vmem:[%s2086_s11 + $0x24] ss:$8 sps:$4 sm:$0xff]   ;;  %v1684_v48 = vld [vmem:[%s2086_s11 + $0x20] ss:$8 sps:$4 sm:$0xff]  }
  0x4c   : > { %1197 = vmatpush1.bf16.msra.mxu0 %v1660_v32  ;;  %v1679_v45 = vld [vmem:[%s2086_s11 + $0x130] ss:$8 sps:$4 sm:$0xff]   ;;  %v1682_v47 = vld [vmem:[%s2086_s11 + $0x124] ss:$8 sps:$4 sm:$0xff]   ;;  %v1685_v49 = vld [vmem:[%s2086_s11 + $0x120] ss:$8 sps:$4 sm:$0xff]  }
  0x4d   : > { %1238 = vmatpush1.bf16.msra.mxu1 %v1661_v33  ;;  %1198 = vmatprep.subr.bf16.mxu0 %v1662_v34  ;;  %v1686_v50 = vld [vmem:[%s2086_s11 + $0x14] ss:$8 sps:$4 sm:$0xff]   ;;  %v1690_v52 = vld [vmem:[%s2086_s11 + $0x10] ss:$8 sps:$4 sm:$0xff]   ;;  %v1692_v54 = vld [vmem:[%s2086_s11 + $0x4] ss:$8 sps:$4 sm:$0xff]  }
  0x4e   : > { %1239 = vmatprep.subr.bf16.mxu1 %v1664_v35  ;;  %v1688_v51 = vld [vmem:[%s2086_s11 + $0x114] ss:$8 sps:$4 sm:$0xff]   ;;  %v1691_v53 = vld [vmem:[%s2086_s11 + $0x110] ss:$8 sps:$4 sm:$0xff]   ;;  %v1694_v55 = vld [vmem:[%s2086_s11 + $0x104] ss:$8 sps:$4 sm:$0xff]  }
  0x4f   : > { %v1696_v56 = vld [vmem:[%s2086_s11] ss:$8 sps:$4 sm:$0xff]   ;;  %v1698_v58 = vld [vmem:[%s2086_s11 + $0xf4] ss:$8 sps:$4 sm:$0xff]   ;;  %v1702_v60 = vld [vmem:[%s2086_s11 + $0xf0] ss:$8 sps:$4 sm:$0xff]  }
  0x50   : > { %1199 = vmatpush1.bf16.msra.mxu0 %v1666_v36  ;;  %v1697_v57 = vld [vmem:[%s2086_s11 + $0x100] ss:$8 sps:$4 sm:$0xff]   ;;  %v1700_v59 = vld [vmem:[%s2086_s11 + $0x1f4] ss:$8 sps:$4 sm:$0xff]   ;;  %v1703_v61 = vld [vmem:[%s2086_s11 + $0x1f0] ss:$8 sps:$4 sm:$0xff]  }
  0x51   : > { %1240 = vmatpush1.bf16.msra.mxu1 %v1667_v37  ;;  %1200 = vmatprep.subr.bf16.mxu0 %v1668_v38  ;;  %v1704_v62 = vld [vmem:[%s2086_s11 + $0xe4] ss:$8 sps:$4 sm:$0xff]   ;;  %v1708_v0 = vld [vmem:[%s2086_s11 + $0xe0] ss:$8 sps:$4 sm:$0xff]   ;;  %v1710_v2 = vld [vmem:[%s2086_s11 + $0xd4] ss:$8 sps:$4 sm:$0xff]  }
  0x52   : > { %1241 = vmatprep.subr.bf16.mxu1 %v1670_v39  ;;  %v1706_v63 = vld [vmem:[%s2086_s11 + $0x1e4] ss:$8 sps:$4 sm:$0xff]   ;;  %v1709_v1 = vld [vmem:[%s2086_s11 + $0x1e0] ss:$8 sps:$4 sm:$0xff]   ;;  %v1712_v3 = vld [vmem:[%s2086_s11 + $0x1d4] ss:$8 sps:$4 sm:$0xff]  }
  0x53   : > { %v1714_v4 = vld [vmem:[%s2086_s11 + $0xd0] ss:$8 sps:$4 sm:$0xff]   ;;  %v1716_v6 = vld [vmem:[%s2086_s11 + $0xc4] ss:$8 sps:$4 sm:$0xff]   ;;  %v1720_v8 = vld [vmem:[%s2086_s11 + $0xc0] ss:$8 sps:$4 sm:$0xff]  }
  0x54   : > { %1201 = vmatpush1.bf16.msra.mxu0 %v1672_v40  ;;  %v1715_v5 = vld [vmem:[%s2086_s11 + $0x1d0] ss:$8 sps:$4 sm:$0xff]   ;;  %v1718_v7 = vld [vmem:[%s2086_s11 + $0x1c4] ss:$8 sps:$4 sm:$0xff]   ;;  %v1721_v9 = vld [vmem:[%s2086_s11 + $0x1c0] ss:$8 sps:$4 sm:$0xff]  }
  0x55   : > { %1242 = vmatpush1.bf16.msra.mxu1 %v1673_v41  ;;  %1202 = vmatprep.subr.bf16.mxu0 %v1674_v42  ;;  %v1722_v10 = vld [vmem:[%s2086_s11 + $0xb4] ss:$8 sps:$4 sm:$0xff]   ;;  %v1726_v12 = vld [vmem:[%s2086_s11 + $0xb0] ss:$8 sps:$4 sm:$0xff]   ;;  %v1728_v14 = vld [vmem:[%s2086_s11 + $0xa4] ss:$8 sps:$4 sm:$0xff]  }
  0x56   : > { %1243 = vmatprep.subr.bf16.mxu1 %v1676_v43  ;;  %v1724_v11 = vld [vmem:[%s2086_s11 + $0x1b4] ss:$8 sps:$4 sm:$0xff]   ;;  %v1727_v13 = vld [vmem:[%s2086_s11 + $0x1b0] ss:$8 sps:$4 sm:$0xff]   ;;  %v1730_v15 = vld [vmem:[%s2086_s11 + $0x1a4] ss:$8 sps:$4 sm:$0xff]  }
  0x57   : > { %v1732_v16 = vld [vmem:[%s2086_s11 + $0xa0] ss:$8 sps:$4 sm:$0xff]   ;;  %v1734_v18 = vld [vmem:[%s2086_s11 + $0x94] ss:$8 sps:$4 sm:$0xff]   ;;  %v1738_v20 = vld [vmem:[%s2086_s11 + $0x90] ss:$8 sps:$4 sm:$0xff]  }
  0x58   : > { %1203 = vmatpush1.bf16.msra.mxu0 %v1678_v44  ;;  %v1733_v17 = vld [vmem:[%s2086_s11 + $0x1a0] ss:$8 sps:$4 sm:$0xff]   ;;  %v1736_v19 = vld [vmem:[%s2086_s11 + $0x194] ss:$8 sps:$4 sm:$0xff]   ;;  %v1739_v21 = vld [vmem:[%s2086_s11 + $0x190] ss:$8 sps:$4 sm:$0xff]  }
  0x59   : > { %1244 = vmatpush1.bf16.msra.mxu1 %v1679_v45  ;;  %1204 = vmatprep.subr.bf16.mxu0 %v1680_v46  ;;  %v1740_v24 = vld [vmem:[%s2086_s11 + $0x84] ss:$8 sps:$4 sm:$0xff]   ;;  %v1744_v26 = vld [vmem:[%s2086_s11 + $0x80] ss:$8 sps:$4 sm:$0xff]   ;;  %v1752_v28 = vld [vmem:[%s2086_s11 + $0x274] ss:$8 sps:$4 sm:$0xff]  }
  0x5a   : > { %1245 = vmatprep.subr.bf16.mxu1 %v1682_v47  ;;  %v1742_v25 = vld [vmem:[%s2086_s11 + $0x184] ss:$8 sps:$4 sm:$0xff]   ;;  %v1745_v27 = vld [vmem:[%s2086_s11 + $0x180] ss:$8 sps:$4 sm:$0xff]   ;;  %v1750_v32 = vld [vmem:[%s2086_s11 + $0x270] ss:$8 sps:$4 sm:$0xff]  }
  0x5b   : > { %v648_v29 = vld [vmem:[%s2208_s0 + $0x10] sm:$0xff]  ;;  %s1506_s15 = sshll.u32 %s2220_s14, 2  ;;  %s1507_s25 = sshll.u32 %s2222_s17, 3  ;;  %vm1338_vm2 = vcmask 7168  }
  0x5c   : > { %1205 = vmatpush1.bf16.msra.mxu0 %v1684_v48  ;;  %v1514_v33 = vcombine.high %v648_v29, %v648_v29  ;;  %v1755_v34 = vld [vmem:[%s2086_s11 + $0x264] ss:$8 sps:$4 sm:$0xff]   ;;  %v1753_v22 = vld [vmem:[%s2086_s11 + $0x260] ss:$8 sps:$4 sm:$0xff]   ;;  %v1758_v23 = vld [vmem:[%s2086_s11 + $0x254] ss:$8 sps:$4 sm:$0xff]   ;;  %s627_s24 = scalar_lea.vmem %s2210_s2, %s1506_s15  ;;  %s632_s28 = scalar_lea.vmem %s2211_s3, %s1507_s25 }
  0x5d   : > { %1246 = vmatpush1.bf16.msra.mxu1 %v1685_v49  ;;  %1206 = vmatprep.subr.bf16.mxu0 %v1686_v50  ;;  %v1756_v35 = vld [vmem:[%s2086_s11 + $0x250] ss:$8 sps:$4 sm:$0xff]   ;;  %v1761_v36 = vld [vmem:[%s2086_s11 + $0x244] ss:$8 sps:$4 sm:$0xff]   ;;  %v1759_v37 = vld [vmem:[%s2086_s11 + $0x240] ss:$8 sps:$4 sm:$0xff]   ;;  %s636_s5 = scalar_lea.vmem %s2212_s4, %s1507_s25 }
  0x5e   : > { %1247 = vmatprep.subr.bf16.mxu1 %v1688_v51  ;;  %v1764_v38 = vld [vmem:[%s2086_s11 + $0x234] ss:$8 sps:$4 sm:$0xff]   ;;  %v1762_v39 = vld [vmem:[%s2086_s11 + $0x230] ss:$8 sps:$4 sm:$0xff]   ;;  %v1767_v40 = vld [vmem:[%s2086_s11 + $0x224] ss:$8 sps:$4 sm:$0xff]  }
  0x5f   : > { %v1765_v41 = vld [vmem:[%s2086_s11 + $0x220] ss:$8 sps:$4 sm:$0xff]   ;;  %v1770_v42 = vld [vmem:[%s2086_s11 + $0x214] ss:$8 sps:$4 sm:$0xff]   ;;  %v1768_v43 = vld [vmem:[%s2086_s11 + $0x210] ss:$8 sps:$4 sm:$0xff]  }
  0x60   : > { %1207 = vmatpush1.bf16.msra.mxu0 %v1690_v52  ;;  %v1773_v44 = vld [vmem:[%s2086_s11 + $0x204] ss:$8 sps:$4 sm:$0xff]   ;;  %v1771_v45 = vld [vmem:[%s2086_s11 + $0x200] ss:$8 sps:$4 sm:$0xff]   ;;  %v1779_v49 = vld [vmem:[%s2086_s11 + $0x294] ss:$8 sps:$4 sm:$0xff]  }
  0x61   : > { %1248 = vmatpush1.bf16.msra.mxu1 %v1691_v53  ;;  %1208 = vmatprep.subr.bf16.mxu0 %v1692_v54  ;;  %v1774_v46 = vld [vmem:[%s2086_s11 + $0x2a4] ss:$8 sps:$4 sm:$0x7f]   ;;  %v1776_v47 = vld [vmem:[%s2086_s11 + $0x2a0] ss:$8 sps:$4 sm:$0x7f]   ;;  %v1513_v53 = vcombine.low %v648_v29, %v648_v29 }
  0x62   : > { %1249 = vmatprep.subr.bf16.mxu1 %v1694_v55  ;;  %v1189_v48 = vsel %vm1187_vm1, %v1776_v47, 0  ;;  %v1777_v50 = vld [vmem:[%s2086_s11 + $0x290] ss:$8 sps:$4 sm:$0xff]   ;;  %v1782_v51 = vld [vmem:[%s2086_s11 + $0x284] ss:$8 sps:$4 sm:$0xff]  }
  0x63   : > { %v1780_v52 = vld [vmem:[%s2086_s11 + $0x280] ss:$8 sps:$4 sm:$0xff]  }
  0x64   : > { %1209 = vmatpush1.bf16.msra.mxu0 %v1696_v56 }
  0x65   : > { %1250 = vmatpush1.bf16.msra.mxu1 %v1697_v57  ;;  %1210 = vmatprep.subr.bf16.mxu0 %v1698_v58 }
  0x66   : > { %1251 = vmatprep.subr.bf16.mxu1 %v1700_v59 }
  0x68   : > { %1211 = vmatpush2.bf16.msra.mxu0 %v1702_v60 }
  0x69   : > { %1252 = vmatpush2.bf16.msra.mxu1 %v1703_v61  ;;  %1212 = vmatprep.subr.bf16.mxu0 %v1704_v62 }
  0x6a   : > { %1253 = vmatprep.subr.bf16.mxu1 %v1706_v63 }
  0x6c   : > { %1213 = vmatpush2.bf16.msra.mxu0 %v1708_v0 }
  0x6d   : > { %1254 = vmatpush2.bf16.msra.mxu1 %v1709_v1  ;;  %1214 = vmatprep.subr.bf16.mxu0 %v1710_v2 }
  0x6e   : > { %1255 = vmatprep.subr.bf16.mxu1 %v1712_v3 }
  0x70   : > { %1215 = vmatpush2.bf16.msra.mxu0 %v1714_v4 }
  0x71   : > { %1256 = vmatpush2.bf16.msra.mxu1 %v1715_v5  ;;  %1216 = vmatprep.subr.bf16.mxu0 %v1716_v6 }
  0x72   : > { %1257 = vmatprep.subr.bf16.mxu1 %v1718_v7 }
  0x74   : > { %1217 = vmatpush2.bf16.msra.mxu0 %v1720_v8 }
  0x75   : > { %1258 = vmatpush2.bf16.msra.mxu1 %v1721_v9  ;;  %1218 = vmatprep.subr.bf16.mxu0 %v1722_v10 }
  0x76   : > { %1259 = vmatprep.subr.bf16.mxu1 %v1724_v11 }
  0x78   : > { %1219 = vmatpush2.bf16.msra.mxu0 %v1726_v12 }
  0x79   : > { %1260 = vmatpush2.bf16.msra.mxu1 %v1727_v13  ;;  %1220 = vmatprep.subr.bf16.mxu0 %v1728_v14 }
  0x7a   : > { %1261 = vmatprep.subr.bf16.mxu1 %v1730_v15 }
  0x7c   : > { %1221 = vmatpush2.bf16.msra.mxu0 %v1732_v16 }
  0x7d   : > { %1262 = vmatpush2.bf16.msra.mxu1 %v1733_v17  ;;  %1222 = vmatprep.subr.bf16.mxu0 %v1734_v18 }
  0x7e   : > { %1263 = vmatprep.subr.bf16.mxu1 %v1736_v19 }
  0x80   : > { %1223 = vmatpush2.bf16.msra.mxu0 %v1738_v20 }
  0x81   : > { %1264 = vmatpush2.bf16.msra.mxu1 %v1739_v21  ;;  %1224 = vmatprep.subr.bf16.mxu0 %v1740_v24 }
  0x82   : > { %1265 = vmatprep.subr.bf16.mxu1 %v1742_v25 }
  0x84   : > { %1225 = vmatpush2.bf16.msra.mxu0 %v1744_v26 }
  0x85   : > { %1266 = vmatpush2.bf16.msra.mxu1 %v1745_v27  ;;  %1276 = vmatprep.subr.bf16.mxu0 %v1752_v28 }
  0x87   : > { %1227 = vmatmul.mubr.bf16.vlgmr.msra.gmra.mxu0 %v1509_v30 }
  0x88   : > { %1268 = vmatmul.mubr.bf16.vlgmr.msra.gmra.mxu1 %v1511_v31  ;;  %1277 = vmatpush1.bf16.msra.mxu0 %v1750_v32 }
  0x89   : > { %1602 = vmatprep.mubr.msk.bf16.mxu0 %vm1183_vm0, %v1514_v33  ;;  %1278 = vmatprep.subr.bf16.mxu0 %v1755_v34 }
  0x8c   : > { %1279 = vmatpush1.bf16.msra.mxu0 %v1753_v22 }
  0x8d   : > { %1280 = vmatprep.subr.bf16.mxu0 %v1758_v23 }
  0x90   : > { %1281 = vmatpush1.bf16.msra.mxu0 %v1756_v35 }
  0x91   : > { %1282 = vmatprep.subr.bf16.mxu0 %v1761_v36 }
  0x94   : > { %1283 = vmatpush1.bf16.msra.mxu0 %v1759_v37 }
  0x95   : > { %1284 = vmatprep.subr.bf16.mxu0 %v1764_v38 }
  0x98   : > { %1285 = vmatpush1.bf16.msra.mxu0 %v1762_v39 }
  0x99   : > { %1286 = vmatprep.subr.bf16.mxu0 %v1767_v40 }
  0x9c   : > { %1287 = vmatpush1.bf16.msra.mxu0 %v1765_v41 }
  0x9d   : > { %1288 = vmatprep.subr.bf16.mxu0 %v1770_v42 }
  0xa0   : > { %1289 = vmatpush1.bf16.msra.mxu0 %v1768_v43 }
  0xa1   : > { %1290 = vmatprep.subr.bf16.mxu0 %v1773_v44 }
  0xa4   : > { %1291 = vmatpush1.bf16.msra.mxu0 %v1771_v45 }
  0xa5   : > { %1601 = vmatprep.subr.msk.bf16.mxu0 %vm1187_vm1, %v1774_v46 }
  0xa8   : > { %1303 = vmatpush2.bf16.msra.mxu0 %v1189_v48 }
  0xa9   : > { %1304 = vmatprep.subr.bf16.mxu0 %v1779_v49 }
  0xac   : > { %1305 = vmatpush2.bf16.msra.mxu0 %v1777_v50 }
  0xad   : > { %1306 = vmatprep.subr.bf16.mxu0 %v1782_v51 }
  0xb0   : > { %1307 = vmatpush2.bf16.msra.mxu0 %v1780_v52 }
  0xb3   : > { %1309 = vmatmul.mubr.bf16.vlgmr.msra.gmra.mxu0 %v1513_v53 }
 0x147   : > { %v1228_v54 = vpop.f32.mrf.mxu0 }
 0x148   : > { %v1269_v55 = vpop.f32.mrf.mxu1 }
 0x149   : > { %v1230_v56 = vpop.f32.mrf.mxu0  ;;  %v1270_v63 = vadd.f32 %v1269_v55, %v1228_v54 }
 0x14a   : > { %v1271_v57 = vpop.f32.mrf.mxu1 }
 0x14b   : > { %v1232_v58 = vpop.f32.mrf.mxu0  ;;  %v1272_v0 = vadd.f32 %v1271_v57, %v1230_v56 }
 0x14c   : > { %v1273_v59 = vpop.f32.mrf.mxu1 }
 0x14d   : > { %v1233_v60 = vpop.f32.mrf.mxu0 }
 0x14e   : > { %v1274_v61 = vpop.f32.mrf.mxu1 }
 0x173   : > { %v1310_v62 = vpop.f32.mrf.mxu0 }
 0x174   : > { %v1311_v2 = vadd.f32 %v1310_v62, %v1270_v63 }
 0x175   : > { %v1312_v1 = vpop.f32.mrf.mxu0 }
 0x176   : > { %v1313_v3 = vadd.f32 %v1312_v1, %v1272_v0  ;;  %v1340_v9 = vmul.f32 %v1311_v2, %v1311_v2 }
 0x177   : > { %v1314_v4 = vpop.f32.mrf.mxu0 }
 0x178   : > { %v1607_v5 = vpack.c.bf16 %v1313_v3, %v1311_v2  ;;  %v1335_v6 = vadd.f32 %v1313_v3, %v1311_v2  ;;  %v1341_v7 = vmul.f32 %v1313_v3, %v1313_v3 }
 0x179   : > { %v1315_v8 = vpop.f32.mrf.mxu0 }
 0x17a   : > { %1334 = vst [vmem:[%s627_s24] sm:$0xff] %v1607_v5  ;;  %1336 = vadd.xlane.f32.xlu0 %v1335_v6  ;;  %v1342_v10 = vadd.f32 %v1341_v7, %v1340_v9 }
 0x17e   : > { %1343 = vadd.xlane.f32.xlu0 %v1342_v10 }
 0x203   : > { %v1337_v11 = vpop.xlane.xlu0 %1336 }
 0x204   : > { %1339 = vst.msk [vmem:[%s632_s28] sm:$0xff] %vm1338_vm2, %v1337_v11 }
 0x207   : > { %v1344_v12 = vpop.xlane.xlu0 %1343 }
 0x208   : > { %1345 = vst.msk [vmem:[%s636_s5] sm:$0xff] %vm1338_vm2, %v1344_v12 }
 0x209 PF: > { %s15_s19 = sadd.s32 1, %s1823_s19   ;;  %s2213_s15 = smov %s1811_s16 }
 0x20a   : > { %p12_p11 = scmp.ge.s32.totalorder %s15_s19, 4   ;;  %s2214_s16 = smov %s1885_s23 }
 0x20b   : > { %s2215_s17 = smov %s1819_s18  ;;  %s2216_s18 = smov %s2218_s20 }
 0x20c   :  { %14 = sbr.rel (!%p12_p11) target bundleno = 3 (0x3), region = 136 }

// kernel: resnet_generator_forward.48
= control target key start
LH: loop header
LB: loop body
LE: loop exit
PB: predicated region body
PF: predicated region fallthrough
CT: control target
= control target key end

     0   :  { %s312_s12 = smov 0   ;;  %s335_s0 = inlined_call_operand.vmem [shape: bf16[8,512], index: 0, kind: input, shape index: {}]   ;;  %s336_s1 = inlined_call_operand.vmem [shape: f32[8,1], index: 1, kind: input, shape index: {}]   ;;  %s337_s2 = inlined_call_operand.vmem [shape: f32[8,1], index: 2, kind: input, shape index: {}]   ;;  %s338_s3 = inlined_call_operand.vmem [shape: bf16[8,512], index: 3, kind: output, shape index: {}]  }
   0x1 LB: > { %s260_s13 = sadd.s32 4294967295, %s289_s12   ;;  %p264_p0 = scmp.ge.s32.totalorder %s289_s12, 1  ;;  %s289_s12 = sphi %s312_s12, %s13_s12  }
   0x2   : > { %p138_p1 = scmp.lt.s32.totalorder %s289_s12, 3 }
   0x4   : > { %p139_p2 = pnand %p264_p0, %p138_p1 }
   0x5   : > { %s265_s18 = sshll.u32 (!%p139_p2), %s260_s13, 1 }
   0x6   : > { %142 = sbr.rel (%p139_p2) target bundleno = 148 (0x94), region = 32  ;;  %p163_p3 = scmp.lt.s32.totalorder (!%p139_p2), %s265_s18, 3 }
   0xb   : > { %v177_v0 = vld [vmem:[%s336_s1] sm:$0xff]  ;;  %v291_v1 = vmov 0   ;;  %s340_s18 = smov (!%p163_p3, %s265_s18), 3 }
   0xc   : > { %282 = vset.pattern.permute.xlu0 %v291_v1  ;;  %v185_v2 = vld [vmem:[%s337_s2] sm:$0xff]  ;;  %s266_s19 = sshll.u32 %s340_s18, 2 }
   0xd   : > { %180 = vperm.xlu0 %282, %v177_v0   ;;  %s166_s22 = scalar_lea.vmem %s335_s0, %s266_s19  ;;  %s172_s25 = scalar_lea.vmem %s338_s3, %s266_s19 }
   0xe   : > { %v174_v3 = vld [vmem:[%s166_s22] sm:$0xff] }
   0xf   : > { %v175_v4 = vunpack.c.l.bf16 %v174_v3  ;;  %v176_v5 = vunpack.c.h.bf16 %v174_v3 }
  0x11   : > { %188 = vperm.xlu0 %282, %v185_v2  }
  0x88   : > { %v181_v6 = vpop.permute.xlu0 %180 }
  0x89   : > { %v183_v7 = vmul.f32 %v181_v6, %v175_v4  ;;  %v184_v8 = vmul.f32 %v181_v6, %v176_v5 }
  0x8c   : > { %v189_v9 = vpop.permute.xlu0 %188 }
  0x8d   : > { %v191_v10 = vadd.f32 %v189_v9, %v183_v7  ;;  %v192_v11 = vadd.f32 %v189_v9, %v184_v8 }
  0x8f   : > { %v193_v12 = vmax.f32 %v191_v10, 0.0  ;;  %v194_v13 = vmax.f32 %v192_v11, 0.0 }
  0x91   : > { %v272_v14 = vpack.c.bf16 %v194_v13, %v193_v12 }
  0x93   : > { %203 = vst [vmem:[%s172_s25] sm:$0xff] %v272_v14 }
  0x94 PF: > { %s13_s12 = sadd.s32 1, %s289_s12  }
  0x95   : > { %p10_p4 = scmp.ge.s32.totalorder %s13_s12, 4  }
  0x97   :  { %12 = sbr.rel (!%p10_p4) target bundleno = 1 (0x1), region = 62 }

// kernel: resnet_generator_forward.50
= control target key start
LH: loop header
LB: loop body
LE: loop exit
PB: predicated region body
PF: predicated region fallthrough
CT: control target
= control target key end

     0   :  { %v78_v0 = vmov 0   ;;  %s117_s2 = inlined_call_operand.vmem [shape: f32[16,1], index: 2, kind: input, shape index: {}]   ;;  %s118_s1 = inlined_call_operand.vmem [shape: f32[16,1], index: 1, kind: input, shape index: {}]   ;;  %s119_s0 = inlined_call_operand.vmem [shape: bf16[16,128], index: 0, kind: input, shape index: {}]   ;;  %s120_s3 = inlined_call_operand.vmem [shape: bf16[16,128], index: 3, kind: output, shape index: {}]  }
   0x1   :  { %77 = vset.pattern.permute.xlu1 %v78_v0  ;;  %76 = vset.pattern.permute.xlu0 %v78_v0  ;;  %v32_v1 = vld [vmem:[%s117_s2] sm:$0xff]  ;;  %v33_v3 = vld [vmem:[%s117_s2 + $0x8] sm:$0xff] }
   0x2   :  { %v18_v2 = vld [vmem:[%s118_s1] sm:$0xff]  ;;  %36 = vperm.xlu1 %77, %v32_v1   ;;  %v19_v4 = vld [vmem:[%s118_s1 + $0x8] sm:$0xff] }
   0x3   :  { %22 = vperm.xlu0 %76, %v18_v2   ;;  %v67_v5 = vld [vmem:[%s119_s0] sm:$0xff]  }
   0x4   :  { %v68_v6 = vunpack.c.l.bf16 %v67_v5  ;;  %v69_v10 = vunpack.c.h.bf16 %v67_v5 }
   0x6   :  { %41 = vperm.xlu1 %77, %v33_v3  }
   0x7   :  { %27 = vperm.xlu0 %76, %v19_v4  }
  0x7d   :  { %v37_v7 = vpop.permute.xlu1 %36 }
  0x7e   :  { %v23_v8 = vpop.permute.xlu0 %22 }
  0x7f   :  { %v30_v9 = vmul.f32 %v68_v6, %v23_v8 }
  0x81   :  { %v44_v12 = vadd.f32 %v37_v7, %v30_v9  ;;  %v42_v14 = vpop.permute.xlu1 %41 }
  0x82   :  { %v28_v11 = vpop.permute.xlu0 %27 }
  0x83   :  { %v31_v13 = vmul.f32 %v69_v10, %v28_v11  ;;  %v46_v16 = vmax.f32 %v44_v12, 0.0 }
  0x85   :  { %v45_v15 = vadd.f32 %v42_v14, %v31_v13 }
  0x87   :  { %v47_v17 = vmax.f32 %v45_v15, 0.0 }
  0x89   :  { %v73_v18 = vpack.c.bf16 %v47_v17, %v46_v16 }
  0x8b   :  { %74 = vst [vmem:[%s120_s3] sm:$0xff] %v73_v18  }

// kernel: resnet_generator_forward.49
= control target key start
LH: loop header
LB: loop body
LE: loop exit
PB: predicated region body
PF: predicated region fallthrough
CT: control target
= control target key end

     0   :  { %v281_v0 = vmov 0   ;;  %vm142_vm0 = vcmask 719872   ;;  %vm146_vm1 = vcmask 1043456   ;;  %vm214_vm2 = vcmask 7168   ;;  %s370_s1 = inlined_call_operand.vmem [shape: bf16[216,128], index: 1, kind: input, shape index: {}]   ;;  %s371_s0 = inlined_call_operand.vmem [shape: bf16[16,216], index: 0, kind: input, shape index: {}]   ;;  %s372_s2 = inlined_call_operand.vmem [shape: bf16[16,128], index: 2, kind: output, shape index: {0}]   ;;  %s373_s3 = inlined_call_operand.vmem [shape: f32[1,16,1], index: 3, kind: output, shape index: {1}]   ;;  %s374_s4 = inlined_call_operand.vmem [shape: f32[1,16,1], index: 4, kind: output, shape index: {2}]  }
   0x1   :  { %150 = vmatprep.subr.bf16.mxu0 %v281_v0  ;;  %v264_v1 = vld [vmem:[%s370_s1 + $0x38] sm:$0xff]   ;;  %v265_v2 = vld [vmem:[%s370_s1 + $0x30] sm:$0xff]   ;;  %v266_v3 = vld [vmem:[%s370_s1 + $0x28] sm:$0xff]  }
   0x2   :  { %151 = vmatpush1.bf16.msra.mxu0 %v264_v1  ;;  %v267_v4 = vld [vmem:[%s370_s1 + $0x20] sm:$0xff]   ;;  %v268_v5 = vld [vmem:[%s370_s1 + $0x18] sm:$0xff]   ;;  %v269_v7 = vld [vmem:[%s370_s1 + $0x10] sm:$0xff]  }
   0x3   :  { %152 = vmatprep.subr.bf16.mxu0 %v281_v0  ;;  %v280_v6 = vld [vmem:[%s371_s0 + $0x4] ss:$8 sps:$4 sm:$0xff]   ;;  %v272_v10 = vld [vmem:[%s370_s1 + $0x68] ss:$0 sps:$4 sm:$0xff]   ;;  %v274_v13 = vld [vmem:[%s370_s1 + $0x58] sm:$0xff]  }
   0x4   :  { %253 = vmatprep.mubr.msk.bf16.mxu0 %vm142_vm0, %v280_v6  ;;  %v270_v8 = vld [vmem:[%s370_s1 + $0x8] sm:$0xff]   ;;  %v271_v9 = vld [vmem:[%s370_s1] sm:$0xff]   ;;  %v148_v11 = vsel %vm146_vm1, %v272_v10, 0  ;;  %v275_v14 = vld [vmem:[%s370_s1 + $0x50] sm:$0xff]  }
   0x5   :  { %v273_v12 = vld [vmem:[%s370_s1 + $0x60] sm:$0xff]   ;;  %v276_v15 = vld [vmem:[%s370_s1 + $0x48] sm:$0xff]  }
   0x6   :  { %153 = vmatpush1.bf16.msra.mxu0 %v265_v2  ;;  %v277_v16 = vld [vmem:[%s370_s1 + $0x40] sm:$0xff]  }
   0x7   :  { %154 = vmatprep.subr.bf16.mxu0 %v281_v0  ;;  %v278_v17 = vld [vmem:[%s371_s0] ss:$8 sps:$4 sm:$0xff]  }
   0xa   :  { %155 = vmatpush1.bf16.msra.mxu0 %v266_v3 }
   0xb   :  { %156 = vmatprep.subr.bf16.mxu0 %v281_v0 }
   0xe   :  { %157 = vmatpush1.bf16.msra.mxu0 %v267_v4 }
   0xf   :  { %158 = vmatprep.subr.bf16.mxu0 %v281_v0 }
  0x12   :  { %159 = vmatpush1.bf16.msra.mxu0 %v268_v5 }
  0x13   :  { %160 = vmatprep.subr.bf16.mxu0 %v281_v0 }
  0x16   :  { %161 = vmatpush1.bf16.msra.mxu0 %v269_v7 }
  0x17   :  { %162 = vmatprep.subr.bf16.mxu0 %v281_v0 }
  0x1a   :  { %163 = vmatpush1.bf16.msra.mxu0 %v270_v8 }
  0x1b   :  { %164 = vmatprep.subr.bf16.mxu0 %v281_v0 }
  0x1e   :  { %165 = vmatpush1.bf16.msra.mxu0 %v271_v9 }
  0x1f   :  { %170 = vmatprep.subr.bf16.mxu0 %v281_v0 }
  0x22   :  { %171 = vmatpush2.bf16.msra.mxu0 %v148_v11 }
  0x23   :  { %172 = vmatprep.subr.bf16.mxu0 %v281_v0 }
  0x26   :  { %173 = vmatpush2.bf16.msra.mxu0 %v273_v12 }
  0x27   :  { %174 = vmatprep.subr.bf16.mxu0 %v281_v0 }
  0x2a   :  { %175 = vmatpush2.bf16.msra.mxu0 %v274_v13 }
  0x2b   :  { %176 = vmatprep.subr.bf16.mxu0 %v281_v0 }
  0x2e   :  { %177 = vmatpush2.bf16.msra.mxu0 %v275_v14 }
  0x2f   :  { %178 = vmatprep.subr.bf16.mxu0 %v281_v0 }
  0x32   :  { %179 = vmatpush2.bf16.msra.mxu0 %v276_v15 }
  0x33   :  { %180 = vmatprep.subr.bf16.mxu0 %v281_v0 }
  0x36   :  { %181 = vmatpush2.bf16.msra.mxu0 %v277_v16 }
  0x39   :  { %183 = vmatmul.mubr.bf16.vlgmr.msra.gmra.mxu0 %v278_v17 }
  0xf9   :  { %v184_v18 = vpop.f32.mrf.mxu0 }
  0xfa   :  { %210 = vadd.xlane.f32.xlu0 %v184_v18  ;;  %v217_v19 = vmul.f32 %v184_v18, %v184_v18 }
  0xfb   :  { %v186_v20 = vpop.f32.mrf.mxu0 }
  0xfc   :  { %219 = vadd.xlane.f32.xlu1 %v217_v19 }
  0xfd   :  { %v187_v21 = vpop.f32.mrf.mxu0 }
  0xfe   :  { %v261_v22 = vpack.c.bf16 %v187_v21, %v184_v18  ;;  %212 = vadd.xlane.f32.xlu0 %v187_v21  ;;  %v218_v23 = vmul.f32 %v187_v21, %v187_v21 }
  0xff   :  { %v189_v24 = vpop.f32.mrf.mxu0 }
 0x100   :  { %262 = vst [vmem:[%s372_s2] sm:$0xff] %v261_v22   ;;  %221 = vadd.xlane.f32.xlu1 %v218_v23 }
 0x183   :  { %v211_v25 = vpop.xlane.xlu0 %210 }
 0x184   :  { %215 = vst.msk [vmem:[%s373_s3] sm:$0xff] %vm214_vm2, %v211_v25 }
 0x185   :  { %v220_v26 = vpop.xlane.xlu1 %219 }
 0x186   :  { %223 = vst.msk [vmem:[%s374_s4] sm:$0xff] %vm214_vm2, %v220_v26 }
 0x187   :  { %v213_v27 = vpop.xlane.xlu0 %212 }
 0x188   :  { %216 = vst.msk [vmem:[%s373_s3 + $0x8] sm:$0xff] %vm214_vm2, %v213_v27 }
 0x189   :  { %v222_v28 = vpop.xlane.xlu1 %221 }
 0x18a   :  { %224 = vst.msk [vmem:[%s374_s4 + $0x8] sm:$0xff] %vm214_vm2, %v222_v28 }

// kernel: resnet_generator_forward.51
= control target key start
LH: loop header
LB: loop body
LE: loop exit
PB: predicated region body
PF: predicated region fallthrough
CT: control target
= control target key end

     0   :  { %v594_v0 = vmov 0   ;;  %vm289_vm0 = vcmask 392192   ;;  %vm437_vm1 = vcmask 7168   ;;  %s776_s1 = inlined_call_operand.vmem [shape: bf16[432,128], index: 1, kind: input, shape index: {}]   ;;  %s777_s0 = inlined_call_operand.vmem [shape: bf16[32,432], index: 0, kind: input, shape index: {}]   ;;  %s778_s2 = inlined_call_operand.vmem [shape: bf16[32,128], index: 2, kind: output, shape index: {0}]   ;;  %s779_s3 = inlined_call_operand.vmem [shape: f32[1,32,1], index: 3, kind: output, shape index: {1}]   ;;  %s780_s4 = inlined_call_operand.vmem [shape: f32[1,32,1], index: 4, kind: output, shape index: {2}]  }
   0x1   :  { %345 = vmatprep.subr.bf16.mxu1 %v594_v0  ;;  %v555_v1 = vld [vmem:[%s776_s1 + $0xb8] sm:$0xff]   ;;  %v558_v4 = vld [vmem:[%s776_s1 + $0xb0] sm:$0xff]   ;;  %v561_v7 = vld [vmem:[%s776_s1 + $0xa8] sm:$0xff]  }
   0x2   :  { %v556_v2 = vld [vmem:[%s776_s1 + $0x78] sm:$0xff]   ;;  %346 = vmatpush1.bf16.msra.mxu1 %v555_v1  ;;  %v559_v5 = vld [vmem:[%s776_s1 + $0x70] sm:$0xff]   ;;  %v562_v8 = vld [vmem:[%s776_s1 + $0x68] sm:$0xff]  }
   0x3   :  { %v557_v3 = vld [vmem:[%s776_s1 + $0x38] sm:$0xff]   ;;  %526 = vmatprep.subr.bf16.mxu0 %v556_v2  ;;  %347 = vmatprep.subr.bf16.mxu1 %v594_v0  ;;  %v560_v6 = vld [vmem:[%s776_s1 + $0x30] sm:$0xff]   ;;  %v563_v9 = vld [vmem:[%s776_s1 + $0x28] sm:$0xff]  }
   0x4   :  { %527 = vmatpush3.bf16.msra.mxu0 %v557_v3  ;;  %v564_v10 = vld [vmem:[%s776_s1 + $0xa0] sm:$0xff]   ;;  %v568_v13 = vld [vmem:[%s776_s1 + $0x58] sm:$0xff]   ;;  %v571_v16 = vld [vmem:[%s776_s1 + $0x50] sm:$0xff]  }
   0x5   :  { %528 = vmatprep.subr.bf16.mxu0 %v559_v5  ;;  %v565_v11 = vld [vmem:[%s776_s1 + $0x60] sm:$0xff]   ;;  %v567_v14 = vld [vmem:[%s776_s1 + $0x98] sm:$0xff]   ;;  %v570_v17 = vld [vmem:[%s776_s1 + $0x90] sm:$0xff]  }
   0x6   :  { %348 = vmatpush1.bf16.msra.mxu1 %v558_v4  ;;  %v566_v12 = vld [vmem:[%s776_s1 + $0x20] sm:$0xff]   ;;  %v569_v15 = vld [vmem:[%s776_s1 + $0x18] sm:$0xff]   ;;  %v572_v18 = vld [vmem:[%s776_s1 + $0x10] sm:$0xff]  }
   0x7   :  { %349 = vmatprep.subr.bf16.mxu1 %v594_v0  ;;  %v574_v19 = vld [vmem:[%s776_s1 + $0x48] sm:$0xff]   ;;  %v577_v22 = vld [vmem:[%s776_s1 + $0x40] sm:$0xff]   ;;  %v582_v26 = vld [vmem:[%s776_s1 + $0xd0] sm:$0xff]  }
   0x8   :  { %529 = vmatpush3.bf16.msra.mxu0 %v560_v6  ;;  %v573_v20 = vld [vmem:[%s776_s1 + $0x88] sm:$0xff]   ;;  %v581_v23 = vld [vmem:[%s777_s0 + $0x4] ss:$16 sps:$4 sm:$0xff]   ;;  %v579_v28 = vld [vmem:[%s777_s0] ss:$16 sps:$4 sm:$0xff]  }
   0x9   :  { %530 = vmatprep.subr.bf16.mxu0 %v562_v8  ;;  %v575_v21 = vld [vmem:[%s776_s1 + $0x8] sm:$0xff]   ;;  %v576_v24 = vld [vmem:[%s776_s1 + $0x80] sm:$0xff]   ;;  %328 = vmatprep.mubr.bf16.mxu0 %v581_v23 }
   0xa   :  { %350 = vmatpush1.bf16.msra.mxu1 %v561_v7  ;;  %v578_v25 = vld [vmem:[%s776_s1] sm:$0xff]   ;;  %v589_v27 = vld [vmem:[%s777_s0 + $0xc] ss:$16 sps:$4 sm:$0xff]   ;;  %v587_v33 = vld [vmem:[%s777_s0 + $0x8] ss:$16 sps:$4 sm:$0xff]  }
   0xb   :  { %351 = vmatprep.subr.bf16.mxu1 %v594_v0  ;;  %v585_v29 = vld [vmem:[%s777_s0 + $0x24] ss:$16 sps:$4 sm:$0xff]   ;;  %505 = vmatprep.mubr.msk.bf16.mxu1 %vm289_vm0, %v589_v27  ;;  %v583_v30 = vld [vmem:[%s776_s1 + $0xc8] sm:$0xff]   ;;  %v590_v32 = vld [vmem:[%s777_s0 + $0x20] ss:$16 sps:$4 sm:$0xff]  }
   0xc   :  { %531 = vmatpush3.bf16.msra.mxu0 %v563_v9  ;;  %v584_v31 = vld [vmem:[%s776_s1 + $0xc0] sm:$0xff]   ;;  %v591_v34 = vld [vmem:[%s777_s0 + $0x2c] ss:$16 sps:$4 sm:$0xff]   ;;  %v593_v35 = vld [vmem:[%s777_s0 + $0x28] ss:$16 sps:$4 sm:$0xff]  }
   0xd   :  { %532 = vmatprep.subr.bf16.mxu0 %v565_v11 }
   0xe   :  { %352 = vmatpush1.bf16.msra.mxu1 %v564_v10 }
   0xf   :  { %353 = vmatprep.subr.bf16.mxu1 %v594_v0 }
  0x10   :  { %533 = vmatpush3.bf16.msra.mxu0 %v566_v12 }
  0x11   :  { %534 = vmatprep.subr.bf16.mxu0 %v568_v13 }
  0x12   :  { %354 = vmatpush1.bf16.msra.mxu1 %v567_v14 }
  0x13   :  { %355 = vmatprep.subr.bf16.mxu1 %v594_v0 }
  0x14   :  { %535 = vmatpush3.bf16.msra.mxu0 %v569_v15 }
  0x15   :  { %536 = vmatprep.subr.bf16.mxu0 %v571_v16 }
  0x16   :  { %356 = vmatpush1.bf16.msra.mxu1 %v570_v17 }
  0x17   :  { %357 = vmatprep.subr.bf16.mxu1 %v594_v0 }
  0x18   :  { %537 = vmatpush3.bf16.msra.mxu0 %v572_v18 }
  0x19   :  { %538 = vmatprep.subr.bf16.mxu0 %v574_v19 }
  0x1a   :  { %358 = vmatpush1.bf16.msra.mxu1 %v573_v20 }
  0x1b   :  { %359 = vmatprep.subr.bf16.mxu1 %v594_v0 }
  0x1c   :  { %539 = vmatpush3.bf16.msra.mxu0 %v575_v21 }
  0x1d   :  { %540 = vmatprep.subr.bf16.mxu0 %v577_v22 }
  0x1e   :  { %360 = vmatpush1.bf16.msra.mxu1 %v576_v24 }
  0x1f   :  { %371 = vmatprep.subr.bf16.mxu1 %v594_v0 }
  0x20   :  { %541 = vmatpush3.bf16.msra.mxu0 %v578_v25 }
  0x22   :  { %372 = vmatpush2.bf16.msra.mxu1 %v582_v26 }
  0x23   :  { %329 = vmatmul.mubr.bf16.vlgmr.msra.gmra.mxu0 %v579_v28  ;;  %373 = vmatprep.subr.bf16.mxu1 %v594_v0 }
  0x24   :  { %336 = vmatprep.mubr.bf16.mxu0 %v585_v29 }
  0x26   :  { %374 = vmatpush2.bf16.msra.mxu1 %v583_v30 }
  0x27   :  { %375 = vmatprep.subr.bf16.mxu1 %v594_v0 }
  0x2a   :  { %376 = vmatpush2.bf16.msra.mxu1 %v584_v31 }
  0x2b   :  { %337 = vmatmul.mubr.bf16.gmra.mxu0 %v590_v32 }
  0x2d   :  { %378 = vmatmul.mubr.bf16.vlgmr.msra.gmra.mxu1 %v587_v33 }
  0x2e   :  { %506 = vmatprep.mubr.msk.bf16.mxu1 %vm289_vm0, %v591_v34 }
  0x35   :  { %386 = vmatmul.mubr.bf16.gmra.mxu1 %v593_v35 }
  0xe3   :  { %v542_v36 = vpop.f32.mrf.mxu0 }
  0xe5   :  { %v543_v37 = vpop.f32.mrf.mxu0 }
  0xe6   :  { %v544_v41 = vadd.f32 %v543_v37, %v542_v36 }
  0xe7   :  { %v545_v38 = vpop.f32.mrf.mxu0 }
  0xe9   :  { %v546_v39 = vpop.f32.mrf.mxu0 }
  0xea   :  { %v547_v46 = vadd.f32 %v546_v39, %v545_v38 }
  0xeb   :  { %v548_v40 = vpop.f32.mrf.mxu0 }
  0xed   :  { %v379_v42 = vpop.f32.mrf.mxu1  ;;  %v549_v43 = vpop.f32.mrf.mxu0 }
  0xee   :  { %v380_v44 = vadd.f32 %v544_v41, %v379_v42  ;;  %v550_v49 = vadd.f32 %v549_v43, %v548_v40 }
  0xef   :  { %v381_v45 = vpop.f32.mrf.mxu1  ;;  %v551_v47 = vpop.f32.mrf.mxu0 }
  0xf0   :  { %429 = vadd.xlane.f32.xlu0 %v380_v44  ;;  %v442_v51 = vmul.f32 %v380_v44, %v380_v44 }
  0xf1   :  { %v382_v48 = vpop.f32.mrf.mxu1  ;;  %v552_v55 = vpop.f32.mrf.mxu0 }
  0xf2   :  { %v383_v50 = vadd.f32 %v547_v46, %v382_v48  ;;  %v553_v59 = vadd.f32 %v552_v55, %v551_v47 }
  0xf3   :  { %v384_v52 = vpop.f32.mrf.mxu1 }
  0xf4   :  { %v518_v53 = vpack.c.bf16 %v383_v50, %v380_v44  ;;  %446 = vadd.xlane.f32.xlu0 %v442_v51  ;;  %v443_v54 = vmul.f32 %v383_v50, %v383_v50 }
  0xf5   :  { %v387_v56 = vpop.f32.mrf.mxu1 }
  0xf6   :  { %519 = vst [vmem:[%s778_s2] sm:$0xff] %v518_v53   ;;  %v388_v57 = vadd.f32 %v550_v49, %v387_v56  ;;  %448 = vadd.xlane.f32.xlu1 %v443_v54 }
  0xf7   :  { %v389_v58 = vpop.f32.mrf.mxu1 }
  0xf8   :  { %431 = vadd.xlane.f32.xlu0 %v383_v50  ;;  %v444_v62 = vmul.f32 %v388_v57, %v388_v57 }
  0xf9   :  { %v390_v60 = vpop.f32.mrf.mxu1 }
  0xfa   :  { %v391_v61 = vadd.f32 %v553_v59, %v390_v60  ;;  %433 = vadd.xlane.f32.xlu1 %v388_v57 }
  0xfb   :  { %v392_v63 = vpop.f32.mrf.mxu1 }
  0xfc   :  { %v523_v0 = vpack.c.bf16 %v391_v61, %v388_v57  ;;  %450 = vadd.xlane.f32.xlu0 %v444_v62  ;;  %v445_v1 = vmul.f32 %v391_v61, %v391_v61 }
  0xfe   :  { %525 = vst [vmem:[%s778_s2 + $0x8] sm:$0xff] %v523_v0   ;;  %435 = vadd.xlane.f32.xlu1 %v391_v61 }
 0x102   :  { %452 = vadd.xlane.f32.xlu1 %v445_v1 }
 0x179   :  { %v430_v2 = vpop.xlane.xlu0 %429 }
 0x17a   :  { %438 = vst.msk [vmem:[%s779_s3] sm:$0xff] %vm437_vm1, %v430_v2 }
 0x17d   :  { %v447_v3 = vpop.xlane.xlu0 %446 }
 0x17e   :  { %454 = vst.msk [vmem:[%s780_s4] sm:$0xff] %vm437_vm1, %v447_v3 }
 0x17f   :  { %v449_v4 = vpop.xlane.xlu1 %448 }
 0x180   :  { %455 = vst.msk [vmem:[%s780_s4 + $0x8] sm:$0xff] %vm437_vm1, %v449_v4 }
 0x181   :  { %v432_v5 = vpop.xlane.xlu0 %431 }
 0x182   :  { %439 = vst.msk [vmem:[%s779_s3 + $0x8] sm:$0xff] %vm437_vm1, %v432_v5 }
 0x183   :  { %v434_v6 = vpop.xlane.xlu1 %433 }
 0x184   :  { %440 = vst.msk [vmem:[%s779_s3 + $0x10] sm:$0xff] %vm437_vm1, %v434_v6 }
 0x185   :  { %v451_v7 = vpop.xlane.xlu0 %450 }
 0x186   :  { %456 = vst.msk [vmem:[%s780_s4 + $0x10] sm:$0xff] %vm437_vm1, %v451_v7 }
 0x187   :  { %v436_v8 = vpop.xlane.xlu1 %435 }
 0x188   :  { %441 = vst.msk [vmem:[%s779_s3 + $0x18] sm:$0xff] %vm437_vm1, %v436_v8 }
 0x18b   :  { %v453_v9 = vpop.xlane.xlu1 %452 }
 0x18c   :  { %457 = vst.msk [vmem:[%s780_s4 + $0x18] sm:$0xff] %vm437_vm1, %v453_v9 }

// kernel: resnet_generator_forward.52
= control target key start
LH: loop header
LB: loop body
LE: loop exit
PB: predicated region body
PF: predicated region fallthrough
CT: control target
= control target key end

     0   :  { %v137_v0 = vmov 0   ;;  %s194_s1 = inlined_call_operand.vmem [shape: f32[32,1], index: 1, kind: input, shape index: {}]   ;;  %s195_s2 = inlined_call_operand.vmem [shape: f32[32,1], index: 2, kind: input, shape index: {}]   ;;  %s196_s0 = inlined_call_operand.vmem [shape: bf16[32,128], index: 0, kind: input, shape index: {}]   ;;  %s197_s3 = inlined_call_operand.vmem [shape: bf16[32,128], index: 3, kind: output, shape index: {}]  }
   0x1   :  { %136 = vset.pattern.permute.xlu1 %v137_v0  ;;  %135 = vset.pattern.permute.xlu0 %v137_v0  ;;  %v24_v1 = vld [vmem:[%s194_s1 + $0x10] sm:$0xff]  ;;  %v22_v2 = vld [vmem:[%s194_s1] sm:$0xff]  ;;  %v25_v3 = vld [vmem:[%s194_s1 + $0x18] sm:$0xff] }
   0x2   :  { %38 = vperm.xlu1 %136, %v24_v1   ;;  %28 = vperm.xlu0 %135, %v22_v2   ;;  %v23_v4 = vld [vmem:[%s194_s1 + $0x8] sm:$0xff]  ;;  %v50_v6 = vld [vmem:[%s195_s2] sm:$0xff]  ;;  %v53_v7 = vld [vmem:[%s195_s2 + $0x18] sm:$0xff] }
   0x3   :  { %v51_v5 = vld [vmem:[%s195_s2 + $0x8] sm:$0xff]  ;;  %v52_v8 = vld [vmem:[%s195_s2 + $0x10] sm:$0xff]  ;;  %v115_v11 = vld [vmem:[%s196_s0] sm:$0xff]  }
   0x4   :  { %v116_v12 = vunpack.c.l.bf16 %v115_v11  ;;  %v117_v13 = vunpack.c.h.bf16 %v115_v11  ;;  %v132_v14 = vld [vmem:[%s196_s0 + $0x8] sm:$0xff]  }
   0x5   :  { %v120_v17 = vunpack.c.l.bf16 %v132_v14  ;;  %v121_v19 = vunpack.c.h.bf16 %v132_v14 }
   0x6   :  { %43 = vperm.xlu1 %136, %v25_v3   ;;  %33 = vperm.xlu0 %135, %v23_v4  }
   0xa   :  { %61 = vperm.xlu1 %136, %v51_v5   ;;  %56 = vperm.xlu0 %135, %v50_v6  }
   0xe   :  { %71 = vperm.xlu1 %136, %v53_v7   ;;  %66 = vperm.xlu0 %135, %v52_v8  }
  0x7d   :  { %v39_v9 = vpop.permute.xlu1 %38  ;;  %v29_v10 = vpop.permute.xlu0 %28 }
  0x7e   :  { %v46_v18 = vmul.f32 %v116_v12, %v29_v10  ;;  %v48_v25 = vmul.f32 %v120_v17, %v39_v9 }
  0x81   :  { %v44_v15 = vpop.permute.xlu1 %43  ;;  %v34_v16 = vpop.permute.xlu0 %33 }
  0x82   :  { %v47_v20 = vmul.f32 %v117_v13, %v34_v16  ;;  %v49_v26 = vmul.f32 %v121_v19, %v44_v15 }
  0x85   :  { %v62_v21 = vpop.permute.xlu1 %61  ;;  %v57_v22 = vpop.permute.xlu0 %56 }
  0x86   :  { %v75_v23 = vadd.f32 %v62_v21, %v47_v20  ;;  %v74_v24 = vadd.f32 %v57_v22, %v46_v18 }
  0x88   :  { %v79_v27 = vmax.f32 %v75_v23, 0.0  ;;  %v78_v28 = vmax.f32 %v74_v24, 0.0 }
  0x89   :  { %v72_v29 = vpop.permute.xlu1 %71  ;;  %v67_v30 = vpop.permute.xlu0 %66 }
  0x8a   :  { %v125_v31 = vpack.c.bf16 %v79_v27, %v78_v28  ;;  %v77_v32 = vadd.f32 %v72_v29, %v49_v26  ;;  %v76_v33 = vadd.f32 %v67_v30, %v48_v25 }
  0x8c   :  { %126 = vst [vmem:[%s197_s3] sm:$0xff] %v125_v31   ;;  %v81_v34 = vmax.f32 %v77_v32, 0.0  ;;  %v80_v35 = vmax.f32 %v76_v33, 0.0 }
  0x8e   :  { %v130_v36 = vpack.c.bf16 %v81_v34, %v80_v35 }
  0x90   :  { %133 = vst [vmem:[%s197_s3 + $0x8] sm:$0xff] %v130_v36  }

// kernel: resnet_generator_forward.56
= control target key start
LH: loop header
LB: loop body
LE: loop exit
PB: predicated region body
PF: predicated region fallthrough
CT: control target
= control target key end

     0   :  { %v157_v0 = vmov 0   ;;  %s225_s1 = inlined_call_operand.vmem [shape: f32[32,1], index: 1, kind: input, shape index: {}]   ;;  %s226_s2 = inlined_call_operand.vmem [shape: f32[32,1], index: 2, kind: input, shape index: {}]   ;;  %s227_s0 = inlined_call_operand.vmem [shape: bf16[32,128], index: 0, kind: input, shape index: {}]   ;;  %s228_s3 = inlined_call_operand.vmem [shape: bf16[32,128], index: 3, kind: input, shape index: {}]   ;;  %s229_s4 = inlined_call_operand.vmem [shape: bf16[32,128], index: 4, kind: output, shape index: {}]  }
   0x1   :  { %156 = vset.pattern.permute.xlu1 %v157_v0  ;;  %155 = vset.pattern.permute.xlu0 %v157_v0  ;;  %v27_v1 = vld [vmem:[%s225_s1 + $0x10] sm:$0xff]  ;;  %v25_v2 = vld [vmem:[%s225_s1] sm:$0xff]  ;;  %v28_v3 = vld [vmem:[%s225_s1 + $0x18] sm:$0xff] }
   0x2   :  { %41 = vperm.xlu1 %156, %v27_v1   ;;  %31 = vperm.xlu0 %155, %v25_v2   ;;  %v26_v4 = vld [vmem:[%s225_s1 + $0x8] sm:$0xff]  ;;  %v53_v6 = vld [vmem:[%s226_s2] sm:$0xff]  ;;  %v56_v7 = vld [vmem:[%s226_s2 + $0x18] sm:$0xff] }
   0x3   :  { %v54_v5 = vld [vmem:[%s226_s2 + $0x8] sm:$0xff]  ;;  %v55_v8 = vld [vmem:[%s226_s2 + $0x10] sm:$0xff]  ;;  %v126_v11 = vld [vmem:[%s227_s0] sm:$0xff]  }
   0x4   :  { %v151_v12 = vld [vmem:[%s227_s0 + $0x8] sm:$0xff]   ;;  %v127_v13 = vunpack.c.l.bf16 %v126_v11  ;;  %v128_v14 = vunpack.c.h.bf16 %v126_v11  ;;  %v134_v17 = vld [vmem:[%s228_s3] sm:$0xff]  }
   0x5   :  { %v131_v18 = vunpack.c.l.bf16 %v151_v12  ;;  %v132_v19 = vunpack.c.h.bf16 %v151_v12  ;;  %v136_v22 = vunpack.c.h.bf16 %v134_v17  ;;  %v135_v23 = vunpack.c.l.bf16 %v134_v17  ;;  %v152_v24 = vld [vmem:[%s228_s3 + $0x8] sm:$0xff]  }
   0x6   :  { %46 = vperm.xlu1 %156, %v28_v3   ;;  %36 = vperm.xlu0 %155, %v26_v4   ;;  %v140_v29 = vunpack.c.h.bf16 %v152_v24  ;;  %v139_v30 = vunpack.c.l.bf16 %v152_v24 }
   0xa   :  { %64 = vperm.xlu1 %156, %v54_v5   ;;  %59 = vperm.xlu0 %155, %v53_v6  }
   0xe   :  { %74 = vperm.xlu1 %156, %v56_v7   ;;  %69 = vperm.xlu0 %155, %v55_v8  }
  0x7d   :  { %v42_v9 = vpop.permute.xlu1 %41  ;;  %v32_v10 = vpop.permute.xlu0 %31 }
  0x7e   :  { %v49_v20 = vmul.f32 %v127_v13, %v32_v10  ;;  %v51_v31 = vmul.f32 %v131_v18, %v42_v9 }
  0x81   :  { %v47_v15 = vpop.permute.xlu1 %46  ;;  %v37_v16 = vpop.permute.xlu0 %36 }
  0x82   :  { %v50_v21 = vmul.f32 %v128_v14, %v37_v16  ;;  %v52_v32 = vmul.f32 %v132_v19, %v47_v15 }
  0x85   :  { %v65_v25 = vpop.permute.xlu1 %64  ;;  %v60_v26 = vpop.permute.xlu0 %59 }
  0x86   :  { %v78_v27 = vadd.f32 %v65_v25, %v50_v21  ;;  %v77_v28 = vadd.f32 %v60_v26, %v49_v20 }
  0x88   :  { %v90_v33 = vadd.f32 %v136_v22, %v78_v27  ;;  %v89_v34 = vadd.f32 %v135_v23, %v77_v28 }
  0x89   :  { %v75_v35 = vpop.permute.xlu1 %74  ;;  %v70_v36 = vpop.permute.xlu0 %69 }
  0x8a   :  { %v144_v37 = vpack.c.bf16 %v90_v33, %v89_v34  ;;  %v80_v38 = vadd.f32 %v75_v35, %v52_v32  ;;  %v79_v39 = vadd.f32 %v70_v36, %v51_v31 }
  0x8c   :  { %145 = vst [vmem:[%s229_s4] sm:$0xff] %v144_v37   ;;  %v92_v40 = vadd.f32 %v140_v29, %v80_v38  ;;  %v91_v41 = vadd.f32 %v139_v30, %v79_v39 }
  0x8e   :  { %v149_v42 = vpack.c.bf16 %v92_v40, %v91_v41 }
  0x90   :  { %153 = vst [vmem:[%s229_s4 + $0x8] sm:$0xff] %v149_v42  }

// kernel: resnet_generator_forward.53
= control target key start
LH: loop header
LB: loop body
LE: loop exit
PB: predicated region body
PF: predicated region fallthrough
CT: control target
= control target key end

     0   :  { %vm545_vm0 = vcmask 785408   ;;  %vm791_vm1 = vcmask 7168   ;;  %s1362_s1 = inlined_call_operand.vmem [shape: bf16[864,128], index: 1, kind: input, shape index: {}]   ;;  %s1363_s0 = inlined_call_operand.vmem [shape: bf16[32,864], index: 0, kind: input, shape index: {}]   ;;  %s1364_s2 = inlined_call_operand.vmem [shape: bf16[32,128], index: 2, kind: output, shape index: {0}]   ;;  %s1365_s3 = inlined_call_operand.vmem [shape: f32[1,32,1], index: 3, kind: output, shape index: {1}]   ;;  %s1366_s4 = inlined_call_operand.vmem [shape: f32[1,32,1], index: 4, kind: output, shape index: {2}]  }
   0x1   :  { %v1021_v0 = vld [vmem:[%s1362_s1 + $0x78] sm:$0xff]   ;;  %v1025_v4 = vld [vmem:[%s1362_s1 + $0x70] sm:$0xff]   ;;  %v1029_v8 = vld [vmem:[%s1362_s1 + $0x68] sm:$0xff]  }
   0x2   :  { %v1022_v1 = vld [vmem:[%s1362_s1 + $0xf8] sm:$0xff]   ;;  %913 = vmatprep.subr.bf16.mxu0 %v1021_v0  ;;  %v1026_v5 = vld [vmem:[%s1362_s1 + $0xf0] sm:$0xff]   ;;  %v1030_v9 = vld [vmem:[%s1362_s1 + $0xe8] sm:$0xff]  }
   0x3   :  { %v1023_v2 = vld [vmem:[%s1362_s1 + $0x38] sm:$0xff]   ;;  %941 = vmatprep.subr.bf16.mxu1 %v1022_v1  ;;  %v1027_v6 = vld [vmem:[%s1362_s1 + $0x30] sm:$0xff]   ;;  %v1031_v10 = vld [vmem:[%s1362_s1 + $0x28] sm:$0xff]  }
   0x4   :  { %v1024_v3 = vld [vmem:[%s1362_s1 + $0xb8] sm:$0xff]   ;;  %914 = vmatpush3.bf16.msra.mxu0 %v1023_v2  ;;  %v1028_v7 = vld [vmem:[%s1362_s1 + $0xb0] sm:$0xff]   ;;  %v1032_v11 = vld [vmem:[%s1362_s1 + $0xa8] sm:$0xff]  }
   0x5   :  { %942 = vmatpush3.bf16.msra.mxu1 %v1024_v3  ;;  %915 = vmatprep.subr.bf16.mxu0 %v1025_v4  ;;  %v1033_v12 = vld [vmem:[%s1362_s1 + $0x60] sm:$0xff]   ;;  %v1037_v16 = vld [vmem:[%s1362_s1 + $0x58] sm:$0xff]   ;;  %v1041_v20 = vld [vmem:[%s1362_s1 + $0x50] sm:$0xff]  }
   0x6   :  { %943 = vmatprep.subr.bf16.mxu1 %v1026_v5  ;;  %v1034_v13 = vld [vmem:[%s1362_s1 + $0xe0] sm:$0xff]   ;;  %v1038_v17 = vld [vmem:[%s1362_s1 + $0xd8] sm:$0xff]   ;;  %v1042_v21 = vld [vmem:[%s1362_s1 + $0xd0] sm:$0xff]  }
   0x7   :  { %v1035_v14 = vld [vmem:[%s1362_s1 + $0x20] sm:$0xff]   ;;  %v1039_v18 = vld [vmem:[%s1362_s1 + $0x18] sm:$0xff]   ;;  %v1043_v22 = vld [vmem:[%s1362_s1 + $0x10] sm:$0xff]  }
   0x8   :  { %916 = vmatpush3.bf16.msra.mxu0 %v1027_v6  ;;  %v1036_v15 = vld [vmem:[%s1362_s1 + $0xa0] sm:$0xff]   ;;  %v1040_v19 = vld [vmem:[%s1362_s1 + $0x98] sm:$0xff]   ;;  %v1044_v23 = vld [vmem:[%s1362_s1 + $0x90] sm:$0xff]  }
   0x9   :  { %944 = vmatpush3.bf16.msra.mxu1 %v1028_v7  ;;  %917 = vmatprep.subr.bf16.mxu0 %v1029_v8  ;;  %v1045_v24 = vld [vmem:[%s1362_s1 + $0x48] sm:$0xff]   ;;  %v1049_v28 = vld [vmem:[%s1362_s1 + $0x40] sm:$0xff]   ;;  %v1059_v36 = vld [vmem:[%s1362_s1 + $0x178] sm:$0xff]  }
   0xa   :  { %945 = vmatprep.subr.bf16.mxu1 %v1030_v9  ;;  %v1046_v25 = vld [vmem:[%s1362_s1 + $0xc8] sm:$0xff]   ;;  %v1050_v29 = vld [vmem:[%s1362_s1 + $0xc0] sm:$0xff]   ;;  %v1060_v37 = vld [vmem:[%s1362_s1 + $0x138] sm:$0xff]  }
   0xb   :  { %v1047_v26 = vld [vmem:[%s1362_s1 + $0x8] sm:$0xff]   ;;  %v1051_v30 = vld [vmem:[%s1362_s1] sm:$0xff]   ;;  %v1061_v38 = vld [vmem:[%s1362_s1 + $0x170] sm:$0xff]  }
   0xc   :  { %918 = vmatpush3.bf16.msra.mxu0 %v1031_v10  ;;  %v1048_v27 = vld [vmem:[%s1362_s1 + $0x88] sm:$0xff]   ;;  %v1052_v31 = vld [vmem:[%s1362_s1 + $0x80] sm:$0xff]   ;;  %v1062_v39 = vld [vmem:[%s1362_s1 + $0x130] sm:$0xff]  }
   0xd   :  { %946 = vmatpush3.bf16.msra.mxu1 %v1032_v11  ;;  %919 = vmatprep.subr.bf16.mxu0 %v1033_v12  ;;  %v1053_v32 = vld [vmem:[%s1363_s0] ss:$28 sps:$4 sm:$0xff]   ;;  %v1056_v34 = vld [vmem:[%s1363_s0 + $0x8] ss:$28 sps:$4 sm:$0xff]   ;;  %v1076_v51 = vld [vmem:[%s1363_s0 + $0x38] ss:$28 sps:$4 sm:$0xff]  }
   0xe   :  { %947 = vmatprep.subr.bf16.mxu1 %v1034_v13  ;;  %v1055_v33 = vld [vmem:[%s1363_s0 + $0x4] ss:$28 sps:$4 sm:$0xff]   ;;  %v1058_v35 = vld [vmem:[%s1363_s0 + $0xc] ss:$28 sps:$4 sm:$0xff]   ;;  %v1069_v46 = vld [vmem:[%s1362_s1 + $0x198] sm:$0xff]  }
   0xf   :  { %584 = vmatprep.mubr.bf16.mxu0 %v1055_v33  ;;  %633 = vmatprep.mubr.bf16.mxu1 %v1058_v35  ;;  %v1063_v40 = vld [vmem:[%s1362_s1 + $0x1a8] sm:$0xff]   ;;  %v1066_v43 = vld [vmem:[%s1362_s1 + $0x1a0] sm:$0xff]   ;;  %v1070_v47 = vld [vmem:[%s1362_s1 + $0x158] sm:$0xff]  }
  0x10   :  { %920 = vmatpush3.bf16.msra.mxu0 %v1035_v14  ;;  %v1064_v41 = vld [vmem:[%s1362_s1 + $0x168] sm:$0xff]   ;;  %v1067_v44 = vld [vmem:[%s1362_s1 + $0x160] sm:$0xff]   ;;  %v1071_v48 = vld [vmem:[%s1363_s0 + $0x3c] ss:$28 sps:$4 sm:$0xff]  }
  0x11   :  { %948 = vmatpush3.bf16.msra.mxu1 %v1036_v15  ;;  %921 = vmatprep.subr.bf16.mxu0 %v1037_v16  ;;  %v1065_v42 = vld [vmem:[%s1362_s1 + $0x128] sm:$0xff]   ;;  %v1068_v45 = vld [vmem:[%s1362_s1 + $0x120] sm:$0xff]   ;;  %v1075_v50 = vld [vmem:[%s1362_s1 + $0x118] sm:$0xff]  }
  0x12   :  { %949 = vmatprep.subr.bf16.mxu1 %v1038_v17  ;;  %v1073_v49 = vld [vmem:[%s1363_s0 + $0x44] ss:$28 sps:$4 sm:$0xff]   ;;  %v1078_v53 = vld [vmem:[%s1362_s1 + $0x190] sm:$0xff]   ;;  %v1081_v56 = vld [vmem:[%s1362_s1 + $0x188] sm:$0xff]  }
  0x13   :  { %v1077_v52 = vld [vmem:[%s1363_s0 + $0x40] ss:$28 sps:$4 sm:$0xff]   ;;  %v1079_v54 = vld [vmem:[%s1362_s1 + $0x150] sm:$0xff]   ;;  %v1082_v57 = vld [vmem:[%s1362_s1 + $0x148] sm:$0xff]  }
  0x14   :  { %922 = vmatpush3.bf16.msra.mxu0 %v1039_v18  ;;  %v1080_v55 = vld [vmem:[%s1362_s1 + $0x110] sm:$0xff]   ;;  %v1084_v58 = vld [vmem:[%s1362_s1 + $0x180] sm:$0xff]   ;;  %v1083_v59 = vld [vmem:[%s1362_s1 + $0x108] sm:$0xff]  }
  0x15   :  { %950 = vmatpush3.bf16.msra.mxu1 %v1040_v19  ;;  %923 = vmatprep.subr.bf16.mxu0 %v1041_v20  ;;  %v1085_v60 = vld [vmem:[%s1362_s1 + $0x140] sm:$0xff]   ;;  %v1087_v61 = vld [vmem:[%s1363_s0 + $0x18] ss:$28 sps:$4 sm:$0xff]   ;;  %v1088_v62 = vld [vmem:[%s1363_s0 + $0x50] ss:$28 sps:$4 sm:$0xff]  }
  0x16   :  { %951 = vmatprep.subr.bf16.mxu1 %v1042_v21  ;;  %v1086_v63 = vld [vmem:[%s1362_s1 + $0x100] sm:$0xff]   ;;  %v1091_v0 = vld [vmem:[%s1363_s0 + $0x14] ss:$28 sps:$4 sm:$0xff]   ;;  %v1092_v2 = vld [vmem:[%s1363_s0 + $0x4c] ss:$28 sps:$4 sm:$0xff]  }
  0x17   :  { %v1089_v1 = vld [vmem:[%s1363_s0 + $0x10] ss:$28 sps:$4 sm:$0xff]   ;;  %v1094_v3 = vld [vmem:[%s1363_s0 + $0x48] ss:$28 sps:$4 sm:$0xff]  }
  0x18   :  { %924 = vmatpush3.bf16.msra.mxu0 %v1043_v22 }
  0x19   :  { %952 = vmatpush3.bf16.msra.mxu1 %v1044_v23  ;;  %925 = vmatprep.subr.bf16.mxu0 %v1045_v24 }
  0x1a   :  { %953 = vmatprep.subr.bf16.mxu1 %v1046_v25 }
  0x1c   :  { %926 = vmatpush3.bf16.msra.mxu0 %v1047_v26 }
  0x1d   :  { %954 = vmatpush3.bf16.msra.mxu1 %v1048_v27  ;;  %927 = vmatprep.subr.bf16.mxu0 %v1049_v28 }
  0x1e   :  { %955 = vmatprep.subr.bf16.mxu1 %v1050_v29 }
  0x20   :  { %928 = vmatpush3.bf16.msra.mxu0 %v1051_v30 }
  0x21   :  { %956 = vmatpush3.bf16.msra.mxu1 %v1052_v31  ;;  %969 = vmatprep.subr.bf16.mxu0 %v1059_v36 }
  0x22   :  { %1005 = vmatprep.subr.bf16.mxu1 %v1063_v40 }
  0x23   :  { %585 = vmatmul.mubr.bf16.vlgmr.msra.gmra.mxu0 %v1053_v32 }
  0x24   :  { %634 = vmatmul.mubr.bf16.vlgmr.msra.gmra.mxu1 %v1056_v34  ;;  %970 = vmatpush3.bf16.msra.mxu0 %v1060_v37 }
  0x25   :  { %971 = vmatprep.subr.bf16.mxu0 %v1061_v38  ;;  %1006 = vmatpush3.bf16.msra.mxu1 %v1063_v40 }
  0x26   :  { %1007 = vmatprep.subr.bf16.mxu1 %v1066_v43  ;;  %592 = vmatprep.mubr.bf16.mxu0 %v1071_v48 }
  0x27   :  { %641 = vmatprep.mubr.bf16.mxu1 %v1073_v49 }
  0x28   :  { %972 = vmatpush3.bf16.msra.mxu0 %v1062_v39 }
  0x29   :  { %973 = vmatprep.subr.bf16.mxu0 %v1064_v41  ;;  %1008 = vmatpush3.bf16.msra.mxu1 %v1066_v43 }
  0x2a   :  { %1009 = vmatprep.subr.bf16.mxu1 %v1069_v46 }
  0x2b   :  { %593 = vmatmul.mubr.bf16.gmra.mxu0 %v1076_v51 }
  0x2c   :  { %974 = vmatpush3.bf16.msra.mxu0 %v1065_v42  ;;  %642 = vmatmul.mubr.bf16.gmra.mxu1 %v1077_v52 }
  0x2d   :  { %975 = vmatprep.subr.bf16.mxu0 %v1067_v44  ;;  %1010 = vmatpush3.bf16.msra.mxu1 %v1069_v46 }
  0x2e   :  { %1011 = vmatprep.subr.bf16.mxu1 %v1078_v53  ;;  %1017 = vmatprep.mubr.msk.bf16.mxu1 %vm545_vm0, %v1087_v61 }
  0x2f   :  { %682 = vmatprep.mubr.bf16.mxu0 %v1091_v0 }
  0x30   :  { %976 = vmatpush3.bf16.msra.mxu0 %v1068_v45 }
  0x31   :  { %977 = vmatprep.subr.bf16.mxu0 %v1070_v47  ;;  %1012 = vmatpush3.bf16.msra.mxu1 %v1078_v53 }
  0x32   :  { %1013 = vmatprep.subr.bf16.mxu1 %v1081_v56 }
  0x34   :  { %978 = vmatpush3.bf16.msra.mxu0 %v1075_v50 }
  0x35   :  { %979 = vmatprep.subr.bf16.mxu0 %v1079_v54  ;;  %1014 = vmatpush3.bf16.msra.mxu1 %v1081_v56 }
  0x36   :  { %1015 = vmatprep.subr.bf16.mxu1 %v1084_v58 }
  0x38   :  { %980 = vmatpush3.bf16.msra.mxu0 %v1080_v55 }
  0x39   :  { %981 = vmatprep.subr.bf16.mxu0 %v1082_v57  ;;  %1016 = vmatpush3.bf16.msra.mxu1 %v1084_v58 }
  0x3c   :  { %982 = vmatpush3.bf16.msra.mxu0 %v1083_v59  ;;  %1018 = vmatmul.mubr.msk.bf16.vlgmr.msra.gmra.mxu1 %vm545_vm0, %v1088_v62 }
  0x3d   :  { %983 = vmatprep.subr.bf16.mxu0 %v1085_v60 }
  0x40   :  { %984 = vmatpush3.bf16.msra.mxu0 %v1086_v63 }
  0x43   :  { %683 = vmatmul.mubr.bf16.vlgmr.msra.gmra.mxu0 %v1089_v1 }
  0x44   :  { %690 = vmatprep.mubr.bf16.mxu0 %v1092_v2 }
  0x4b   :  { %691 = vmatmul.mubr.bf16.gmra.mxu0 %v1094_v3 }
  0xe3   :  { %v929_v5 = vpop.f32.mrf.mxu0 }
  0xe4   :  { %v957_v4 = vpop.f32.mrf.mxu1 }
  0xe5   :  { %v930_v7 = vpop.f32.mrf.mxu0 }
  0xe6   :  { %v958_v6 = vpop.f32.mrf.mxu1  ;;  %v931_v21 = vadd.f32 %v930_v7, %v929_v5 }
  0xe7   :  { %v932_v9 = vpop.f32.mrf.mxu0  ;;  %v959_v22 = vadd.f32 %v958_v6, %v957_v4 }
  0xe8   :  { %v960_v8 = vpop.f32.mrf.mxu1 }
  0xe9   :  { %v933_v11 = vpop.f32.mrf.mxu0  ;;  %v636_v26 = vadd.f32 %v959_v22, %v931_v21 }
  0xea   :  { %v961_v10 = vpop.f32.mrf.mxu1  ;;  %v934_v27 = vadd.f32 %v933_v11, %v932_v9 }
  0xeb   :  { %v935_v13 = vpop.f32.mrf.mxu0  ;;  %v962_v28 = vadd.f32 %v961_v10, %v960_v8 }
  0xec   :  { %v963_v12 = vpop.f32.mrf.mxu1 }
  0xed   :  { %v936_v15 = vpop.f32.mrf.mxu0  ;;  %v639_v36 = vadd.f32 %v962_v28, %v934_v27 }
  0xee   :  { %v964_v14 = vpop.f32.mrf.mxu1  ;;  %v937_v32 = vadd.f32 %v936_v15, %v935_v13 }
  0xef   :  { %v938_v17 = vpop.f32.mrf.mxu0  ;;  %v965_v33 = vadd.f32 %v964_v14, %v963_v12 }
  0xf0   :  { %v966_v16 = vpop.f32.mrf.mxu1 }
  0xf1   :  { %v939_v19 = vpop.f32.mrf.mxu0  ;;  %v644_v41 = vadd.f32 %v965_v33, %v937_v32 }
  0xf2   :  { %v967_v18 = vpop.f32.mrf.mxu1  ;;  %v940_v42 = vadd.f32 %v939_v19, %v938_v17 }
  0xf3   :  { %v968_v45 = vadd.f32 %v967_v18, %v966_v16 }
  0xf5   :  { %v647_v54 = vadd.f32 %v968_v45, %v940_v42 }
  0xfc   :  { %v1019_v20 = vpop.f32.mrf.mxu1 }
  0xfe   :  { %v733_v24 = vpop.f32.mrf.mxu1 }
 0x100   :  { %v1020_v34 = vpop.f32.mrf.mxu1 }
 0x102   :  { %v736_v43 = vpop.f32.mrf.mxu1 }
 0x103   :  { %v985_v23 = vpop.f32.mrf.mxu0 }
 0x105   :  { %v986_v25 = vpop.f32.mrf.mxu0 }
 0x106   :  { %v987_v29 = vadd.f32 %v986_v25, %v985_v23 }
 0x107   :  { %v988_v30 = vpop.f32.mrf.mxu0 }
 0x108   :  { %v685_v31 = vadd.f32 %v987_v29, %v636_v26 }
 0x109   :  { %v989_v35 = vpop.f32.mrf.mxu0 }
 0x10a   :  { %v990_v37 = vadd.f32 %v989_v35, %v988_v30  ;;  %v734_v38 = vadd.f32 %v733_v24, %v685_v31 }
 0x10b   :  { %v991_v39 = vpop.f32.mrf.mxu0 }
 0x10c   :  { %v688_v40 = vadd.f32 %v990_v37, %v639_v36  ;;  %783 = vadd.xlane.f32.xlu0 %v734_v38  ;;  %v796_v47 = vmul.f32 %v734_v38, %v734_v38 }
 0x10d   :  { %v992_v44 = vpop.f32.mrf.mxu0 }
 0x10e   :  { %v993_v46 = vadd.f32 %v992_v44, %v991_v39  ;;  %v737_v48 = vadd.f32 %v736_v43, %v688_v40 }
 0x10f   :  { %v994_v49 = vpop.f32.mrf.mxu0 }
 0x110   :  { %v693_v50 = vadd.f32 %v993_v46, %v644_v41  ;;  %800 = vadd.xlane.f32.xlu0 %v796_v47  ;;  %v797_v51 = vmul.f32 %v737_v48, %v737_v48  ;;  %v905_v52 = vpack.c.bf16 %v737_v48, %v734_v38 }
 0x111   :  { %v995_v53 = vpop.f32.mrf.mxu0 }
 0x112   :  { %v996_v55 = vadd.f32 %v995_v53, %v994_v49  ;;  %802 = vadd.xlane.f32.xlu1 %v797_v51  ;;  %906 = vst [vmem:[%s1364_s2] sm:$0xff] %v905_v52   ;;  %v742_v56 = vadd.f32 %v1019_v20, %v693_v50 }
 0x114   :  { %v696_v57 = vadd.f32 %v996_v55, %v647_v54  ;;  %785 = vadd.xlane.f32.xlu0 %v737_v48  ;;  %v798_v58 = vmul.f32 %v742_v56, %v742_v56 }
 0x116   :  { %787 = vadd.xlane.f32.xlu1 %v742_v56  ;;  %v745_v59 = vadd.f32 %v1020_v34, %v696_v57 }
 0x118   :  { %804 = vadd.xlane.f32.xlu0 %v798_v58  ;;  %v910_v60 = vpack.c.bf16 %v745_v59, %v742_v56  ;;  %v799_v61 = vmul.f32 %v745_v59, %v745_v59 }
 0x11a   :  { %912 = vst [vmem:[%s1364_s2 + $0x8] sm:$0xff] %v910_v60   ;;  %789 = vadd.xlane.f32.xlu1 %v745_v59 }
 0x11e   :  { %806 = vadd.xlane.f32.xlu1 %v799_v61 }
 0x195   :  { %v784_v62 = vpop.xlane.xlu0 %783 }
 0x196   :  { %792 = vst.msk [vmem:[%s1365_s3] sm:$0xff] %vm791_vm1, %v784_v62 }
 0x199   :  { %v801_v63 = vpop.xlane.xlu0 %800 }
 0x19a   :  { %808 = vst.msk [vmem:[%s1366_s4] sm:$0xff] %vm791_vm1, %v801_v63 }
 0x19b   :  { %v803_v0 = vpop.xlane.xlu1 %802 }
 0x19c   :  { %809 = vst.msk [vmem:[%s1366_s4 + $0x8] sm:$0xff] %vm791_vm1, %v803_v0 }
 0x19d   :  { %v786_v1 = vpop.xlane.xlu0 %785 }
 0x19e   :  { %793 = vst.msk [vmem:[%s1365_s3 + $0x8] sm:$0xff] %vm791_vm1, %v786_v1 }
 0x19f   :  { %v788_v2 = vpop.xlane.xlu1 %787 }
 0x1a0   :  { %794 = vst.msk [vmem:[%s1365_s3 + $0x10] sm:$0xff] %vm791_vm1, %v788_v2 }
 0x1a1   :  { %v805_v3 = vpop.xlane.xlu0 %804 }
 0x1a2   :  { %810 = vst.msk [vmem:[%s1366_s4 + $0x10] sm:$0xff] %vm791_vm1, %v805_v3 }
 0x1a3   :  { %v790_v4 = vpop.xlane.xlu1 %789 }
 0x1a4   :  { %795 = vst.msk [vmem:[%s1365_s3 + $0x18] sm:$0xff] %vm791_vm1, %v790_v4 }
 0x1a7   :  { %v807_v5 = vpop.xlane.xlu1 %806 }
 0x1a8   :  { %811 = vst.msk [vmem:[%s1366_s4 + $0x18] sm:$0xff] %vm791_vm1, %v807_v5 }

// kernel: resnet_generator_forward.63
= control target key start
LH: loop header
LB: loop body
LE: loop exit
PB: predicated region body
PF: predicated region fallthrough
CT: control target
= control target key end

     0   :  { %v192_v0 = vmov 0.0   ;;  %vm193_vm0 = vmmov 0   ;;  %vm62_vm1 = vcmask 523264   ;;  %vm130_vm2 = vcmask 7168   ;;  %s249_s1 = inlined_call_operand.vmem [shape: bf16[64,128], index: 1, kind: input, shape index: {}]   ;;  %s250_s0 = inlined_call_operand.vmem [shape: bf16[16,64], index: 0, kind: input, shape index: {}]   ;;  %s251_s2 = inlined_call_operand.vmem [shape: bf16[16,128], index: 2, kind: output, shape index: {0}]   ;;  %s252_s3 = inlined_call_operand.vmem [shape: f32[1,16,1], index: 3, kind: output, shape index: {1}]   ;;  %s253_s4 = inlined_call_operand.vmem [shape: f32[1,16,1], index: 4, kind: output, shape index: {2}]  }
   0x1   :  { %173 = vmatprep.subr.bf16.mxu0 %v192_v0  ;;  %v187_v1 = vld [vmem:[%s249_s1 + $0x18] sm:$0xff]   ;;  %181 = vmatprep.mubr.msk.bf16.mxu0 %vm193_vm0, %v192_v0  ;;  %v188_v2 = vld [vmem:[%s249_s1 + $0x10] sm:$0xff]   ;;  %v189_v3 = vld [vmem:[%s249_s1 + $0x8] sm:$0xff]  }
   0x2   :  { %174 = vmatpush3.bf16.msra.mxu0 %v187_v1  ;;  %v190_v4 = vld [vmem:[%s249_s1] sm:$0xff]  }
   0x3   :  { %175 = vmatprep.subr.bf16.mxu0 %v192_v0  ;;  %v191_v5 = vld [vmem:[%s250_s0] sm:$0xff]  }
   0x6   :  { %176 = vmatpush3.bf16.msra.mxu0 %v188_v2 }
   0x7   :  { %177 = vmatprep.subr.bf16.mxu0 %v192_v0 }
   0xa   :  { %178 = vmatpush3.bf16.msra.mxu0 %v189_v3 }
   0xb   :  { %179 = vmatprep.subr.bf16.mxu0 %v192_v0 }
   0xe   :  { %180 = vmatpush3.bf16.msra.mxu0 %v190_v4 }
  0x11   :  { %182 = vmatmul.mubr.msk.bf16.vlgmr.msra.gmra.mxu0 %vm62_vm1, %v191_v5 }
  0xd1   :  { %v100_v6 = vpop.f32.mrf.mxu0 }
  0xd2   :  { %126 = vadd.xlane.f32.xlu0 %v100_v6  ;;  %v133_v7 = vmul.f32 %v100_v6, %v100_v6 }
  0xd3   :  { %v183_v8 = vpop.f32.mrf.mxu0 }
  0xd4   :  { %135 = vadd.xlane.f32.xlu1 %v133_v7 }
  0xd5   :  { %v103_v9 = vpop.f32.mrf.mxu0 }
  0xd6   :  { %v166_v10 = vpack.c.bf16 %v103_v9, %v100_v6  ;;  %128 = vadd.xlane.f32.xlu0 %v103_v9  ;;  %v134_v11 = vmul.f32 %v103_v9, %v103_v9 }
  0xd7   :  { %v184_v12 = vpop.f32.mrf.mxu0 }
  0xd8   :  { %167 = vst [vmem:[%s251_s2] sm:$0xff] %v166_v10   ;;  %137 = vadd.xlane.f32.xlu1 %v134_v11 }
 0x15b   :  { %v127_v13 = vpop.xlane.xlu0 %126 }
 0x15c   :  { %131 = vst.msk [vmem:[%s252_s3] sm:$0xff] %vm130_vm2, %v127_v13 }
 0x15d   :  { %v136_v14 = vpop.xlane.xlu1 %135 }
 0x15e   :  { %139 = vst.msk [vmem:[%s253_s4] sm:$0xff] %vm130_vm2, %v136_v14 }
 0x15f   :  { %v129_v15 = vpop.xlane.xlu0 %128 }
 0x160   :  { %132 = vst.msk [vmem:[%s252_s3 + $0x8] sm:$0xff] %vm130_vm2, %v129_v15 }
 0x161   :  { %v138_v16 = vpop.xlane.xlu1 %137 }
 0x162   :  { %140 = vst.msk [vmem:[%s253_s4 + $0x8] sm:$0xff] %vm130_vm2, %v138_v16 }

// kernel: resnet_generator_forward.66
= control target key start
LH: loop header
LB: loop body
LE: loop exit
PB: predicated region body
PF: predicated region fallthrough
CT: control target
= control target key end

     0   :  { %v240_v0 = vmov 0.0   ;;  %vm241_vm0 = vmmov 0   ;;  %vm159_vm1 = vcmask 7168   ;;  %s309_s1 = inlined_call_operand.vmem [shape: bf16[128,128], index: 1, kind: input, shape index: {}]   ;;  %s310_s0 = inlined_call_operand.vmem [shape: bf16[16,128], index: 0, kind: input, shape index: {}]   ;;  %s311_s2 = inlined_call_operand.vmem [shape: bf16[16,128], index: 2, kind: output, shape index: {0}]   ;;  %s312_s3 = inlined_call_operand.vmem [shape: f32[1,16,1], index: 3, kind: output, shape index: {1}]   ;;  %s313_s4 = inlined_call_operand.vmem [shape: f32[1,16,1], index: 4, kind: output, shape index: {2}]  }
   0x1   :  { %209 = vmatprep.subr.bf16.mxu0 %v240_v0  ;;  %v231_v1 = vld [vmem:[%s309_s1 + $0x38] sm:$0xff]   ;;  %225 = vmatprep.mubr.msk.bf16.mxu0 %vm241_vm0, %v240_v0  ;;  %v232_v2 = vld [vmem:[%s309_s1 + $0x30] sm:$0xff]   ;;  %v233_v3 = vld [vmem:[%s309_s1 + $0x28] sm:$0xff]  }
   0x2   :  { %210 = vmatpush3.bf16.msra.mxu0 %v231_v1  ;;  %v234_v4 = vld [vmem:[%s309_s1 + $0x20] sm:$0xff]   ;;  %v235_v5 = vld [vmem:[%s309_s1 + $0x18] sm:$0xff]   ;;  %v236_v6 = vld [vmem:[%s309_s1 + $0x10] sm:$0xff]  }
   0x3   :  { %211 = vmatprep.subr.bf16.mxu0 %v240_v0  ;;  %v237_v7 = vld [vmem:[%s309_s1 + $0x8] sm:$0xff]   ;;  %v238_v8 = vld [vmem:[%s309_s1] sm:$0xff]  }
   0x4   :  { %v239_v9 = vld [vmem:[%s310_s0] sm:$0xff]  }
   0x6   :  { %212 = vmatpush3.bf16.msra.mxu0 %v232_v2 }
   0x7   :  { %213 = vmatprep.subr.bf16.mxu0 %v240_v0 }
   0xa   :  { %214 = vmatpush3.bf16.msra.mxu0 %v233_v3 }
   0xb   :  { %215 = vmatprep.subr.bf16.mxu0 %v240_v0 }
   0xe   :  { %216 = vmatpush3.bf16.msra.mxu0 %v234_v4 }
   0xf   :  { %217 = vmatprep.subr.bf16.mxu0 %v240_v0 }
  0x12   :  { %218 = vmatpush3.bf16.msra.mxu0 %v235_v5 }
  0x13   :  { %219 = vmatprep.subr.bf16.mxu0 %v240_v0 }
  0x16   :  { %220 = vmatpush3.bf16.msra.mxu0 %v236_v6 }
  0x17   :  { %221 = vmatprep.subr.bf16.mxu0 %v240_v0 }
  0x1a   :  { %222 = vmatpush3.bf16.msra.mxu0 %v237_v7 }
  0x1b   :  { %223 = vmatprep.subr.bf16.mxu0 %v240_v0 }
  0x1e   :  { %224 = vmatpush3.bf16.msra.mxu0 %v238_v8 }
  0x21   :  { %226 = vmatmul.mubr.bf16.vlgmr.msra.gmra.mxu0 %v239_v9 }
  0xe1   :  { %v129_v10 = vpop.f32.mrf.mxu0 }
  0xe2   :  { %155 = vadd.xlane.f32.xlu0 %v129_v10  ;;  %v162_v11 = vmul.f32 %v129_v10, %v129_v10 }
  0xe3   :  { %v227_v12 = vpop.f32.mrf.mxu0 }
  0xe4   :  { %164 = vadd.xlane.f32.xlu1 %v162_v11 }
  0xe5   :  { %v132_v13 = vpop.f32.mrf.mxu0 }
  0xe6   :  { %v198_v14 = vpack.c.bf16 %v132_v13, %v129_v10  ;;  %157 = vadd.xlane.f32.xlu0 %v132_v13  ;;  %v163_v15 = vmul.f32 %v132_v13, %v132_v13 }
  0xe7   :  { %v228_v16 = vpop.f32.mrf.mxu0 }
  0xe8   :  { %199 = vst [vmem:[%s311_s2] sm:$0xff] %v198_v14   ;;  %166 = vadd.xlane.f32.xlu1 %v163_v15 }
 0x16b   :  { %v156_v17 = vpop.xlane.xlu0 %155 }
 0x16c   :  { %160 = vst.msk [vmem:[%s312_s3] sm:$0xff] %vm159_vm1, %v156_v17 }
 0x16d   :  { %v165_v18 = vpop.xlane.xlu1 %164 }
 0x16e   :  { %168 = vst.msk [vmem:[%s313_s4] sm:$0xff] %vm159_vm1, %v165_v18 }
 0x16f   :  { %v158_v19 = vpop.xlane.xlu0 %157 }
 0x170   :  { %161 = vst.msk [vmem:[%s312_s3 + $0x8] sm:$0xff] %vm159_vm1, %v158_v19 }
 0x171   :  { %v167_v20 = vpop.xlane.xlu1 %166 }
 0x172   :  { %169 = vst.msk [vmem:[%s313_s4 + $0x8] sm:$0xff] %vm159_vm1, %v167_v20 }

// kernel: resnet_generator_forward.61
= control target key start
LH: loop header
LB: loop body
LE: loop exit
PB: predicated region body
PF: predicated region fallthrough
CT: control target
= control target key end

     0   :  { %v166_v0 = vmov 0.0   ;;  %vm167_vm0 = vmmov 0   ;;  %vm46_vm1 = vcmask 261120   ;;  %vm114_vm2 = vcmask 7168   ;;  %s217_s1 = inlined_call_operand.vmem [shape: bf16[32,128], index: 1, kind: input, shape index: {}]   ;;  %s218_s0 = inlined_call_operand.vmem [shape: bf16[16,32], index: 0, kind: input, shape index: {}]   ;;  %s219_s2 = inlined_call_operand.vmem [shape: bf16[16,128], index: 2, kind: output, shape index: {0}]   ;;  %s220_s3 = inlined_call_operand.vmem [shape: f32[1,16,1], index: 3, kind: output, shape index: {1}]   ;;  %s221_s4 = inlined_call_operand.vmem [shape: f32[1,16,1], index: 4, kind: output, shape index: {2}]  }
   0x1   :  { %153 = vmatprep.subr.bf16.mxu0 %v166_v0  ;;  %v163_v1 = vld [vmem:[%s217_s1 + $0x8] sm:$0xff]   ;;  %157 = vmatprep.mubr.msk.bf16.mxu0 %vm167_vm0, %v166_v0  ;;  %v164_v2 = vld [vmem:[%s217_s1] sm:$0xff]  }
   0x2   :  { %154 = vmatpush3.bf16.msra.mxu0 %v163_v1  ;;  %v165_v3 = vld [vmem:[%s218_s0] sm:$0xff]  }
   0x3   :  { %155 = vmatprep.subr.bf16.mxu0 %v166_v0 }
   0x6   :  { %156 = vmatpush3.bf16.msra.mxu0 %v164_v2 }
   0x9   :  { %158 = vmatmul.mubr.msk.bf16.vlgmr.msra.gmra.mxu0 %vm46_vm1, %v165_v3 }
  0xc9   :  { %v84_v4 = vpop.f32.mrf.mxu0 }
  0xca   :  { %110 = vadd.xlane.f32.xlu0 %v84_v4  ;;  %v117_v5 = vmul.f32 %v84_v4, %v84_v4 }
  0xcb   :  { %v159_v6 = vpop.f32.mrf.mxu0 }
  0xcc   :  { %119 = vadd.xlane.f32.xlu1 %v117_v5 }
  0xcd   :  { %v87_v7 = vpop.f32.mrf.mxu0 }
  0xce   :  { %v148_v8 = vpack.c.bf16 %v87_v7, %v84_v4  ;;  %112 = vadd.xlane.f32.xlu0 %v87_v7  ;;  %v118_v9 = vmul.f32 %v87_v7, %v87_v7 }
  0xcf   :  { %v160_v10 = vpop.f32.mrf.mxu0 }
  0xd0   :  { %149 = vst [vmem:[%s219_s2] sm:$0xff] %v148_v8   ;;  %121 = vadd.xlane.f32.xlu1 %v118_v9 }
 0x153   :  { %v111_v11 = vpop.xlane.xlu0 %110 }
 0x154   :  { %115 = vst.msk [vmem:[%s220_s3] sm:$0xff] %vm114_vm2, %v111_v11 }
 0x155   :  { %v120_v12 = vpop.xlane.xlu1 %119 }
 0x156   :  { %123 = vst.msk [vmem:[%s221_s4] sm:$0xff] %vm114_vm2, %v120_v12 }
 0x157   :  { %v113_v13 = vpop.xlane.xlu0 %112 }
 0x158   :  { %116 = vst.msk [vmem:[%s220_s3 + $0x8] sm:$0xff] %vm114_vm2, %v113_v13 }
 0x159   :  { %v122_v14 = vpop.xlane.xlu1 %121 }
 0x15a   :  { %124 = vst.msk [vmem:[%s221_s4 + $0x8] sm:$0xff] %vm114_vm2, %v122_v14 }

// kernel: resnet_generator_forward.68
= control target key start
LH: loop header
LB: loop body
LE: loop exit
PB: predicated region body
PF: predicated region fallthrough
CT: control target
= control target key end

     0   :  { %vm227_vm0 = vcmask 7168   ;;  %s412_s1 = inlined_call_operand.vmem [shape: bf16[256,128], index: 1, kind: input, shape index: {}]   ;;  %s413_s0 = inlined_call_operand.vmem [shape: bf16[16,256], index: 0, kind: input, shape index: {}]   ;;  %s414_s2 = inlined_call_operand.vmem [shape: bf16[16,128], index: 2, kind: output, shape index: {0}]   ;;  %s415_s3 = inlined_call_operand.vmem [shape: f32[1,16,1], index: 3, kind: output, shape index: {1}]   ;;  %s416_s4 = inlined_call_operand.vmem [shape: f32[1,16,1], index: 4, kind: output, shape index: {2}]  }
   0x1   :  { %v299_v0 = vld [vmem:[%s412_s1 + $0x78] sm:$0xff]   ;;  %v301_v2 = vld [vmem:[%s412_s1 + $0x70] sm:$0xff]   ;;  %v303_v4 = vld [vmem:[%s412_s1 + $0x68] sm:$0xff]  }
   0x2   :  { %v300_v1 = vld [vmem:[%s412_s1 + $0x38] sm:$0xff]   ;;  %277 = vmatprep.subr.bf16.mxu0 %v299_v0  ;;  %v302_v3 = vld [vmem:[%s412_s1 + $0x30] sm:$0xff]   ;;  %v304_v5 = vld [vmem:[%s412_s1 + $0x28] sm:$0xff]  }
   0x3   :  { %278 = vmatpush3.bf16.msra.mxu0 %v300_v1  ;;  %v305_v6 = vld [vmem:[%s412_s1 + $0x60] sm:$0xff]   ;;  %v307_v8 = vld [vmem:[%s412_s1 + $0x58] sm:$0xff]   ;;  %v309_v10 = vld [vmem:[%s412_s1 + $0x50] sm:$0xff]  }
   0x4   :  { %279 = vmatprep.subr.bf16.mxu0 %v301_v2  ;;  %v306_v7 = vld [vmem:[%s412_s1 + $0x20] sm:$0xff]   ;;  %v308_v9 = vld [vmem:[%s412_s1 + $0x18] sm:$0xff]   ;;  %v310_v12 = vld [vmem:[%s412_s1 + $0x10] sm:$0xff]  }
   0x5   :  { %v317_v11 = vld [vmem:[%s413_s0 + $0x4] ss:$8 sps:$4 sm:$0xff]   ;;  %v315_v17 = vld [vmem:[%s413_s0] ss:$8 sps:$4 sm:$0xff]  }
   0x6   :  { %195 = vmatprep.mubr.bf16.mxu0 %v317_v11  ;;  %v311_v13 = vld [vmem:[%s412_s1 + $0x48] sm:$0xff]   ;;  %v313_v15 = vld [vmem:[%s412_s1 + $0x40] sm:$0xff]  }
   0x7   :  { %280 = vmatpush3.bf16.msra.mxu0 %v302_v3  ;;  %v312_v14 = vld [vmem:[%s412_s1 + $0x8] sm:$0xff]   ;;  %v314_v16 = vld [vmem:[%s412_s1] sm:$0xff]  }
   0x8   :  { %281 = vmatprep.subr.bf16.mxu0 %v303_v4 }
   0xb   :  { %282 = vmatpush3.bf16.msra.mxu0 %v304_v5 }
   0xc   :  { %283 = vmatprep.subr.bf16.mxu0 %v305_v6 }
   0xf   :  { %284 = vmatpush3.bf16.msra.mxu0 %v306_v7 }
  0x10   :  { %285 = vmatprep.subr.bf16.mxu0 %v307_v8 }
  0x13   :  { %286 = vmatpush3.bf16.msra.mxu0 %v308_v9 }
  0x14   :  { %287 = vmatprep.subr.bf16.mxu0 %v309_v10 }
  0x17   :  { %288 = vmatpush3.bf16.msra.mxu0 %v310_v12 }
  0x18   :  { %289 = vmatprep.subr.bf16.mxu0 %v311_v13 }
  0x1b   :  { %290 = vmatpush3.bf16.msra.mxu0 %v312_v14 }
  0x1c   :  { %291 = vmatprep.subr.bf16.mxu0 %v313_v15 }
  0x1f   :  { %292 = vmatpush3.bf16.msra.mxu0 %v314_v16 }
  0x22   :  { %196 = vmatmul.mubr.bf16.vlgmr.msra.gmra.mxu0 %v315_v17 }
  0xe2   :  { %v293_v18 = vpop.f32.mrf.mxu0 }
  0xe4   :  { %v294_v19 = vpop.f32.mrf.mxu0 }
  0xe5   :  { %v295_v20 = vadd.f32 %v294_v19, %v293_v18 }
  0xe6   :  { %v296_v21 = vpop.f32.mrf.mxu0 }
  0xe7   :  { %223 = vadd.xlane.f32.xlu0 %v295_v20  ;;  %v230_v22 = vmul.f32 %v295_v20, %v295_v20 }
  0xe8   :  { %v297_v23 = vpop.f32.mrf.mxu0 }
  0xe9   :  { %v298_v24 = vadd.f32 %v297_v23, %v296_v21  ;;  %232 = vadd.xlane.f32.xlu1 %v230_v22 }
  0xeb   :  { %v275_v25 = vpack.c.bf16 %v298_v24, %v295_v20  ;;  %225 = vadd.xlane.f32.xlu0 %v298_v24  ;;  %v231_v26 = vmul.f32 %v298_v24, %v298_v24 }
  0xed   :  { %276 = vst [vmem:[%s414_s2] sm:$0xff] %v275_v25   ;;  %234 = vadd.xlane.f32.xlu1 %v231_v26 }
 0x170   :  { %v224_v27 = vpop.xlane.xlu0 %223 }
 0x171   :  { %228 = vst.msk [vmem:[%s415_s3] sm:$0xff] %vm227_vm0, %v224_v27 }
 0x172   :  { %v233_v28 = vpop.xlane.xlu1 %232 }
 0x173   :  { %236 = vst.msk [vmem:[%s416_s4] sm:$0xff] %vm227_vm0, %v233_v28 }
 0x174   :  { %v226_v29 = vpop.xlane.xlu0 %225 }
 0x175   :  { %229 = vst.msk [vmem:[%s415_s3 + $0x8] sm:$0xff] %vm227_vm0, %v226_v29 }
 0x176   :  { %v235_v30 = vpop.xlane.xlu1 %234 }
 0x177   :  { %237 = vst.msk [vmem:[%s416_s4 + $0x8] sm:$0xff] %vm227_vm0, %v235_v30 }

// kernel: resnet_generator_forward.79
= control target key start
LH: loop header
LB: loop body
LE: loop exit
PB: predicated region body
PF: predicated region fallthrough
CT: control target
= control target key end

     0   :  { %v128_v0 = vmov 0.0   ;;  %vm129_vm0 = vmmov 0   ;;  %vm38_vm1 = vcmask 261120   ;;  %vm92_vm2 = vcmask 7168   ;;  %s173_s1 = inlined_call_operand.vmem [shape: bf16[32,128], index: 1, kind: input, shape index: {}]   ;;  %s174_s0 = inlined_call_operand.vmem [shape: bf16[8,32], index: 0, kind: input, shape index: {}]   ;;  %s175_s2 = inlined_call_operand.vmem [shape: bf16[8,128], index: 2, kind: output, shape index: {0}]   ;;  %s176_s3 = inlined_call_operand.vmem [shape: f32[1,8,1], index: 3, kind: output, shape index: {1}]   ;;  %s177_s4 = inlined_call_operand.vmem [shape: f32[1,8,1], index: 4, kind: output, shape index: {2}]  }
   0x1   :  { %116 = vmatprep.subr.bf16.mxu0 %v128_v0  ;;  %v126_v1 = vld [vmem:[%s173_s1 + $0x8] sm:$0xff]   ;;  %120 = vmatprep.mubr.msk.bf16.mxu0 %vm129_vm0, %v128_v0  ;;  %v127_v2 = vld [vmem:[%s173_s1] sm:$0xff]  }
   0x2   :  { %117 = vmatpush3.bf16.msra.mxu0 %v126_v1  ;;  %v21_v3 = vld [vmem:[%s174_s0] sm:$0xf] }
   0x3   :  { %118 = vmatprep.subr.bf16.mxu0 %v128_v0 }
   0x6   :  { %119 = vmatpush3.bf16.msra.mxu0 %v127_v2 }
   0x9   :  { %121 = vmatmul.mubr.msk.bf16.vlgmr.msra.gmra.mxu0 %vm38_vm1, %v21_v3 }
  0xc9   :  { %v76_v4 = vpop.f32.mrf.mxu0 }
  0xca   :  { %v88_v5 = vpack.c.bf16 %v76_v4, %v76_v4  ;;  %90 = vadd.xlane.f32.xlu0 %v76_v4  ;;  %v94_v7 = vmul.f32 %v76_v4, %v76_v4 }
  0xcb   :  { %v122_v6 = vpop.f32.mrf.mxu0 }
  0xcc   :  { %89 = vst [vmem:[%s175_s2] sm:$0xf] %v88_v5 }
  0xcd   :  { %v79_v8 = vpop.f32.mrf.mxu0 }
  0xce   :  { %95 = vadd.xlane.f32.xlu0 %v94_v7 }
  0xcf   :  { %v123_v9 = vpop.f32.mrf.mxu0 }
 0x153   :  { %v91_v10 = vpop.xlane.xlu0 %90 }
 0x154   :  { %93 = vst.msk [vmem:[%s176_s3] sm:$0xff] %vm92_vm2, %v91_v10 }
 0x157   :  { %v96_v11 = vpop.xlane.xlu0 %95 }
 0x158   :  { %97 = vst.msk [vmem:[%s177_s4] sm:$0xff] %vm92_vm2, %v96_v11 }

// kernel: resnet_generator_forward.82
= control target key start
LH: loop header
LB: loop body
LE: loop exit
PB: predicated region body
PF: predicated region fallthrough
CT: control target
= control target key end

     0   :  { %v154_v0 = vmov 0.0   ;;  %vm155_vm0 = vmmov 0   ;;  %vm54_vm1 = vcmask 523264   ;;  %vm108_vm2 = vcmask 7168   ;;  %s205_s1 = inlined_call_operand.vmem [shape: bf16[64,128], index: 1, kind: input, shape index: {}]   ;;  %s206_s0 = inlined_call_operand.vmem [shape: bf16[8,64], index: 0, kind: input, shape index: {}]   ;;  %s207_s2 = inlined_call_operand.vmem [shape: bf16[8,128], index: 2, kind: output, shape index: {0}]   ;;  %s208_s3 = inlined_call_operand.vmem [shape: f32[1,8,1], index: 3, kind: output, shape index: {1}]   ;;  %s209_s4 = inlined_call_operand.vmem [shape: f32[1,8,1], index: 4, kind: output, shape index: {2}]  }
   0x1   :  { %136 = vmatprep.subr.bf16.mxu0 %v154_v0  ;;  %v150_v1 = vld [vmem:[%s205_s1 + $0x18] sm:$0xff]   ;;  %144 = vmatprep.mubr.msk.bf16.mxu0 %vm155_vm0, %v154_v0  ;;  %v151_v2 = vld [vmem:[%s205_s1 + $0x10] sm:$0xff]   ;;  %v152_v3 = vld [vmem:[%s205_s1 + $0x8] sm:$0xff]  }
   0x2   :  { %137 = vmatpush3.bf16.msra.mxu0 %v150_v1  ;;  %v153_v4 = vld [vmem:[%s205_s1] sm:$0xff]  }
   0x3   :  { %138 = vmatprep.subr.bf16.mxu0 %v154_v0  ;;  %v21_v5 = vld [vmem:[%s206_s0] sm:$0xf] }
   0x6   :  { %139 = vmatpush3.bf16.msra.mxu0 %v151_v2 }
   0x7   :  { %140 = vmatprep.subr.bf16.mxu0 %v154_v0 }
   0xa   :  { %141 = vmatpush3.bf16.msra.mxu0 %v152_v3 }
   0xb   :  { %142 = vmatprep.subr.bf16.mxu0 %v154_v0 }
   0xe   :  { %143 = vmatpush3.bf16.msra.mxu0 %v153_v4 }
  0x11   :  { %145 = vmatmul.mubr.msk.bf16.vlgmr.msra.gmra.mxu0 %vm54_vm1, %v21_v5 }
  0xd1   :  { %v92_v6 = vpop.f32.mrf.mxu0 }
  0xd2   :  { %v104_v7 = vpack.c.bf16 %v92_v6, %v92_v6  ;;  %106 = vadd.xlane.f32.xlu0 %v92_v6  ;;  %v110_v9 = vmul.f32 %v92_v6, %v92_v6 }
  0xd3   :  { %v146_v8 = vpop.f32.mrf.mxu0 }
  0xd4   :  { %105 = vst [vmem:[%s207_s2] sm:$0xf] %v104_v7 }
  0xd5   :  { %v95_v10 = vpop.f32.mrf.mxu0 }
  0xd6   :  { %111 = vadd.xlane.f32.xlu0 %v110_v9 }
  0xd7   :  { %v147_v11 = vpop.f32.mrf.mxu0 }
 0x15b   :  { %v107_v12 = vpop.xlane.xlu0 %106 }
 0x15c   :  { %109 = vst.msk [vmem:[%s208_s3] sm:$0xff] %vm108_vm2, %v107_v12 }
 0x15f   :  { %v112_v13 = vpop.xlane.xlu0 %111 }
 0x160   :  { %113 = vst.msk [vmem:[%s209_s4] sm:$0xff] %vm108_vm2, %v112_v13 }

// kernel: resnet_generator_forward.84
= control target key start
LH: loop header
LB: loop body
LE: loop exit
PB: predicated region body
PF: predicated region fallthrough
CT: control target
= control target key end

     0   :  { %v201_v0 = vmov 0.0   ;;  %vm202_vm0 = vmmov 0   ;;  %vm136_vm1 = vcmask 7168   ;;  %s264_s1 = inlined_call_operand.vmem [shape: bf16[128,128], index: 1, kind: input, shape index: {}]   ;;  %s265_s0 = inlined_call_operand.vmem [shape: bf16[8,128], index: 0, kind: input, shape index: {}]   ;;  %s266_s2 = inlined_call_operand.vmem [shape: bf16[8,128], index: 2, kind: output, shape index: {0}]   ;;  %s267_s3 = inlined_call_operand.vmem [shape: f32[1,8,1], index: 3, kind: output, shape index: {1}]   ;;  %s268_s4 = inlined_call_operand.vmem [shape: f32[1,8,1], index: 4, kind: output, shape index: {2}]  }
   0x1   :  { %171 = vmatprep.subr.bf16.mxu0 %v201_v0  ;;  %v193_v1 = vld [vmem:[%s264_s1 + $0x38] sm:$0xff]   ;;  %187 = vmatprep.mubr.msk.bf16.mxu0 %vm202_vm0, %v201_v0  ;;  %v194_v2 = vld [vmem:[%s264_s1 + $0x30] sm:$0xff]   ;;  %v195_v3 = vld [vmem:[%s264_s1 + $0x28] sm:$0xff]  }
   0x2   :  { %172 = vmatpush3.bf16.msra.mxu0 %v193_v1  ;;  %v196_v4 = vld [vmem:[%s264_s1 + $0x20] sm:$0xff]   ;;  %v197_v5 = vld [vmem:[%s264_s1 + $0x18] sm:$0xff]   ;;  %v198_v6 = vld [vmem:[%s264_s1 + $0x10] sm:$0xff]  }
   0x3   :  { %173 = vmatprep.subr.bf16.mxu0 %v201_v0  ;;  %v199_v7 = vld [vmem:[%s264_s1 + $0x8] sm:$0xff]   ;;  %v200_v8 = vld [vmem:[%s264_s1] sm:$0xff]  }
   0x4   :  { %v21_v9 = vld [vmem:[%s265_s0] sm:$0xf] }
   0x6   :  { %174 = vmatpush3.bf16.msra.mxu0 %v194_v2 }
   0x7   :  { %175 = vmatprep.subr.bf16.mxu0 %v201_v0 }
   0xa   :  { %176 = vmatpush3.bf16.msra.mxu0 %v195_v3 }
   0xb   :  { %177 = vmatprep.subr.bf16.mxu0 %v201_v0 }
   0xe   :  { %178 = vmatpush3.bf16.msra.mxu0 %v196_v4 }
   0xf   :  { %179 = vmatprep.subr.bf16.mxu0 %v201_v0 }
  0x12   :  { %180 = vmatpush3.bf16.msra.mxu0 %v197_v5 }
  0x13   :  { %181 = vmatprep.subr.bf16.mxu0 %v201_v0 }
  0x16   :  { %182 = vmatpush3.bf16.msra.mxu0 %v198_v6 }
  0x17   :  { %183 = vmatprep.subr.bf16.mxu0 %v201_v0 }
  0x1a   :  { %184 = vmatpush3.bf16.msra.mxu0 %v199_v7 }
  0x1b   :  { %185 = vmatprep.subr.bf16.mxu0 %v201_v0 }
  0x1e   :  { %186 = vmatpush3.bf16.msra.mxu0 %v200_v8 }
  0x21   :  { %188 = vmatmul.mubr.bf16.vlgmr.msra.gmra.mxu0 %v21_v9 }
  0xe1   :  { %v120_v10 = vpop.f32.mrf.mxu0 }
  0xe2   :  { %v132_v11 = vpack.c.bf16 %v120_v10, %v120_v10  ;;  %134 = vadd.xlane.f32.xlu0 %v120_v10  ;;  %v138_v13 = vmul.f32 %v120_v10, %v120_v10 }
  0xe3   :  { %v189_v12 = vpop.f32.mrf.mxu0 }
  0xe4   :  { %133 = vst [vmem:[%s266_s2] sm:$0xf] %v132_v11 }
  0xe5   :  { %v123_v14 = vpop.f32.mrf.mxu0 }
  0xe6   :  { %139 = vadd.xlane.f32.xlu0 %v138_v13 }
  0xe7   :  { %v190_v15 = vpop.f32.mrf.mxu0 }
 0x16b   :  { %v135_v16 = vpop.xlane.xlu0 %134 }
 0x16c   :  { %137 = vst.msk [vmem:[%s267_s3] sm:$0xff] %vm136_vm1, %v135_v16 }
 0x16f   :  { %v140_v17 = vpop.xlane.xlu0 %139 }
 0x170   :  { %141 = vst.msk [vmem:[%s268_s4] sm:$0xff] %vm136_vm1, %v140_v17 }

// kernel: resnet_generator_forward.77
= control target key start
LH: loop header
LB: loop body
LE: loop exit
PB: predicated region body
PF: predicated region fallthrough
CT: control target
= control target key end

     0   :  { %v115_v0 = vmov 0.0   ;;  %vm116_vm0 = vmmov 0   ;;  %vm30_vm1 = vcmask 130048   ;;  %vm84_vm2 = vcmask 7168   ;;  %s157_s1 = inlined_call_operand.vmem [shape: bf16[16,128], index: 1, kind: input, shape index: {}]   ;;  %s158_s0 = inlined_call_operand.vmem [shape: bf16[8,16], index: 0, kind: input, shape index: {}]   ;;  %s159_s2 = inlined_call_operand.vmem [shape: bf16[8,128], index: 2, kind: output, shape index: {0}]   ;;  %s160_s3 = inlined_call_operand.vmem [shape: f32[1,8,1], index: 3, kind: output, shape index: {1}]   ;;  %s161_s4 = inlined_call_operand.vmem [shape: f32[1,8,1], index: 4, kind: output, shape index: {2}]  }
   0x1   :  { %106 = vmatprep.subr.bf16.mxu0 %v115_v0  ;;  %v114_v1 = vld [vmem:[%s157_s1] sm:$0xff]   ;;  %108 = vmatprep.mubr.msk.bf16.mxu0 %vm116_vm0, %v115_v0 }
   0x2   :  { %107 = vmatpush3.bf16.msra.mxu0 %v114_v1  ;;  %v21_v2 = vld [vmem:[%s158_s0] sm:$0xf] }
   0x5   :  { %109 = vmatmul.mubr.msk.bf16.vlgmr.msra.gmra.mxu0 %vm30_vm1, %v21_v2 }
  0xc5   :  { %v68_v3 = vpop.f32.mrf.mxu0 }
  0xc6   :  { %v80_v4 = vpack.c.bf16 %v68_v3, %v68_v3  ;;  %82 = vadd.xlane.f32.xlu0 %v68_v3  ;;  %v86_v6 = vmul.f32 %v68_v3, %v68_v3 }
  0xc7   :  { %v110_v5 = vpop.f32.mrf.mxu0 }
  0xc8   :  { %81 = vst [vmem:[%s159_s2] sm:$0xf] %v80_v4 }
  0xc9   :  { %v71_v7 = vpop.f32.mrf.mxu0 }
  0xca   :  { %87 = vadd.xlane.f32.xlu0 %v86_v6 }
  0xcb   :  { %v111_v8 = vpop.f32.mrf.mxu0 }
 0x14f   :  { %v83_v9 = vpop.xlane.xlu0 %82 }
 0x150   :  { %85 = vst.msk [vmem:[%s160_s3] sm:$0xff] %vm84_vm2, %v83_v9 }
 0x153   :  { %v88_v10 = vpop.xlane.xlu0 %87 }
 0x154   :  { %89 = vst.msk [vmem:[%s161_s4] sm:$0xff] %vm84_vm2, %v88_v10 }

// kernel: resnet_generator_forward.92
= control target key start
LH: loop header
LB: loop body
LE: loop exit
PB: predicated region body
PF: predicated region fallthrough
CT: control target
= control target key end

     0   :  { %v39_v0 = vmov 0   ;;  %s72_s1 = inlined_call_operand.vmem [shape: f32[8,1], index: 1, kind: input, shape index: {}]   ;;  %s73_s2 = inlined_call_operand.vmem [shape: f32[8,1], index: 2, kind: input, shape index: {}]   ;;  %s74_s0 = inlined_call_operand.vmem [shape: bf16[8,128], index: 0, kind: input, shape index: {}]   ;;  %s75_s3 = inlined_call_operand.vmem [shape: bf16[8,128], index: 3, kind: output, shape index: {}]  }
   0x1   :  { %38 = vset.pattern.permute.xlu0 %v39_v0  ;;  %v16_v1 = vld [vmem:[%s72_s1] sm:$0xff] }
   0x2   :  { %19 = vperm.xlu0 %38, %v16_v1   ;;  %v23_v2 = vld [vmem:[%s73_s2] sm:$0xff] }
   0x3   :  { %v14_v3 = vld [vmem:[%s74_s0] sm:$0xf] }
   0x4   :  { %v15_v4 = vunpack.c.l.bf16 %v14_v3 }
   0x6   :  { %26 = vperm.xlu0 %38, %v23_v2  }
  0x7d   :  { %v20_v5 = vpop.permute.xlu0 %19 }
  0x7e   :  { %v22_v6 = vmul.f32 %v20_v5, %v15_v4 }
  0x81   :  { %v27_v7 = vpop.permute.xlu0 %26 }
  0x82   :  { %v29_v8 = vadd.f32 %v27_v7, %v22_v6 }
  0x84   :  { %v30_v9 = vmax.f32 %v29_v8, 0.0 }
  0x86   :  { %v31_v10 = vpack.c.bf16 %v30_v9, %v30_v9 }
  0x88   :  { %32 = vst [vmem:[%s75_s3] sm:$0xf] %v31_v10 }

// kernel: resnet_generator_forward.93
= control target key start
LH: loop header
LB: loop body
LE: loop exit
PB: predicated region body
PF: predicated region fallthrough
CT: control target
= control target key end

     0   :  { %s2353_s12 = smov 0   ;;  %s2355_s13 = smov 0   ;;  %s2861_s0 = inlined_call_operand.vmem [shape: bf16[2,3072], index: 0, kind: input, shape index: {}]   ;;  %s2862_s1 = inlined_call_operand.vmem [shape: bf16[3072,512], index: 1, kind: input, shape index: {}]   ;;  %s2863_s2 = inlined_call_operand.vmem [shape: f32[2,1], index: 2, kind: input, shape index: {}]   ;;  %s2864_s3 = inlined_call_operand.vmem [shape: f32[2,512], index: 3, kind: output, shape index: {}]  }
   0x1   :  { %s2357_s14 = smov 0   ;;  %s2359_s15 = smov 0  }
   0x2   :  { %s2361_s16 = smov 0   ;;  %s2363_s17 = smov 0  }
   0x3   :  { %s2365_s18 = smov 0  }
   0x4 LB: > { %s22_s19 = sadd.s32 1, %s2318_s16  ;;  %s25_s20 = sadd.s32 1, %s2322_s17  ;;  %s2326_s18 = sphi %s2365_s18, %s13_s18   ;;  %s2322_s17 = sphi %s2363_s17, %s2870_s17   ;;  %s2318_s16 = sphi %s2361_s16, %s2869_s16   ;;  %s2314_s15 = sphi %s2359_s15, %s2868_s15   ;;  %s2310_s14 = sphi %s2357_s14, %s2867_s14   ;;  %s2306_s13 = sphi %s2355_s13, %s2866_s13   ;;  %s2302_s12 = sphi %s2353_s12, %s2865_s12  }
   0x5   : > { %p23_p0 = scmp.ge.s32.totalorder %s22_s19, 3  ;;  %p67_p1 = scmp.ne.s32.totalorder %s2306_s13, %s2302_s12 }
   0x6   : > { %p68_p2 = scmp.eq.s32.totalorder %s2326_s18, 0  ;;  %s60_s24 = sadd.s32 1, %s2306_s13 }
   0x7   : > { %s2872_s19 = smov (%p23_p0, %s22_s19), 0  ;;  %s2874_s20 = smov (!%p23_p0, %s25_s20), %s2322_s17 }
   0x8   : > { %p69_p3 = por %p68_p2, %p67_p1  ;;  %p27_p4 = scmp.ge.s32.totalorder %s2874_s20, 2 }
   0x9   : > { %s55_s21 = ssub.s32 %s2318_s16, %s2872_s19  ;;  %p1873_p6 = scmp.ge.s32.totalorder %s2326_s18, 6 }
   0xa   : > { %s2876_s20 = smov (%p27_p4, %s2874_s20), 0 }
   0xb   : > { %s56_s22 = ssub.s32 %s2322_s17, %s2876_s20  ;;  %143 = sbr.rel (%p1873_p6) target bundleno = 87 (0x57), region = 20 }
   0xc   : > { %s57_s23 = sor.u32 %s56_s22, %s55_s21 }
   0xd   : > { %p58_p5 = scmp.eq.s32.totalorder %s57_s23, 0 }
   0xf   : > { %s2404_s25 = scalar_select %p58_p5, %s2306_s13, %s60_s24  }
  0x10   : > { %154 = sbr.rel (!%p69_p3) target bundleno = 87 (0x57), region = 28  ;;  %s156_s26 = sand.u32 (%p69_p3), 1, %s2306_s13  }
  0x11   : > { %s1876_s27 = sshll.u32 (%p69_p3), %s2322_s17, 1  ;;  %s1874_s28 = sshll.u32 (%p69_p3), %s156_s26, 10 }
  0x12   : > { %s2016_s29 = sshll.u32 (%p69_p3), %s2318_s16, 9  ;;  %s2418_s8 = scalar_lea.vmem (%p69_p3), [#allocation3], %s1874_s28 }
  0x13   : > { %s162_s30 = sadd.s32 (%p69_p3), %s2016_s29, %s1876_s27 }
  0x14   : > { %s1878_s4 = sshll.u32 (%p69_p3), %s162_s30, 2 }
  0x15   : > { %s2413_s7 = scalar_lea.vmem %s2862_s1, %s1878_s4 }
  0x16   : > { %v447_v0 = vld [vmem:[%s2413_s7] sm:$0xff]  ;;  %v449_v1 = vld [vmem:[%s2413_s7 + $0x10] sm:$0xff] }
  0x17   : > { %v451_v2 = vld [vmem:[%s2413_s7 + $0x20] sm:$0xff]  ;;  %448 = vst [vmem:[%s2418_s8] sm:$0xff] %v447_v0  ;;  %450 = vst [vmem:[%s2418_s8 + $0x8] sm:$0xff] %v449_v1  ;;  %v453_v3 = vld [vmem:[%s2413_s7 + $0x30] sm:$0xff] }
  0x18   : > { %452 = vst [vmem:[%s2418_s8 + $0x10] sm:$0xff] %v451_v2  ;;  %v455_v4 = vld [vmem:[%s2413_s7 + $0x40] sm:$0xff]  ;;  %v457_v5 = vld [vmem:[%s2413_s7 + $0x50] sm:$0xff]  ;;  %454 = vst [vmem:[%s2418_s8 + $0x18] sm:$0xff] %v453_v3 }
  0x19   : > { %456 = vst [vmem:[%s2418_s8 + $0x20] sm:$0xff] %v455_v4  ;;  %458 = vst [vmem:[%s2418_s8 + $0x28] sm:$0xff] %v457_v5  ;;  %v459_v6 = vld [vmem:[%s2413_s7 + $0x60] sm:$0xff]  ;;  %v461_v7 = vld [vmem:[%s2413_s7 + $0x70] sm:$0xff] }
  0x1a   : > { %v463_v8 = vld [vmem:[%s2413_s7 + $0x80] sm:$0xff]  ;;  %460 = vst [vmem:[%s2418_s8 + $0x30] sm:$0xff] %v459_v6  ;;  %462 = vst [vmem:[%s2418_s8 + $0x38] sm:$0xff] %v461_v7  ;;  %v465_v9 = vld [vmem:[%s2413_s7 + $0x90] sm:$0xff] }
  0x1b   : > { %464 = vst [vmem:[%s2418_s8 + $0x40] sm:$0xff] %v463_v8  ;;  %v467_v10 = vld [vmem:[%s2413_s7 + $0xa0] sm:$0xff]  ;;  %v469_v11 = vld [vmem:[%s2413_s7 + $0xb0] sm:$0xff]  ;;  %466 = vst [vmem:[%s2418_s8 + $0x48] sm:$0xff] %v465_v9 }
  0x1c   : > { %468 = vst [vmem:[%s2418_s8 + $0x50] sm:$0xff] %v467_v10  ;;  %470 = vst [vmem:[%s2418_s8 + $0x58] sm:$0xff] %v469_v11  ;;  %v471_v12 = vld [vmem:[%s2413_s7 + $0xc0] sm:$0xff]  ;;  %v473_v13 = vld [vmem:[%s2413_s7 + $0xd0] sm:$0xff] }
  0x1d   : > { %v475_v14 = vld [vmem:[%s2413_s7 + $0xe0] sm:$0xff]  ;;  %472 = vst [vmem:[%s2418_s8 + $0x60] sm:$0xff] %v471_v12  ;;  %474 = vst [vmem:[%s2418_s8 + $0x68] sm:$0xff] %v473_v13  ;;  %v477_v15 = vld [vmem:[%s2413_s7 + $0xf0] sm:$0xff] }
  0x1e   : > { %476 = vst [vmem:[%s2418_s8 + $0x70] sm:$0xff] %v475_v14  ;;  %v479_v16 = vld [vmem:[%s2413_s7 + $0x100] sm:$0xff]  ;;  %v481_v17 = vld [vmem:[%s2413_s7 + $0x110] sm:$0xff]  ;;  %478 = vst [vmem:[%s2418_s8 + $0x78] sm:$0xff] %v477_v15 }
  0x1f   : > { %480 = vst [vmem:[%s2418_s8 + $0x80] sm:$0xff] %v479_v16  ;;  %482 = vst [vmem:[%s2418_s8 + $0x88] sm:$0xff] %v481_v17  ;;  %v483_v18 = vld [vmem:[%s2413_s7 + $0x120] sm:$0xff]  ;;  %v485_v19 = vld [vmem:[%s2413_s7 + $0x130] sm:$0xff] }
  0x20   : > { %v487_v20 = vld [vmem:[%s2413_s7 + $0x140] sm:$0xff]  ;;  %484 = vst [vmem:[%s2418_s8 + $0x90] sm:$0xff] %v483_v18  ;;  %486 = vst [vmem:[%s2418_s8 + $0x98] sm:$0xff] %v485_v19  ;;  %v489_v21 = vld [vmem:[%s2413_s7 + $0x150] sm:$0xff] }
  0x21   : > { %488 = vst [vmem:[%s2418_s8 + $0xa0] sm:$0xff] %v487_v20  ;;  %v491_v22 = vld [vmem:[%s2413_s7 + $0x160] sm:$0xff]  ;;  %v493_v23 = vld [vmem:[%s2413_s7 + $0x170] sm:$0xff]  ;;  %490 = vst [vmem:[%s2418_s8 + $0xa8] sm:$0xff] %v489_v21 }
  0x22   : > { %492 = vst [vmem:[%s2418_s8 + $0xb0] sm:$0xff] %v491_v22  ;;  %494 = vst [vmem:[%s2418_s8 + $0xb8] sm:$0xff] %v493_v23  ;;  %v495_v24 = vld [vmem:[%s2413_s7 + $0x180] sm:$0xff]  ;;  %v497_v25 = vld [vmem:[%s2413_s7 + $0x190] sm:$0xff] }
  0x23   : > { %v499_v26 = vld [vmem:[%s2413_s7 + $0x1a0] sm:$0xff]  ;;  %496 = vst [vmem:[%s2418_s8 + $0xc0] sm:$0xff] %v495_v24  ;;  %498 = vst [vmem:[%s2418_s8 + $0xc8] sm:$0xff] %v497_v25  ;;  %v501_v27 = vld [vmem:[%s2413_s7 + $0x1b0] sm:$0xff] }
  0x24   : > { %500 = vst [vmem:[%s2418_s8 + $0xd0] sm:$0xff] %v499_v26  ;;  %v503_v28 = vld [vmem:[%s2413_s7 + $0x1c0] sm:$0xff]  ;;  %v505_v29 = vld [vmem:[%s2413_s7 + $0x1d0] sm:$0xff]  ;;  %502 = vst [vmem:[%s2418_s8 + $0xd8] sm:$0xff] %v501_v27 }
  0x25   : > { %504 = vst [vmem:[%s2418_s8 + $0xe0] sm:$0xff] %v503_v28  ;;  %506 = vst [vmem:[%s2418_s8 + $0xe8] sm:$0xff] %v505_v29  ;;  %v507_v30 = vld [vmem:[%s2413_s7 + $0x1e0] sm:$0xff]  ;;  %v509_v31 = vld [vmem:[%s2413_s7 + $0x1f0] sm:$0xff] }
  0x26   : > { %v511_v32 = vld [vmem:[%s2413_s7 + $0x200] sm:$0xff]  ;;  %508 = vst [vmem:[%s2418_s8 + $0xf0] sm:$0xff] %v507_v30  ;;  %510 = vst [vmem:[%s2418_s8 + $0xf8] sm:$0xff] %v509_v31  ;;  %v513_v33 = vld [vmem:[%s2413_s7 + $0x210] sm:$0xff] }
  0x27   : > { %512 = vst [vmem:[%s2418_s8 + $0x100] sm:$0xff] %v511_v32  ;;  %v515_v34 = vld [vmem:[%s2413_s7 + $0x220] sm:$0xff]  ;;  %v517_v35 = vld [vmem:[%s2413_s7 + $0x230] sm:$0xff]  ;;  %514 = vst [vmem:[%s2418_s8 + $0x108] sm:$0xff] %v513_v33 }
  0x28   : > { %516 = vst [vmem:[%s2418_s8 + $0x110] sm:$0xff] %v515_v34  ;;  %518 = vst [vmem:[%s2418_s8 + $0x118] sm:$0xff] %v517_v35  ;;  %v519_v36 = vld [vmem:[%s2413_s7 + $0x240] sm:$0xff]  ;;  %v521_v37 = vld [vmem:[%s2413_s7 + $0x250] sm:$0xff] }
  0x29   : > { %v523_v38 = vld [vmem:[%s2413_s7 + $0x260] sm:$0xff]  ;;  %520 = vst [vmem:[%s2418_s8 + $0x120] sm:$0xff] %v519_v36  ;;  %522 = vst [vmem:[%s2418_s8 + $0x128] sm:$0xff] %v521_v37  ;;  %v525_v39 = vld [vmem:[%s2413_s7 + $0x270] sm:$0xff] }
  0x2a   : > { %524 = vst [vmem:[%s2418_s8 + $0x130] sm:$0xff] %v523_v38  ;;  %v527_v40 = vld [vmem:[%s2413_s7 + $0x280] sm:$0xff]  ;;  %v529_v41 = vld [vmem:[%s2413_s7 + $0x290] sm:$0xff]  ;;  %526 = vst [vmem:[%s2418_s8 + $0x138] sm:$0xff] %v525_v39 }
  0x2b   : > { %528 = vst [vmem:[%s2418_s8 + $0x140] sm:$0xff] %v527_v40  ;;  %530 = vst [vmem:[%s2418_s8 + $0x148] sm:$0xff] %v529_v41  ;;  %v531_v42 = vld [vmem:[%s2413_s7 + $0x2a0] sm:$0xff]  ;;  %v533_v43 = vld [vmem:[%s2413_s7 + $0x2b0] sm:$0xff] }
  0x2c   : > { %v535_v44 = vld [vmem:[%s2413_s7 + $0x2c0] sm:$0xff]  ;;  %532 = vst [vmem:[%s2418_s8 + $0x150] sm:$0xff] %v531_v42  ;;  %534 = vst [vmem:[%s2418_s8 + $0x158] sm:$0xff] %v533_v43  ;;  %v537_v45 = vld [vmem:[%s2413_s7 + $0x2d0] sm:$0xff] }
  0x2d   : > { %536 = vst [vmem:[%s2418_s8 + $0x160] sm:$0xff] %v535_v44  ;;  %v539_v46 = vld [vmem:[%s2413_s7 + $0x2e0] sm:$0xff]  ;;  %v541_v47 = vld [vmem:[%s2413_s7 + $0x2f0] sm:$0xff]  ;;  %538 = vst [vmem:[%s2418_s8 + $0x168] sm:$0xff] %v537_v45 }
  0x2e   : > { %540 = vst [vmem:[%s2418_s8 + $0x170] sm:$0xff] %v539_v46  ;;  %542 = vst [vmem:[%s2418_s8 + $0x178] sm:$0xff] %v541_v47  ;;  %v543_v48 = vld [vmem:[%s2413_s7 + $0x300] sm:$0xff]  ;;  %v545_v49 = vld [vmem:[%s2413_s7 + $0x310] sm:$0xff] }
  0x2f   : > { %v547_v50 = vld [vmem:[%s2413_s7 + $0x320] sm:$0xff]  ;;  %544 = vst [vmem:[%s2418_s8 + $0x180] sm:$0xff] %v543_v48  ;;  %546 = vst [vmem:[%s2418_s8 + $0x188] sm:$0xff] %v545_v49  ;;  %v549_v51 = vld [vmem:[%s2413_s7 + $0x330] sm:$0xff] }
  0x30   : > { %548 = vst [vmem:[%s2418_s8 + $0x190] sm:$0xff] %v547_v50  ;;  %v551_v52 = vld [vmem:[%s2413_s7 + $0x340] sm:$0xff]  ;;  %v553_v53 = vld [vmem:[%s2413_s7 + $0x350] sm:$0xff]  ;;  %550 = vst [vmem:[%s2418_s8 + $0x198] sm:$0xff] %v549_v51 }
  0x31   : > { %552 = vst [vmem:[%s2418_s8 + $0x1a0] sm:$0xff] %v551_v52  ;;  %554 = vst [vmem:[%s2418_s8 + $0x1a8] sm:$0xff] %v553_v53  ;;  %v555_v54 = vld [vmem:[%s2413_s7 + $0x360] sm:$0xff]  ;;  %v557_v55 = vld [vmem:[%s2413_s7 + $0x370] sm:$0xff] }
  0x32   : > { %v559_v56 = vld [vmem:[%s2413_s7 + $0x380] sm:$0xff]  ;;  %556 = vst [vmem:[%s2418_s8 + $0x1b0] sm:$0xff] %v555_v54  ;;  %558 = vst [vmem:[%s2418_s8 + $0x1b8] sm:$0xff] %v557_v55  ;;  %v561_v57 = vld [vmem:[%s2413_s7 + $0x390] sm:$0xff] }
  0x33   : > { %560 = vst [vmem:[%s2418_s8 + $0x1c0] sm:$0xff] %v559_v56  ;;  %v563_v58 = vld [vmem:[%s2413_s7 + $0x3a0] sm:$0xff]  ;;  %v565_v59 = vld [vmem:[%s2413_s7 + $0x3b0] sm:$0xff]  ;;  %562 = vst [vmem:[%s2418_s8 + $0x1c8] sm:$0xff] %v561_v57 }
  0x34   : > { %564 = vst [vmem:[%s2418_s8 + $0x1d0] sm:$0xff] %v563_v58  ;;  %566 = vst [vmem:[%s2418_s8 + $0x1d8] sm:$0xff] %v565_v59  ;;  %v567_v60 = vld [vmem:[%s2413_s7 + $0x3c0] sm:$0xff]  ;;  %v569_v61 = vld [vmem:[%s2413_s7 + $0x3d0] sm:$0xff] }
  0x35   : > { %v571_v62 = vld [vmem:[%s2413_s7 + $0x3e0] sm:$0xff]  ;;  %568 = vst [vmem:[%s2418_s8 + $0x1e0] sm:$0xff] %v567_v60  ;;  %570 = vst [vmem:[%s2418_s8 + $0x1e8] sm:$0xff] %v569_v61  ;;  %v573_v63 = vld [vmem:[%s2413_s7 + $0x3f0] sm:$0xff] }
  0x36   : > { %572 = vst [vmem:[%s2418_s8 + $0x1f0] sm:$0xff] %v571_v62  ;;  %v575_v0 = vld [vmem:[%s2413_s7 + $0x400] sm:$0xff]  ;;  %v577_v1 = vld [vmem:[%s2413_s7 + $0x410] sm:$0xff]  ;;  %574 = vst [vmem:[%s2418_s8 + $0x1f8] sm:$0xff] %v573_v63 }
  0x37   : > { %576 = vst [vmem:[%s2418_s8 + $0x200] sm:$0xff] %v575_v0  ;;  %578 = vst [vmem:[%s2418_s8 + $0x208] sm:$0xff] %v577_v1  ;;  %v579_v2 = vld [vmem:[%s2413_s7 + $0x420] sm:$0xff]  ;;  %v581_v3 = vld [vmem:[%s2413_s7 + $0x430] sm:$0xff] }
  0x38   : > { %v583_v4 = vld [vmem:[%s2413_s7 + $0x440] sm:$0xff]  ;;  %580 = vst [vmem:[%s2418_s8 + $0x210] sm:$0xff] %v579_v2  ;;  %582 = vst [vmem:[%s2418_s8 + $0x218] sm:$0xff] %v581_v3  ;;  %v585_v5 = vld [vmem:[%s2413_s7 + $0x450] sm:$0xff] }
  0x39   : > { %584 = vst [vmem:[%s2418_s8 + $0x220] sm:$0xff] %v583_v4  ;;  %v587_v6 = vld [vmem:[%s2413_s7 + $0x460] sm:$0xff]  ;;  %v589_v7 = vld [vmem:[%s2413_s7 + $0x470] sm:$0xff]  ;;  %586 = vst [vmem:[%s2418_s8 + $0x228] sm:$0xff] %v585_v5 }
  0x3a   : > { %588 = vst [vmem:[%s2418_s8 + $0x230] sm:$0xff] %v587_v6  ;;  %590 = vst [vmem:[%s2418_s8 + $0x238] sm:$0xff] %v589_v7  ;;  %v591_v8 = vld [vmem:[%s2413_s7 + $0x480] sm:$0xff]  ;;  %v593_v9 = vld [vmem:[%s2413_s7 + $0x490] sm:$0xff] }
  0x3b   : > { %v595_v10 = vld [vmem:[%s2413_s7 + $0x4a0] sm:$0xff]  ;;  %592 = vst [vmem:[%s2418_s8 + $0x240] sm:$0xff] %v591_v8  ;;  %594 = vst [vmem:[%s2418_s8 + $0x248] sm:$0xff] %v593_v9  ;;  %v597_v11 = vld [vmem:[%s2413_s7 + $0x4b0] sm:$0xff] }
  0x3c   : > { %596 = vst [vmem:[%s2418_s8 + $0x250] sm:$0xff] %v595_v10  ;;  %v599_v12 = vld [vmem:[%s2413_s7 + $0x4c0] sm:$0xff]  ;;  %v601_v13 = vld [vmem:[%s2413_s7 + $0x4d0] sm:$0xff]  ;;  %598 = vst [vmem:[%s2418_s8 + $0x258] sm:$0xff] %v597_v11 }
  0x3d   : > { %600 = vst [vmem:[%s2418_s8 + $0x260] sm:$0xff] %v599_v12  ;;  %602 = vst [vmem:[%s2418_s8 + $0x268] sm:$0xff] %v601_v13  ;;  %v603_v14 = vld [vmem:[%s2413_s7 + $0x4e0] sm:$0xff]  ;;  %v605_v15 = vld [vmem:[%s2413_s7 + $0x4f0] sm:$0xff] }
  0x3e   : > { %v607_v16 = vld [vmem:[%s2413_s7 + $0x500] sm:$0xff]  ;;  %604 = vst [vmem:[%s2418_s8 + $0x270] sm:$0xff] %v603_v14  ;;  %606 = vst [vmem:[%s2418_s8 + $0x278] sm:$0xff] %v605_v15  ;;  %v609_v17 = vld [vmem:[%s2413_s7 + $0x510] sm:$0xff] }
  0x3f   : > { %608 = vst [vmem:[%s2418_s8 + $0x280] sm:$0xff] %v607_v16  ;;  %v611_v18 = vld [vmem:[%s2413_s7 + $0x520] sm:$0xff]  ;;  %v613_v19 = vld [vmem:[%s2413_s7 + $0x530] sm:$0xff]  ;;  %610 = vst [vmem:[%s2418_s8 + $0x288] sm:$0xff] %v609_v17 }
  0x40   : > { %612 = vst [vmem:[%s2418_s8 + $0x290] sm:$0xff] %v611_v18  ;;  %614 = vst [vmem:[%s2418_s8 + $0x298] sm:$0xff] %v613_v19  ;;  %v615_v20 = vld [vmem:[%s2413_s7 + $0x540] sm:$0xff]  ;;  %v617_v21 = vld [vmem:[%s2413_s7 + $0x550] sm:$0xff] }
  0x41   : > { %v619_v22 = vld [vmem:[%s2413_s7 + $0x560] sm:$0xff]  ;;  %616 = vst [vmem:[%s2418_s8 + $0x2a0] sm:$0xff] %v615_v20  ;;  %618 = vst [vmem:[%s2418_s8 + $0x2a8] sm:$0xff] %v617_v21  ;;  %v621_v23 = vld [vmem:[%s2413_s7 + $0x570] sm:$0xff] }
  0x42   : > { %620 = vst [vmem:[%s2418_s8 + $0x2b0] sm:$0xff] %v619_v22  ;;  %v623_v24 = vld [vmem:[%s2413_s7 + $0x580] sm:$0xff]  ;;  %v625_v25 = vld [vmem:[%s2413_s7 + $0x590] sm:$0xff]  ;;  %622 = vst [vmem:[%s2418_s8 + $0x2b8] sm:$0xff] %v621_v23 }
  0x43   : > { %624 = vst [vmem:[%s2418_s8 + $0x2c0] sm:$0xff] %v623_v24  ;;  %626 = vst [vmem:[%s2418_s8 + $0x2c8] sm:$0xff] %v625_v25  ;;  %v627_v26 = vld [vmem:[%s2413_s7 + $0x5a0] sm:$0xff]  ;;  %v629_v27 = vld [vmem:[%s2413_s7 + $0x5b0] sm:$0xff] }
  0x44   : > { %v631_v28 = vld [vmem:[%s2413_s7 + $0x5c0] sm:$0xff]  ;;  %628 = vst [vmem:[%s2418_s8 + $0x2d0] sm:$0xff] %v627_v26  ;;  %630 = vst [vmem:[%s2418_s8 + $0x2d8] sm:$0xff] %v629_v27  ;;  %v633_v29 = vld [vmem:[%s2413_s7 + $0x5d0] sm:$0xff] }
  0x45   : > { %632 = vst [vmem:[%s2418_s8 + $0x2e0] sm:$0xff] %v631_v28  ;;  %v635_v30 = vld [vmem:[%s2413_s7 + $0x5e0] sm:$0xff]  ;;  %v637_v31 = vld [vmem:[%s2413_s7 + $0x5f0] sm:$0xff]  ;;  %634 = vst [vmem:[%s2418_s8 + $0x2e8] sm:$0xff] %v633_v29 }
  0x46   : > { %636 = vst [vmem:[%s2418_s8 + $0x2f0] sm:$0xff] %v635_v30  ;;  %638 = vst [vmem:[%s2418_s8 + $0x2f8] sm:$0xff] %v637_v31  ;;  %v639_v32 = vld [vmem:[%s2413_s7 + $0x600] sm:$0xff]  ;;  %v641_v33 = vld [vmem:[%s2413_s7 + $0x610] sm:$0xff] }
  0x47   : > { %v643_v34 = vld [vmem:[%s2413_s7 + $0x620] sm:$0xff]  ;;  %640 = vst [vmem:[%s2418_s8 + $0x300] sm:$0xff] %v639_v32  ;;  %642 = vst [vmem:[%s2418_s8 + $0x308] sm:$0xff] %v641_v33  ;;  %v645_v35 = vld [vmem:[%s2413_s7 + $0x630] sm:$0xff] }
  0x48   : > { %644 = vst [vmem:[%s2418_s8 + $0x310] sm:$0xff] %v643_v34  ;;  %v647_v36 = vld [vmem:[%s2413_s7 + $0x640] sm:$0xff]  ;;  %v649_v37 = vld [vmem:[%s2413_s7 + $0x650] sm:$0xff]  ;;  %646 = vst [vmem:[%s2418_s8 + $0x318] sm:$0xff] %v645_v35 }
  0x49   : > { %648 = vst [vmem:[%s2418_s8 + $0x320] sm:$0xff] %v647_v36  ;;  %650 = vst [vmem:[%s2418_s8 + $0x328] sm:$0xff] %v649_v37  ;;  %v651_v38 = vld [vmem:[%s2413_s7 + $0x660] sm:$0xff]  ;;  %v653_v39 = vld [vmem:[%s2413_s7 + $0x670] sm:$0xff] }
  0x4a   : > { %v655_v40 = vld [vmem:[%s2413_s7 + $0x680] sm:$0xff]  ;;  %652 = vst [vmem:[%s2418_s8 + $0x330] sm:$0xff] %v651_v38  ;;  %654 = vst [vmem:[%s2418_s8 + $0x338] sm:$0xff] %v653_v39  ;;  %v657_v41 = vld [vmem:[%s2413_s7 + $0x690] sm:$0xff] }
  0x4b   : > { %656 = vst [vmem:[%s2418_s8 + $0x340] sm:$0xff] %v655_v40  ;;  %v659_v42 = vld [vmem:[%s2413_s7 + $0x6a0] sm:$0xff]  ;;  %v661_v43 = vld [vmem:[%s2413_s7 + $0x6b0] sm:$0xff]  ;;  %658 = vst [vmem:[%s2418_s8 + $0x348] sm:$0xff] %v657_v41 }
  0x4c   : > { %660 = vst [vmem:[%s2418_s8 + $0x350] sm:$0xff] %v659_v42  ;;  %662 = vst [vmem:[%s2418_s8 + $0x358] sm:$0xff] %v661_v43  ;;  %v663_v44 = vld [vmem:[%s2413_s7 + $0x6c0] sm:$0xff]  ;;  %v665_v45 = vld [vmem:[%s2413_s7 + $0x6d0] sm:$0xff] }
  0x4d   : > { %v667_v46 = vld [vmem:[%s2413_s7 + $0x6e0] sm:$0xff]  ;;  %664 = vst [vmem:[%s2418_s8 + $0x360] sm:$0xff] %v663_v44  ;;  %666 = vst [vmem:[%s2418_s8 + $0x368] sm:$0xff] %v665_v45  ;;  %v669_v47 = vld [vmem:[%s2413_s7 + $0x6f0] sm:$0xff] }
  0x4e   : > { %668 = vst [vmem:[%s2418_s8 + $0x370] sm:$0xff] %v667_v46  ;;  %v671_v48 = vld [vmem:[%s2413_s7 + $0x700] sm:$0xff]  ;;  %v673_v49 = vld [vmem:[%s2413_s7 + $0x710] sm:$0xff]  ;;  %670 = vst [vmem:[%s2418_s8 + $0x378] sm:$0xff] %v669_v47 }
  0x4f   : > { %672 = vst [vmem:[%s2418_s8 + $0x380] sm:$0xff] %v671_v48  ;;  %674 = vst [vmem:[%s2418_s8 + $0x388] sm:$0xff] %v673_v49  ;;  %v675_v50 = vld [vmem:[%s2413_s7 + $0x720] sm:$0xff]  ;;  %v677_v51 = vld [vmem:[%s2413_s7 + $0x730] sm:$0xff] }
  0x50   : > { %v679_v52 = vld [vmem:[%s2413_s7 + $0x740] sm:$0xff]  ;;  %676 = vst [vmem:[%s2418_s8 + $0x390] sm:$0xff] %v675_v50  ;;  %678 = vst [vmem:[%s2418_s8 + $0x398] sm:$0xff] %v677_v51  ;;  %v681_v53 = vld [vmem:[%s2413_s7 + $0x750] sm:$0xff] }
  0x51   : > { %680 = vst [vmem:[%s2418_s8 + $0x3a0] sm:$0xff] %v679_v52  ;;  %v683_v54 = vld [vmem:[%s2413_s7 + $0x760] sm:$0xff]  ;;  %v685_v55 = vld [vmem:[%s2413_s7 + $0x770] sm:$0xff]  ;;  %682 = vst [vmem:[%s2418_s8 + $0x3a8] sm:$0xff] %v681_v53 }
  0x52   : > { %684 = vst [vmem:[%s2418_s8 + $0x3b0] sm:$0xff] %v683_v54  ;;  %686 = vst [vmem:[%s2418_s8 + $0x3b8] sm:$0xff] %v685_v55  ;;  %v687_v56 = vld [vmem:[%s2413_s7 + $0x780] sm:$0xff]  ;;  %v689_v57 = vld [vmem:[%s2413_s7 + $0x790] sm:$0xff] }
  0x53   : > { %v691_v58 = vld [vmem:[%s2413_s7 + $0x7a0] sm:$0xff]  ;;  %688 = vst [vmem:[%s2418_s8 + $0x3c0] sm:$0xff] %v687_v56  ;;  %690 = vst [vmem:[%s2418_s8 + $0x3c8] sm:$0xff] %v689_v57  ;;  %v693_v59 = vld [vmem:[%s2413_s7 + $0x7b0] sm:$0xff] }
  0x54   : > { %692 = vst [vmem:[%s2418_s8 + $0x3d0] sm:$0xff] %v691_v58  ;;  %v695_v60 = vld [vmem:[%s2413_s7 + $0x7c0] sm:$0xff]  ;;  %v697_v61 = vld [vmem:[%s2413_s7 + $0x7d0] sm:$0xff]  ;;  %694 = vst [vmem:[%s2418_s8 + $0x3d8] sm:$0xff] %v693_v59 }
  0x55   : > { %696 = vst [vmem:[%s2418_s8 + $0x3e0] sm:$0xff] %v695_v60  ;;  %698 = vst [vmem:[%s2418_s8 + $0x3e8] sm:$0xff] %v697_v61  ;;  %v699_v62 = vld [vmem:[%s2413_s7 + $0x7e0] sm:$0xff]  ;;  %v701_v63 = vld [vmem:[%s2413_s7 + $0x7f0] sm:$0xff] }
  0x56   : > { %700 = vst [vmem:[%s2418_s8 + $0x3f0] sm:$0xff] %v699_v62  ;;  %702 = vst [vmem:[%s2418_s8 + $0x3f8] sm:$0xff] %v701_v63 }
  0x57 PF: > { %p1879_p7 = scmp.ge.s32.totalorder %s2326_s18, 1  ;;  %p707_p8 = scmp.lt.s32.totalorder %s2326_s18, 7 }
  0x59   : > { %p708_p9 = pnand %p1879_p7, %p707_p8 }
  0x5a   : > { %s714_s9 = sand.u32 (!%p708_p9), 1, %s2302_s12   ;;  %s1881_s10 = sshll.u32 (!%p708_p9), %s2310_s14, 3 }
  0x5b   : > { %711 = sbr.rel (%p708_p9) target bundleno = 571 (0x23b), region = 66  ;;  %s1880_s11 = sshll.u32 (!%p708_p9), %s714_s9, 10 }
  0x5c   : > { %p742_p10 = scmp.lt.s32.totalorder (!%p708_p9), %s1881_s10, 23  ;;  %s1882_s21 = sshll.u32 (!%p708_p9), %s2314_s15, 1 }
  0x5d   : > { %p749_p11 = scmp.lt.s32.totalorder (!%p708_p9), %s1882_s21, 3  ;;  %s2689_s12 = scalar_lea.vmem (!%p708_p9), [#allocation3], %s1880_s11 }
  0x5e   : > { %p1884_p12 = scmp.ne.s32.totalorder (!%p708_p9), %s2310_s14, 0 }
  0x60   : > { %s2878_s10 = smov (!%p742_p10, %s1881_s10), 23  ;;  %s2880_s21 = smov (!%p749_p11, %s1882_s21), 3 }
  0x61   : > { %s744_s24 = scalar_lea.vmem %s2861_s0, %s2878_s10  ;;  %s1883_s26 = sshll.u32 %s2880_s21, 1 }
  0x62   : > { %s2687_s29 = scalar_lea.vmem %s2864_s3, %s1883_s26  ;;  %757 = sbr.rel (%p1884_p12) target bundleno = 105 (0x69), region = 74 }
  0x67   : > { %v2328_v0 = vmov 0.0  }
  0x68   : > { %758 = vst [vmem:[#allocation2] sm:$0xf] %v2328_v0 }
  0x69 PF: > { %v2078_v1 = vld [vmem:[%s2689_s12 + $0x74] ss:$8 sps:$4 sm:$0xff]   ;;  %v2082_v3 = vld [vmem:[%s2689_s12 + $0x70] ss:$8 sps:$4 sm:$0xff]   ;;  %v2084_v5 = vld [vmem:[%s2689_s12 + $0x64] ss:$8 sps:$4 sm:$0xff]   ;;  %v894_v39 = vlaneseq }
  0x6a   : > { %v2080_v2 = vld [vmem:[%s2689_s12 + $0x174] ss:$8 sps:$4 sm:$0xff]   ;;  %1587 = vmatprep.subr.bf16.mxu0 %v2078_v1  ;;  %v2083_v4 = vld [vmem:[%s2689_s12 + $0x170] ss:$8 sps:$4 sm:$0xff]   ;;  %v2086_v6 = vld [vmem:[%s2689_s12 + $0x164] ss:$8 sps:$4 sm:$0xff]  }
  0x6b   : > { %1628 = vmatprep.subr.bf16.mxu1 %v2080_v2  ;;  %1588 = vmatpush1.bf16.msra.mxu0 %v2082_v3  ;;  %v2088_v7 = vld [vmem:[%s2689_s12 + $0x60] ss:$8 sps:$4 sm:$0xff]   ;;  %v2090_v9 = vld [vmem:[%s2689_s12 + $0x54] ss:$8 sps:$4 sm:$0xff]   ;;  %v2094_v11 = vld [vmem:[%s2689_s12 + $0x50] ss:$8 sps:$4 sm:$0xff]  }
  0x6c   : > { %1629 = vmatpush1.bf16.msra.mxu1 %v2083_v4  ;;  %1589 = vmatprep.subr.bf16.mxu0 %v2084_v5  ;;  %v2089_v8 = vld [vmem:[%s2689_s12 + $0x160] ss:$8 sps:$4 sm:$0xff]   ;;  %v2092_v10 = vld [vmem:[%s2689_s12 + $0x154] ss:$8 sps:$4 sm:$0xff]   ;;  %v2095_v12 = vld [vmem:[%s2689_s12 + $0x150] ss:$8 sps:$4 sm:$0xff]  }
  0x6d   : > { %1630 = vmatprep.subr.bf16.mxu1 %v2086_v6  ;;  %v2096_v13 = vld [vmem:[%s2689_s12 + $0x44] ss:$8 sps:$4 sm:$0xff]   ;;  %v2100_v15 = vld [vmem:[%s2689_s12 + $0x40] ss:$8 sps:$4 sm:$0xff]   ;;  %v2102_v17 = vld [vmem:[%s2689_s12 + $0x34] ss:$8 sps:$4 sm:$0xff]  }
  0x6e   : > { %v2098_v14 = vld [vmem:[%s2689_s12 + $0x144] ss:$8 sps:$4 sm:$0xff]   ;;  %v2101_v16 = vld [vmem:[%s2689_s12 + $0x140] ss:$8 sps:$4 sm:$0xff]   ;;  %v2104_v18 = vld [vmem:[%s2689_s12 + $0x134] ss:$8 sps:$4 sm:$0xff]  }
  0x6f   : > { %1590 = vmatpush1.bf16.msra.mxu0 %v2088_v7  ;;  %v2106_v19 = vld [vmem:[%s2689_s12 + $0x30] ss:$8 sps:$4 sm:$0xff]   ;;  %v2108_v21 = vld [vmem:[%s2689_s12 + $0x24] ss:$8 sps:$4 sm:$0xff]   ;;  %v2112_v23 = vld [vmem:[%s2689_s12 + $0x20] ss:$8 sps:$4 sm:$0xff]  }
  0x70   : > { %1631 = vmatpush1.bf16.msra.mxu1 %v2089_v8  ;;  %1591 = vmatprep.subr.bf16.mxu0 %v2090_v9  ;;  %v2107_v20 = vld [vmem:[%s2689_s12 + $0x130] ss:$8 sps:$4 sm:$0xff]   ;;  %v2110_v22 = vld [vmem:[%s2689_s12 + $0x124] ss:$8 sps:$4 sm:$0xff]   ;;  %v2113_v24 = vld [vmem:[%s2689_s12 + $0x120] ss:$8 sps:$4 sm:$0xff]  }
  0x71   : > { %1632 = vmatprep.subr.bf16.mxu1 %v2092_v10  ;;  %v2114_v25 = vld [vmem:[%s2689_s12 + $0x14] ss:$8 sps:$4 sm:$0xff]   ;;  %v2118_v27 = vld [vmem:[%s2689_s12 + $0x10] ss:$8 sps:$4 sm:$0xff]   ;;  %v2120_v29 = vld [vmem:[%s2689_s12 + $0x4] ss:$8 sps:$4 sm:$0xff]  }
  0x72   : > { %v2116_v26 = vld [vmem:[%s2689_s12 + $0x114] ss:$8 sps:$4 sm:$0xff]   ;;  %v2119_v28 = vld [vmem:[%s2689_s12 + $0x110] ss:$8 sps:$4 sm:$0xff]   ;;  %v2122_v30 = vld [vmem:[%s2689_s12 + $0x104] ss:$8 sps:$4 sm:$0xff]  }
  0x73   : > { %1592 = vmatpush1.bf16.msra.mxu0 %v2094_v11  ;;  %v2124_v31 = vld [vmem:[%s2689_s12] ss:$8 sps:$4 sm:$0xff]   ;;  %v2126_v33 = vld [vmem:[%s2689_s12 + $0xf4] ss:$8 sps:$4 sm:$0xff]   ;;  %v2130_v35 = vld [vmem:[%s2689_s12 + $0xf0] ss:$8 sps:$4 sm:$0xff]  }
  0x74   : > { %1633 = vmatpush1.bf16.msra.mxu1 %v2095_v12  ;;  %1593 = vmatprep.subr.bf16.mxu0 %v2096_v13  ;;  %v2125_v32 = vld [vmem:[%s2689_s12 + $0x100] ss:$8 sps:$4 sm:$0xff]   ;;  %v2128_v34 = vld [vmem:[%s2689_s12 + $0x1f4] ss:$8 sps:$4 sm:$0xff]   ;;  %v2131_v36 = vld [vmem:[%s2689_s12 + $0x1f0] ss:$8 sps:$4 sm:$0xff]  }
  0x75   : > { %1634 = vmatprep.subr.bf16.mxu1 %v2098_v14  ;;  %v2329_v37 = vmov 1966171168   ;;  %v2132_v40 = vld [vmem:[%s2689_s12 + $0xe4] ss:$8 sps:$4 sm:$0xff]   ;;  %v2136_v42 = vld [vmem:[%s2689_s12 + $0xe0] ss:$8 sps:$4 sm:$0xff]  }
  0x76   : > { %v892_v38 = vunpack.c.l.s4 %v2329_v37  ;;  %v2134_v41 = vld [vmem:[%s2689_s12 + $0x1e4] ss:$8 sps:$4 sm:$0xff]   ;;  %v2731_v44 = vshrl.u32 %v894_v39, 7  ;;  %v2137_v45 = vld [vmem:[%s2689_s12 + $0x1e0] ss:$8 sps:$4 sm:$0xff]   ;;  %p2013_p13 = scmp.ne.s32.totalorder %s2310_s14, 2 }
  0x77   : > { %1594 = vmatpush1.bf16.msra.mxu0 %v2100_v15  ;;  %v2138_v46 = vld [vmem:[%s2689_s12 + $0xd4] ss:$8 sps:$4 sm:$0xff]   ;;  %v2142_v48 = vld [vmem:[%s2689_s12 + $0xd0] ss:$8 sps:$4 sm:$0xff]   ;;  %v2144_v51 = vld [vmem:[%s2689_s12 + $0xc4] ss:$8 sps:$4 sm:$0xff]  }
  0x78   : > { %1635 = vmatpush1.bf16.msra.mxu1 %v2101_v16  ;;  %1595 = vmatprep.subr.bf16.mxu0 %v2102_v17  ;;  %v893_v43 = vunpack.c.0.s8 %v892_v38  ;;  %v2140_v47 = vld [vmem:[%s2689_s12 + $0x1d4] ss:$8 sps:$4 sm:$0xff]   ;;  %v2143_v49 = vld [vmem:[%s2689_s12 + $0x1d0] ss:$8 sps:$4 sm:$0xff]   ;;  %v2146_v52 = vld [vmem:[%s2689_s12 + $0x1c4] ss:$8 sps:$4 sm:$0xff]  }
  0x79   : > { %1636 = vmatprep.subr.bf16.mxu1 %v2104_v18  ;;  %v760_v53 = vld [vmem:[%s744_s24] sm:$0xff]  ;;  %v2154_v62 = vld [vmem:[%s2689_s12 + $0xb0] ss:$8 sps:$4 sm:$0xff]   ;;  %v2156_v2 = vld [vmem:[%s2689_s12 + $0xa4] ss:$8 sps:$4 sm:$0xff]  }
  0x7a   : > { %v896_v50 = vsub.s32 %v893_v43, %v2731_v44  ;;  %v2148_v54 = vld [vmem:[%s2689_s12 + $0xc0] ss:$8 sps:$4 sm:$0xff]   ;;  %v890_v55 = vcombine.high %v760_v53, %v760_v53  ;;  %v2150_v58 = vld [vmem:[%s2689_s12 + $0xb4] ss:$8 sps:$4 sm:$0xff]   ;;  %v2155_v1 = vld [vmem:[%s2689_s12 + $0x1b0] ss:$8 sps:$4 sm:$0xff]  }
  0x7b   : > { %1596 = vmatpush1.bf16.msra.mxu0 %v2106_v19  ;;  %v2149_v57 = vld [vmem:[%s2689_s12 + $0x1c0] ss:$8 sps:$4 sm:$0xff]   ;;  %v2152_v59 = vld [vmem:[%s2689_s12 + $0x1b4] ss:$8 sps:$4 sm:$0xff]   ;;  %v2158_v3 = vld [vmem:[%s2689_s12 + $0x1a4] ss:$8 sps:$4 sm:$0xff]  }
  0x7c   : > { %1637 = vmatpush1.bf16.msra.mxu1 %v2107_v20  ;;  %1597 = vmatprep.subr.bf16.mxu0 %v2108_v21  ;;  %v897_v56 = vrot.slane %v760_v53, %v896_v50  ;;  %v904_v61 = vrot.slane %v890_v55, %v896_v50  ;;  %v2160_v5 = vld [vmem:[%s2689_s12 + $0xa0] ss:$8 sps:$4 sm:$0xff]   ;;  %v2162_v7 = vld [vmem:[%s2689_s12 + $0x94] ss:$8 sps:$4 sm:$0xff]   ;;  %v2166_v9 = vld [vmem:[%s2689_s12 + $0x90] ss:$8 sps:$4 sm:$0xff]  }
  0x7d   : > { %1638 = vmatprep.subr.bf16.mxu1 %v2110_v22  ;;  %v2161_v6 = vld [vmem:[%s2689_s12 + $0x1a0] ss:$8 sps:$4 sm:$0xff]   ;;  %v2164_v8 = vld [vmem:[%s2689_s12 + $0x194] ss:$8 sps:$4 sm:$0xff]   ;;  %v2167_v10 = vld [vmem:[%s2689_s12 + $0x190] ss:$8 sps:$4 sm:$0xff]  }
  0x7e   : > { %v905_v60 = vcombine.high %v897_v56, %v897_v56  ;;  %v2751_v0 = vrot.slane %v904_v61, %v896_v50  ;;  %v2168_v11 = vld [vmem:[%s2689_s12 + $0x84] ss:$8 sps:$4 sm:$0xff]   ;;  %v906_v13 = vcombine.high %v904_v61, %v904_v61  ;;  %v2172_v14 = vld [vmem:[%s2689_s12 + $0x80] ss:$8 sps:$4 sm:$0xff]   ;;  %v913_v15 = vrot.slane %v897_v56, %v896_v50  ;;  %v2177_v17 = vld [vmem:[%s2689_s12 + $0x274] ss:$8 sps:$4 sm:$0xff]  }
  0x7f   : > { %1598 = vmatpush1.bf16.msra.mxu0 %v2112_v23  ;;  %v2170_v12 = vld [vmem:[%s2689_s12 + $0x184] ss:$8 sps:$4 sm:$0xff]   ;;  %v2173_v16 = vld [vmem:[%s2689_s12 + $0x180] ss:$8 sps:$4 sm:$0xff]   ;;  %v2180_v18 = vld [vmem:[%s2689_s12 + $0x374] ss:$8 sps:$4 sm:$0xff]  }
  0x80   : > { %1639 = vmatpush1.bf16.msra.mxu1 %v2113_v24  ;;  %1599 = vmatprep.subr.bf16.mxu0 %v2114_v25  ;;  %v927_v63 = vrot.slane %v905_v60, %v896_v50  ;;  %v934_v19 = vrot.slane %v906_v13, %v896_v50  ;;  %v935_v20 = vcombine.high %v913_v15, %v913_v15  ;;  %v2175_v21 = vld [vmem:[%s2689_s12 + $0x270] ss:$8 sps:$4 sm:$0xff]   ;;  %v2183_v23 = vld [vmem:[%s2689_s12 + $0x264] ss:$8 sps:$4 sm:$0xff]   ;;  %v2204_v37 = vld [vmem:[%s2689_s12 + $0x334] ss:$8 sps:$4 sm:$0xff]  }
  0x81   : > { %1640 = vmatprep.subr.bf16.mxu1 %v2116_v26  ;;  %v2178_v22 = vld [vmem:[%s2689_s12 + $0x370] ss:$8 sps:$4 sm:$0xff]   ;;  %v2186_v24 = vld [vmem:[%s2689_s12 + $0x364] ss:$8 sps:$4 sm:$0xff]   ;;  %v2181_v26 = vld [vmem:[%s2689_s12 + $0x260] ss:$8 sps:$4 sm:$0xff]  }
  0x82   : > { %v937_v4 = vcombine.high %v927_v63, %v927_v63  ;;  %1619 = vmatprep.mubr.bf16.mxu0 %v927_v63  ;;  %v938_v25 = vcombine.high %v934_v19, %v934_v19  ;;  %v2199_v38 = vld [vmem:[%s2689_s12 + $0x230] ss:$8 sps:$4 sm:$0xff]   ;;  %v2208_v43 = vld [vmem:[%s2689_s12 + $0x320] ss:$8 sps:$4 sm:$0xff]   ;;  %v2222_v50 = vld [vmem:[%s2689_s12 + $0x304] ss:$8 sps:$4 sm:$0xff]  }
  0x83   : > { %1600 = vmatpush1.bf16.msra.mxu0 %v2118_v27  ;;  %v2184_v27 = vld [vmem:[%s2689_s12 + $0x360] ss:$8 sps:$4 sm:$0xff]   ;;  %v2202_v39 = vld [vmem:[%s2689_s12 + $0x330] ss:$8 sps:$4 sm:$0xff]   ;;  %v2225_v53 = vld [vmem:[%s2689_s12 + $0x2f4] ss:$8 sps:$4 sm:$0xff]  }
  0x84   : > { %1641 = vmatpush1.bf16.msra.mxu1 %v2119_v28  ;;  %1601 = vmatprep.subr.bf16.mxu0 %v2120_v29  ;;  %v2189_v28 = vld [vmem:[%s2689_s12 + $0x254] ss:$8 sps:$4 sm:$0xff]   ;;  %v2223_v55 = vld [vmem:[%s2689_s12 + $0x2f0] ss:$8 sps:$4 sm:$0xff]   ;;  %v2232_v60 = vld [vmem:[%s2689_s12 + $0x3e0] ss:$8 sps:$4 sm:$0xff]  }
  0x85   : > { %1642 = vmatprep.subr.bf16.mxu1 %v2122_v30  ;;  %1660 = vmatprep.mubr.bf16.mxu1 %v937_v4  ;;  %v2192_v29 = vld [vmem:[%s2689_s12 + $0x354] ss:$8 sps:$4 sm:$0xff]   ;;  %v2187_v30 = vld [vmem:[%s2689_s12 + $0x250] ss:$8 sps:$4 sm:$0xff]   ;;  %v2241_v4 = vld [vmem:[%s2689_s12 + $0x2c0] ss:$8 sps:$4 sm:$0xff]  }
  0x86   : > { %v2226_v56 = vld [vmem:[%s2689_s12 + $0x3f0] ss:$8 sps:$4 sm:$0xff]   ;;  %v2237_v61 = vld [vmem:[%s2689_s12 + $0x2d4] ss:$8 sps:$4 sm:$0xff]   ;;  %v2256_v13 = vld [vmem:[%s2689_s12 + $0x3a0] ss:$8 sps:$4 sm:$0xff]  }
  0x87   : > { %1602 = vmatpush1.bf16.msra.mxu0 %v2124_v31  ;;  %v2190_v31 = vld [vmem:[%s2689_s12 + $0x350] ss:$8 sps:$4 sm:$0xff]  }
  0x88   : > { %1643 = vmatpush1.bf16.msra.mxu1 %v2125_v32  ;;  %1603 = vmatprep.subr.bf16.mxu0 %v2126_v33  ;;  %v2195_v32 = vld [vmem:[%s2689_s12 + $0x244] ss:$8 sps:$4 sm:$0xff]   ;;  %v2235_v63 = vld [vmem:[%s2689_s12 + $0x2d0] ss:$8 sps:$4 sm:$0xff]  }
  0x89   : > { %1644 = vmatprep.subr.bf16.mxu1 %v2128_v34  ;;  %v2198_v33 = vld [vmem:[%s2689_s12 + $0x344] ss:$8 sps:$4 sm:$0xff]   ;;  %v2193_v34 = vld [vmem:[%s2689_s12 + $0x240] ss:$8 sps:$4 sm:$0xff]  }
  0x8b   : > { %1604 = vmatpush2.bf16.msra.mxu0 %v2130_v35  ;;  %v2196_v35 = vld [vmem:[%s2689_s12 + $0x340] ss:$8 sps:$4 sm:$0xff]  }
  0x8c   : > { %1645 = vmatpush2.bf16.msra.mxu1 %v2131_v36  ;;  %1605 = vmatprep.subr.bf16.mxu0 %v2132_v40  ;;  %v2201_v36 = vld [vmem:[%s2689_s12 + $0x234] ss:$8 sps:$4 sm:$0xff]   ;;  %v2207_v40 = vld [vmem:[%s2689_s12 + $0x224] ss:$8 sps:$4 sm:$0xff]  }
  0x8d   : > { %1646 = vmatprep.subr.bf16.mxu1 %v2134_v41  ;;  %v2210_v41 = vld [vmem:[%s2689_s12 + $0x324] ss:$8 sps:$4 sm:$0xff]  }
  0x8f   : > { %1606 = vmatpush2.bf16.msra.mxu0 %v2136_v42  ;;  %v2205_v42 = vld [vmem:[%s2689_s12 + $0x220] ss:$8 sps:$4 sm:$0xff]  }
  0x90   : > { %1647 = vmatpush2.bf16.msra.mxu1 %v2137_v45  ;;  %1607 = vmatprep.subr.bf16.mxu0 %v2138_v46  ;;  %v2213_v45 = vld [vmem:[%s2689_s12 + $0x214] ss:$8 sps:$4 sm:$0xff]  }
  0x91   : > { %1648 = vmatprep.subr.bf16.mxu1 %v2140_v47  ;;  %v2216_v46 = vld [vmem:[%s2689_s12 + $0x314] ss:$8 sps:$4 sm:$0xff]   ;;  %v2211_v47 = vld [vmem:[%s2689_s12 + $0x210] ss:$8 sps:$4 sm:$0xff]  }
  0x93   : > { %1608 = vmatpush2.bf16.msra.mxu0 %v2142_v48  ;;  %v2214_v48 = vld [vmem:[%s2689_s12 + $0x310] ss:$8 sps:$4 sm:$0xff]  }
  0x94   : > { %1649 = vmatpush2.bf16.msra.mxu1 %v2143_v49  ;;  %1609 = vmatprep.subr.bf16.mxu0 %v2144_v51  ;;  %v2219_v49 = vld [vmem:[%s2689_s12 + $0x204] ss:$8 sps:$4 sm:$0xff]   ;;  %v2217_v51 = vld [vmem:[%s2689_s12 + $0x200] ss:$8 sps:$4 sm:$0xff]  }
  0x95   : > { %1650 = vmatprep.subr.bf16.mxu1 %v2146_v52  ;;  %v2220_v52 = vld [vmem:[%s2689_s12 + $0x300] ss:$8 sps:$4 sm:$0xff]  }
  0x97   : > { %1610 = vmatpush2.bf16.msra.mxu0 %v2148_v54  ;;  %v2228_v54 = vld [vmem:[%s2689_s12 + $0x3f4] ss:$8 sps:$4 sm:$0xff]  }
  0x98   : > { %1651 = vmatpush2.bf16.msra.mxu1 %v2149_v57  ;;  %1611 = vmatprep.subr.bf16.mxu0 %v2150_v58  ;;  %v2231_v57 = vld [vmem:[%s2689_s12 + $0x2e4] ss:$8 sps:$4 sm:$0xff]  }
  0x99   : > { %1652 = vmatprep.subr.bf16.mxu1 %v2152_v59  ;;  %v2234_v58 = vld [vmem:[%s2689_s12 + $0x3e4] ss:$8 sps:$4 sm:$0xff]   ;;  %v2229_v59 = vld [vmem:[%s2689_s12 + $0x2e0] ss:$8 sps:$4 sm:$0xff]  }
  0x9b   : > { %1612 = vmatpush2.bf16.msra.mxu0 %v2154_v62  ;;  %v2240_v62 = vld [vmem:[%s2689_s12 + $0x3d4] ss:$8 sps:$4 sm:$0xff]  }
  0x9c   : > { %1653 = vmatpush2.bf16.msra.mxu1 %v2155_v1  ;;  %1613 = vmatprep.subr.bf16.mxu0 %v2156_v2  ;;  %v2238_v1 = vld [vmem:[%s2689_s12 + $0x3d0] ss:$8 sps:$4 sm:$0xff]   ;;  %v2243_v2 = vld [vmem:[%s2689_s12 + $0x2c4] ss:$8 sps:$4 sm:$0xff]  }
  0x9d   : > { %1654 = vmatprep.subr.bf16.mxu1 %v2158_v3  ;;  %v2246_v3 = vld [vmem:[%s2689_s12 + $0x3c4] ss:$8 sps:$4 sm:$0xff]  }
  0x9f   : > { %1614 = vmatpush2.bf16.msra.mxu0 %v2160_v5  ;;  %v2244_v5 = vld [vmem:[%s2689_s12 + $0x3c0] ss:$8 sps:$4 sm:$0xff]  }
  0xa0   : > { %1655 = vmatpush2.bf16.msra.mxu1 %v2161_v6  ;;  %1615 = vmatprep.subr.bf16.mxu0 %v2162_v7  ;;  %v2249_v6 = vld [vmem:[%s2689_s12 + $0x2b4] ss:$8 sps:$4 sm:$0xff]  }
  0xa1   : > { %1656 = vmatprep.subr.bf16.mxu1 %v2164_v8  ;;  %v2252_v7 = vld [vmem:[%s2689_s12 + $0x3b4] ss:$8 sps:$4 sm:$0xff]   ;;  %v2247_v8 = vld [vmem:[%s2689_s12 + $0x2b0] ss:$8 sps:$4 sm:$0xff]  }
  0xa3   : > { %1616 = vmatpush2.bf16.msra.mxu0 %v2166_v9  ;;  %v2250_v9 = vld [vmem:[%s2689_s12 + $0x3b0] ss:$8 sps:$4 sm:$0xff]  }
  0xa4   : > { %1657 = vmatpush2.bf16.msra.mxu1 %v2167_v10  ;;  %1617 = vmatprep.subr.bf16.mxu0 %v2168_v11  ;;  %v2255_v10 = vld [vmem:[%s2689_s12 + $0x2a4] ss:$8 sps:$4 sm:$0xff]  }
  0xa5   : > { %1658 = vmatprep.subr.bf16.mxu1 %v2170_v12  ;;  %v2258_v11 = vld [vmem:[%s2689_s12 + $0x3a4] ss:$8 sps:$4 sm:$0xff]   ;;  %v2253_v12 = vld [vmem:[%s2689_s12 + $0x2a0] ss:$8 sps:$4 sm:$0xff]  }
  0xa7   : > { %1618 = vmatpush2.bf16.msra.mxu0 %v2172_v14  ;;  %v2261_v14 = vld [vmem:[%s2689_s12 + $0x294] ss:$8 sps:$4 sm:$0xff]  }
  0xa8   : > { %1659 = vmatpush2.bf16.msra.mxu1 %v2173_v16  ;;  %1669 = vmatprep.subr.bf16.mxu0 %v2177_v17  ;;  %v2259_v16 = vld [vmem:[%s2689_s12 + $0x290] ss:$8 sps:$4 sm:$0xff]  }
  0xa9   : > { %1710 = vmatprep.subr.bf16.mxu1 %v2180_v18  ;;  %v2262_v17 = vld [vmem:[%s2689_s12 + $0x390] ss:$8 sps:$4 sm:$0xff]   ;;  %v2267_v18 = vld [vmem:[%s2689_s12 + $0x284] ss:$8 sps:$4 sm:$0xff]  }
  0xaa   : > { %1620 = vmatmul.mubr.bf16.vlgmr.msra.gmra.mxu0 %v913_v15  ;;  %v2264_v15 = vld [vmem:[%s2689_s12 + $0x394] ss:$8 sps:$4 sm:$0xff]  }
  0xab   : > { %1661 = vmatmul.mubr.bf16.vlgmr.msra.gmra.mxu1 %v935_v20  ;;  %1670 = vmatpush1.bf16.msra.mxu0 %v2175_v21  ;;  %v2265_v20 = vld [vmem:[%s2689_s12 + $0x280] ss:$8 sps:$4 sm:$0xff]  }
  0xac   : > { %1711 = vmatpush1.bf16.msra.mxu1 %v2178_v22  ;;  %1671 = vmatprep.subr.bf16.mxu0 %v2183_v23  ;;  %v2268_v21 = vld [vmem:[%s2689_s12 + $0x380] ss:$8 sps:$4 sm:$0xff]   ;;  %v936_v22 = vcombine.high %v2751_v0, %v2751_v0 }
  0xad   : > { %1712 = vmatprep.subr.bf16.mxu1 %v2186_v24  ;;  %1701 = vmatprep.mubr.bf16.mxu0 %v934_v19  ;;  %v2270_v19 = vld [vmem:[%s2689_s12 + $0x384] ss:$8 sps:$4 sm:$0xff]  }
  0xae   : > { %1742 = vmatprep.mubr.bf16.mxu1 %v938_v25 }
  0xaf   : > { %1672 = vmatpush1.bf16.msra.mxu0 %v2181_v26 }
  0xb0   : > { %1713 = vmatpush1.bf16.msra.mxu1 %v2184_v27  ;;  %1673 = vmatprep.subr.bf16.mxu0 %v2189_v28 }
  0xb1   : > { %1714 = vmatprep.subr.bf16.mxu1 %v2192_v29 }
  0xb3   : > { %1674 = vmatpush1.bf16.msra.mxu0 %v2187_v30 }
  0xb4   : > { %1715 = vmatpush1.bf16.msra.mxu1 %v2190_v31  ;;  %1675 = vmatprep.subr.bf16.mxu0 %v2195_v32  ;;  %v2330_v32 = vmov 1983009808  }
  0xb5   : > { %1716 = vmatprep.subr.bf16.mxu1 %v2198_v33  ;;  %v1755_v33 = vunpack.c.l.s4 %v2330_v32 }
  0xb7   : > { %1676 = vmatpush1.bf16.msra.mxu0 %v2193_v34 }
  0xb8   : > { %1717 = vmatpush1.bf16.msra.mxu1 %v2196_v35  ;;  %1677 = vmatprep.subr.bf16.mxu0 %v2201_v36 }
  0xb9   : > { %1718 = vmatprep.subr.bf16.mxu1 %v2204_v37 }
  0xbb   : > { %1678 = vmatpush1.bf16.msra.mxu0 %v2199_v38  ;;  %v1756_v38 = vunpack.c.0.s8 %v1755_v33 }
  0xbc   : > { %1719 = vmatpush1.bf16.msra.mxu1 %v2202_v39  ;;  %1679 = vmatprep.subr.bf16.mxu0 %v2207_v40 }
  0xbd   : > { %1720 = vmatprep.subr.bf16.mxu1 %v2210_v41 }
  0xbf   : > { %1680 = vmatpush1.bf16.msra.mxu0 %v2205_v42 }
  0xc0   : > { %1721 = vmatpush1.bf16.msra.mxu1 %v2208_v43  ;;  %1681 = vmatprep.subr.bf16.mxu0 %v2213_v45 }
  0xc1   : > { %1722 = vmatprep.subr.bf16.mxu1 %v2216_v46  ;;  %v1759_v46 = vsub.s32 %v1756_v38, %v2731_v44 }
  0xc3   : > { %1682 = vmatpush1.bf16.msra.mxu0 %v2211_v47 }
  0xc4   : > { %1723 = vmatpush1.bf16.msra.mxu1 %v2214_v48  ;;  %1683 = vmatprep.subr.bf16.mxu0 %v2219_v49 }
  0xc5   : > { %1724 = vmatprep.subr.bf16.mxu1 %v2222_v50  ;;  %v759_v50 = vld [vmem:[#allocation2] sm:$0xf] }
  0xc7   : > { %1684 = vmatpush1.bf16.msra.mxu0 %v2217_v51 }
  0xc8   : > { %1725 = vmatpush1.bf16.msra.mxu1 %v2220_v52  ;;  %1685 = vmatprep.subr.bf16.mxu0 %v2225_v53 }
  0xc9   : > { %1726 = vmatprep.subr.bf16.mxu1 %v2228_v54 }
  0xcb   : > { %1686 = vmatpush2.bf16.msra.mxu0 %v2223_v55 }
  0xcc   : > { %1727 = vmatpush2.bf16.msra.mxu1 %v2226_v56  ;;  %1687 = vmatprep.subr.bf16.mxu0 %v2231_v57 }
  0xcd   : > { %1728 = vmatprep.subr.bf16.mxu1 %v2234_v58 }
  0xcf   : > { %1688 = vmatpush2.bf16.msra.mxu0 %v2229_v59 }
  0xd0   : > { %1729 = vmatpush2.bf16.msra.mxu1 %v2232_v60  ;;  %1689 = vmatprep.subr.bf16.mxu0 %v2237_v61 }
  0xd1   : > { %1730 = vmatprep.subr.bf16.mxu1 %v2240_v62 }
  0xd3   : > { %1690 = vmatpush2.bf16.msra.mxu0 %v2235_v63 }
  0xd4   : > { %1731 = vmatpush2.bf16.msra.mxu1 %v2238_v1  ;;  %1691 = vmatprep.subr.bf16.mxu0 %v2243_v2 }
  0xd5   : > { %1732 = vmatprep.subr.bf16.mxu1 %v2246_v3 }
  0xd7   : > { %1692 = vmatpush2.bf16.msra.mxu0 %v2241_v4 }
  0xd8   : > { %1733 = vmatpush2.bf16.msra.mxu1 %v2244_v5  ;;  %1693 = vmatprep.subr.bf16.mxu0 %v2249_v6 }
  0xd9   : > { %1734 = vmatprep.subr.bf16.mxu1 %v2252_v7 }
  0xdb   : > { %1694 = vmatpush2.bf16.msra.mxu0 %v2247_v8 }
  0xdc   : > { %1735 = vmatpush2.bf16.msra.mxu1 %v2250_v9  ;;  %1695 = vmatprep.subr.bf16.mxu0 %v2255_v10 }
  0xdd   : > { %1736 = vmatprep.subr.bf16.mxu1 %v2258_v11 }
  0xdf   : > { %1696 = vmatpush2.bf16.msra.mxu0 %v2253_v12 }
  0xe0   : > { %1737 = vmatpush2.bf16.msra.mxu1 %v2256_v13  ;;  %1697 = vmatprep.subr.bf16.mxu0 %v2261_v14 }
  0xe1   : > { %1738 = vmatprep.subr.bf16.mxu1 %v2264_v15 }
  0xe3   : > { %1698 = vmatpush2.bf16.msra.mxu0 %v2259_v16 }
  0xe4   : > { %1739 = vmatpush2.bf16.msra.mxu1 %v2262_v17  ;;  %1699 = vmatprep.subr.bf16.mxu0 %v2267_v18 }
  0xe5   : > { %1740 = vmatprep.subr.bf16.mxu1 %v2270_v19 }
  0xe7   : > { %1700 = vmatpush2.bf16.msra.mxu0 %v2265_v20 }
  0xe8   : > { %1741 = vmatpush2.bf16.msra.mxu1 %v2268_v21 }
  0xea   : > { %1702 = vmatmul.mubr.bf16.vlgmr.msra.gmra.mxu0 %v2751_v0 }
  0xeb   : > { %1743 = vmatmul.mubr.bf16.vlgmr.msra.gmra.mxu1 %v936_v22 }
 0x16a   : > { %v1621_v23 = vpop.f32.mrf.mxu0 }
 0x16b   : > { %v1662_v24 = vpop.f32.mrf.mxu1 }
 0x16c   : > { %v1663_v25 = vadd.f32 %v1662_v24, %v1621_v23  ;;  %v1623_v26 = vpop.f32.mrf.mxu0 }
 0x16d   : > { %v1664_v27 = vpop.f32.mrf.mxu1 }
 0x16e   : > { %v1625_v28 = vpop.f32.mrf.mxu0  ;;  %v1665_v36 = vadd.f32 %v1664_v27, %v1623_v26 }
 0x16f   : > { %v1666_v29 = vpop.f32.mrf.mxu1 }
 0x170   : > { %v1626_v30 = vpop.f32.mrf.mxu0 }
 0x171   : > { %v1667_v31 = vpop.f32.mrf.mxu1 }
 0x1aa   : > { %v1703_v34 = vpop.f32.mrf.mxu0 }
 0x1ab   : > { %v1744_v35 = vpop.f32.mrf.mxu1  ;;  %v1704_v37 = vadd.f32 %v1703_v34, %v1663_v25 }
 0x1ac   : > { %v1705_v39 = vpop.f32.mrf.mxu0 }
 0x1ad   : > { %v1746_v40 = vpop.f32.mrf.mxu1  ;;  %v1706_v0 = vadd.f32 %v1705_v39, %v1665_v36  ;;  %v1745_v43 = vadd.f32 %v1744_v35, %v1704_v37 }
 0x1ae   : > { %v1707_v41 = vpop.f32.mrf.mxu0 }
 0x1af   : > { %v1748_v42 = vpop.f32.mrf.mxu1  ;;  %v1747_v45 = vadd.f32 %v1746_v40, %v1706_v0 }
 0x1b0   : > { %v1708_v47 = vpop.f32.mrf.mxu0 }
 0x1b1   : > { %v1749_v48 = vpop.f32.mrf.mxu1  ;;  %v1753_v49 = vcombine.low %v1745_v43, %v1747_v45 }
 0x1b3   : > { %v1760_v51 = vrot.slane %v1753_v49, %v1759_v46  ;;  %1767 = sbr.rel (%p2013_p13) target bundleno = 571 (0x23b), region = 78 }
 0x1b5   : > { %v1762_v52 = vadd.f32 %v1760_v51, %v759_v50 }
 0x1b7   : > { %1763 = vst [vmem:[#allocation2] sm:$0xf] %v1762_v52 }
 0x1b8   : > { %v1769_v53 = vld [vmem:[%s2863_s2] sm:$0x3]  ;;  %v2331_v54 = vmov 0   ;;  %v2332_v55 = vmov 269488144  }
 0x1b9   : > { %2271 = vset.pattern.permute.xlu0 %v2331_v54  ;;  %v1775_v56 = vunpack.c.l.s4 %v2332_v55 }
 0x1ba   : > { %1772 = vperm.xlu0 %2271, %v1769_v53  }
 0x1bb   : > { %v1776_v57 = vunpack.c.0.s8 %v1775_v56 }
 0x1bd   : > { %v1779_v58 = vsub.s32 %v1776_v57, %v2731_v44 }
 0x1be   : > { %v1768_v60 = vld [vmem:[#allocation2] sm:$0xf] }
 0x235   : > { %v1773_v59 = vpop.permute.xlu0 %1772 }
 0x236   : > { %v1780_v61 = vrot.slane %v1773_v59, %v1779_v58 }
 0x238   : > { %v1782_v62 = vadd.f32 %v1780_v61, %v1768_v60 }
 0x23a   : > { %1783 = vst [vmem:[%s2687_s29] sm:$0xf] %v1782_v62 }
 0x23b PF: > { %s13_s18 = sadd.s32 1, %s2326_s18   ;;  %s2865_s12 = smov %s2306_s13 }
 0x23c   : > { %p10_p0 = scmp.ge.s32.totalorder %s13_s18, 8   ;;  %s2866_s13 = smov %s2404_s25 }
 0x23d   : > { %s2867_s14 = smov %s2318_s16  ;;  %s2868_s15 = smov %s2322_s17 }
 0x23e   : > { %s2869_s16 = smov %s2872_s19  ;;  %s2870_s17 = smov %s2876_s20 }
 0x23f   :  { %12 = sbr.rel (!%p10_p0) target bundleno = 4 (0x4), region = 116 }

</bundles_post_ra>
